<compile_context>
chip_gen: v7x
topology: tpu7x:2x2x1
jax: 0.10.0
libtpu: 0.0.40
codegen_flags: <defaults>
</compile_context>

<pallas_src>
import math

import jax
import jax.numpy as jnp
from jax.experimental import pallas as pl
from jax.experimental.pallas import tpu as pltpu

LN_EPS = 1e-5          # torch nn.LayerNorm default eps
NEG_INF = -1e30        # additive-mask value; exp underflows to exactly 0

# ----------------------------------------------------------------------------
# small config (consistent with the module's shapes)
# ----------------------------------------------------------------------------
BATCH = 2
SEQ = 8            # decoder sequence length (nq)
SEQ_ENC = 12       # encoder sequence length (nk for cross attention)
IN_DIM = 8         # params.B_input_dim (embedding input dim and output dim)
D_MODEL = 32       # params.hidden_dim
NUM_HEADS = 4      # params.T_num_heads
D_K = D_MODEL // NUM_HEADS
D_V = D_MODEL // NUM_HEADS
D_FF = 64          # params.T_ff_dim
NUM_LAYERS = 2     # params.T_num_layers
OUT_DIM = IN_DIM   # B_input_dim (no gripper / collision heads)

# width of the packed bias/gamma/beta vector slab (row-wise, lane-padded)
VEC_W = max(3 * NUM_HEADS * D_K, D_FF, D_MODEL, OUT_DIM)
VEC_ROWS = 4 + 12 * NUM_LAYERS


# ----------------------------------------------------------------------------
# fused decoder kernel (single invocation, everything stays in VMEM)
# ----------------------------------------------------------------------------
def fused_decoder_kernel(x_ref, enc_ref, bias_self_ref, bias_enc_ref, pe_ref,
                         emb_w_ref, att_wqkv_ref, att_wo_ref,
                         f_w1_ref, f_w2_ref, out_w_ref, vec_ref, o_ref):
    D = enc_ref.shape[1]
    H, dk = NUM_HEADS, D_K
    hd = H * dk                       # 32
    scale = 1.0 / math.sqrt(dk)

    def vrow(r, w):                   # static (1, w) slice of the vector slab
        return vec_ref[r:r + 1, 0:w]

    def layernorm(t, r_g, r_b):
        mu = jnp.mean(t, axis=-1, keepdims=True)
        var = jnp.mean((t - mu) ** 2, axis=-1, keepdims=True)
        return (t - mu) * jax.lax.rsqrt(var + LN_EPS) * vrow(r_g, D) + vrow(r_b, D)

    def attention(q2d, k2d, v2d, bias):
        # q2d: (B*nq, H*dk)  k2d/v2d: (B*nk, H*dk)  bias: (B*nq, B*nk)
        # batch separation + causal masking are folded into the additive bias
        # (block-diagonal, off-batch blocks = NEG_INF) so everything is 2D.
        outs = []
        for hh in range(H):
            s = slice(hh * dk, (hh + 1) * dk)
            qh, kh, vh = q2d[:, s], k2d[:, s], v2d[:, s]
            att = jax.lax.dot_general(               # q @ k^T, one MXU push
                qh, kh, (((1,), (1,)), ((), ())),
                preferred_element_type=jnp.float32) * scale + bias
            att = att - jnp.max(att, axis=-1, keepdims=True)
            e = jnp.exp(att)                         # masked entries -> 0.0
            p = e * pl.reciprocal(jnp.sum(e, axis=-1, keepdims=True),
                                  approx=True)
            outs.append(jnp.dot(p, vh, preferred_element_type=jnp.float32))
        return jnp.concatenate(outs, axis=-1)        # (B*nq, H*dv)

    # ---------------- embedding: relu(emb(x)) -> LN -> + pe ------------------
    h = jnp.dot(x_ref[...], emb_w_ref[...],
                preferred_element_type=jnp.float32) + vrow(0, D)
    h = jnp.maximum(h, 0.0)
    h = layernorm(h, 1, 2) + pe_ref[...]             # pe pre-tiled to (B*S, D)

    enc = enc_ref[...]                                # (B*S_enc, D)
    bias_self = bias_self_ref[...]                    # (B*S, B*S)
    bias_enc = bias_enc_ref[...]                      # (B*S, B*S_enc)

    # ------------- NUM_LAYERS x (self-attn, cross-attn, FFN) -----------------
    for l in range(NUM_LAYERS):
        base = 4 + 12 * l

        # ---- self attention: fused QKV projection (one MXU push) ----
        w = att_wqkv_ref[2 * l]                       # (D, 3*H*dk)
        qkv = jnp.dot(h, w, preferred_element_type=jnp.float32) \
            + vrow(base, 3 * hd)
        o = attention(qkv[:, 0:hd], qkv[:, hd:2 * hd], qkv[:, 2 * hd:3 * hd],
                      bias_self)
        o = jnp.dot(o, att_wo_ref[2 * l],
                    preferred_element_type=jnp.float32) + vrow(base + 1, D)
        h = layernorm(h + o, base + 2, base + 3)

        # ---- cross attention: Q from h, fused KV from enc ----
        w = att_wqkv_ref[2 * l + 1]
        b_qkv = vrow(base + 4, 3 * hd)
        q = jnp.dot(h, w[:, 0:hd],
                    preferred_element_type=jnp.float32) + b_qkv[:, 0:hd]
        kv = jnp.dot(enc, w[:, hd:3 * hd],
                     preferred_element_type=jnp.float32) + b_qkv[:, hd:3 * hd]
        o = attention(q, kv[:, 0:hd], kv[:, hd:2 * hd], bias_enc)
        o = jnp.dot(o, att_wo_ref[2 * l + 1],
                    preferred_element_type=jnp.float32) + vrow(base + 5, D)
        h = layernorm(h + o, base + 6, base + 7)

        # ---- position-wise feed forward on the fused (B*S, D) slab ----
        f1 = jnp.maximum(
            jnp.dot(h, f_w1_ref[l], preferred_element_type=jnp.float32)
            + vrow(base + 8, D_FF), 0.0)
        f2 = jnp.dot(f1, f_w2_ref[l],
                     preferred_element_type=jnp.float32) + vrow(base + 9, D)
        h = layernorm(h + f2, base + 10, base + 11)

    # ---------------- output head: tanh(Linear(D, OUT_DIM)) ------------------
    o_ref[...] = jnp.tanh(
        jnp.dot(h, out_w_ref[...], preferred_element_type=jnp.float32)
        + vrow(3, OUT_DIM))


# ----------------------------------------------------------------------------
# pallas_call wrapper
# ----------------------------------------------------------------------------
def _full_spec(a):
    nd = a.ndim
    return pl.BlockSpec(a.shape, lambda i, _nd=nd: (0,) * _nd)


def _block_diag_bias(bias, batch):
    """(nq, nk) additive bias -> (B*nq, B*nk): diagonal batch blocks carry
    `bias`, off-diagonal batch blocks are fully masked."""
    nq, nk = bias.shape
    eye = jnp.eye(batch, dtype=jnp.float32)
    full = jnp.where(eye[:, None, :, None] > 0,
                     bias[None, :, None, :], NEG_INF)
    return full.reshape(batch * nq, batch * nk)


@jax.jit
def action_decoder_forward(packed, x, enc_out, bias_self, bias_enc):
    """x: (B, S, IN_DIM); enc_out: (B, S_enc, D);
    bias_self: (S, S), bias_enc: (S, S_enc) additive masks (0 / -1e30)."""
    B, S, in_dim = x.shape
    _, S_enc, D = enc_out.shape

    pe = sinusoid_encoding_table(S, D)
    args = (
        x.reshape(B * S, in_dim),                     # fused (B*S, ...) slabs
        enc_out.reshape(B * S_enc, D),
        _block_diag_bias(bias_self, B),               # (B*S, B*S)
        _block_diag_bias(bias_enc, B),                # (B*S, B*S_enc)
        jnp.tile(pe, (B, 1)),                         # (B*S, D)
        packed['emb_w'], packed['att_wqkv'], packed['att_wo'],
        packed['f_w1'], packed['f_w2'], packed['out_w'], packed['vec'],
    )
    out = pl.pallas_call(
        fused_decoder_kernel,
        out_shape=jax.ShapeDtypeStruct((B * S, OUT_DIM), jnp.float32),
        grid=(1,),
        in_specs=[_full_spec(a) for a in args],
        out_specs=pl.BlockSpec((B * S, OUT_DIM), lambda i: (0, 0)),
        compiler_params=pltpu.CompilerParams(
            dimension_semantics=("arbitrary",)),
    )(*args)
    # tiny (~0.5 KB) final permute to (seq, batch, feature); left to XLA.
    return jnp.transpose(out.reshape(B, S, OUT_DIM), (1, 0, 2))


# ----------------------------------------------------------------------------
# glue (plain JAX): positional encoding, parameter init / packing
# ----------------------------------------------------------------------------
def sinusoid_encoding_table(max_len, d_model):
    pos = jnp.arange(max_len, dtype=jnp.float32).reshape(-1, 1)
    dim = jnp.arange(d_model // 2, dtype=jnp.float32).reshape(1, -1)
    angle = pos / jnp.power(10000.0, 2.0 * dim / d_model)
    out = jnp.zeros((max_len, d_model), dtype=jnp.float32)
    out = out.at[:, ::2].set(jnp.sin(angle))
    out = out.at[:, 1::2].set(jnp.cos(angle))
    return out


def xavier_normal(key, shape, gain=1.0):
    fan_in, fan_out = shape
    std = gain * math.sqrt(2.0 / (fan_in + fan_out))
    return std * jax.random.normal(key, shape, dtype=jnp.float32)


def init_params(key):
    ks = iter(jax.random.split(key, 256))
    zeros = lambda d: jnp.zeros((1, d), dtype=jnp.float32)
    ones = lambda d: jnp.ones((1, d), dtype=jnp.float32)

    def mha_params():
        return dict(
            wq=xavier_normal(next(ks), (D_MODEL, NUM_HEADS * D_K)),
            bq=zeros(NUM_HEADS * D_K),
            wk=xavier_normal(next(ks), (D_MODEL, NUM_HEADS * D_K)),
            bk=zeros(NUM_HEADS * D_K),
            wv=xavier_normal(next(ks), (D_MODEL, NUM_HEADS * D_V)),
            bv=zeros(NUM_HEADS * D_V),
            wo=xavier_normal(next(ks), (NUM_HEADS * D_V, D_MODEL)),
            bo=zeros(D_MODEL),
            g=ones(D_MODEL), be=zeros(D_MODEL),
        )

    def pwff_params():
        return dict(
            w1=xavier_normal(next(ks), (D_MODEL, D_FF)), b1=zeros(D_FF),
            w2=xavier_normal(next(ks), (D_FF, D_MODEL)), b2=zeros(D_MODEL),
            g=ones(D_MODEL), be=zeros(D_MODEL),
        )

    return dict(
        emb_w=xavier_normal(next(ks), (IN_DIM, D_MODEL)),
        emb_b=0.01 * jax.random.normal(next(ks), (1, D_MODEL), dtype=jnp.float32),
        ln_g=ones(D_MODEL), ln_b=zeros(D_MODEL),
        layers=[dict(self=mha_params(), enc=mha_params(), pwff=pwff_params())
                for _ in range(NUM_LAYERS)],
        out_w=xavier_normal(next(ks), (D_MODEL, OUT_DIM)),
        out_b=zeros(OUT_DIM),
    )


def pack_params(p):
    """One-time re-layout: fuse Wq|Wk|Wv, stack layer weights, and pack every
    bias / gamma / beta into a single (VEC_ROWS, VEC_W) vector slab."""

    def pad(v):                                     # (1, d) -> (1, VEC_W)
        return jnp.pad(v, ((0, 0), (0, VEC_W - v.shape[-1])))

    rows = [pad(p['emb_b']), pad(p['ln_g']), pad(p['ln_b']), pad(p['out_b'])]
    att_wqkv, att_wo, f_w1, f_w2 = [], [], [], []
    for lp in p['layers']:
        for blk in (lp['self'], lp['enc']):
            att_wqkv.append(jnp.concatenate([blk['wq'], blk['wk'], blk['wv']],
                                            axis=1))          # (D, 3*H*dk)
            att_wo.append(blk['wo'])                           # (H*dv, D)
            rows += [pad(jnp.concatenate([blk['bq'], blk['bk'], blk['bv']],
                                         axis=1)),
                     pad(blk['bo']), pad(blk['g']), pad(blk['be'])]
        pw = lp['pwff']
        f_w1.append(pw['w1'])
        f_w2.append(pw['w2'])
        rows += [pad(pw['b1']), pad(pw['b2']), pad(pw['g']), pad(pw['be'])]

    return dict(
        emb_w=p['emb_w'],
        att_wqkv=jnp.stack(att_wqkv),     # (2L, D, 3*H*dk)
        att_wo=jnp.stack(att_wo),         # (2L, H*dv, D)
        f_w1=jnp.stack(f_w1),             # (L, D, D_FF)
        f_w2=jnp.stack(f_w2),             # (L, D_FF, D)
        out_w=p['out_w'],
        vec=jnp.concatenate(rows, axis=0),  # (4 + 12L, VEC_W)
    )


# ----------------------------------------------------------------------------
# pure-JAX reference (mirrors the torch forward) for the correctness check
# ----------------------------------------------------------------------------
def ref_forward(params, x, enc_out, mask_self, mask_enc):
    def ln(t, g, b):
        mu = t.mean(-1, keepdims=True)
        var = ((t - mu) ** 2).mean(-1, keepdims=True)
        return (t - mu) / jnp.sqrt(var + LN_EPS) * g + b

    def mha(q_in, k_in, v_in, mask, p):
        B, nq, _ = q_in.shape
        nk = k_in.shape[1]
        q = (q_in @ p['wq'] + p['bq']).reshape(B, nq, NUM_HEADS, D_K).transpose(0, 2, 1, 3)
        k = (k_in @ p['wk'] + p['bk']).reshape(B, nk, NUM_HEADS, D_K).transpose(0, 2, 3, 1)
        v = (v_in @ p['wv'] + p['bv']).reshape(B, nk, NUM_HEADS, D_V).transpose(0, 2, 1, 3)
        att = (q @ k) / math.sqrt(D_K)
        att = jnp.where(mask > 0.5, NEG_INF, att)
        att = jax.nn.softmax(att, -1)
        att = jnp.where(mask > 0.5, 0.0, att)
        o = (att @ v).transpose(0, 2, 1, 3).reshape(B, nq, NUM_HEADS * D_V)
        o = o @ p['wo'] + p['bo']
        return ln(q_in + o, p['g'], p['be'])

    pe = sinusoid_encoding_table(x.shape[1], D_MODEL)
    h = jnp.maximum(x @ params['emb_w'] + params['emb_b'], 0.0)
    h = ln(h, params['ln_g'], params['ln_b']) + pe[None]
    for lp in params['layers']:
        h = mha(h, h, h, mask_self, lp['self'])
        h = mha(h, enc_out, enc_out, mask_enc, lp['enc'])
        p = lp['pwff']
        ff = jnp.maximum(h @ p['w1'] + p['b1'], 0.0) @ p['w2'] + p['b2']
        h = ln(h + ff, p['g'], p['be'])
    out = jnp.tanh(h @ params['out_w'] + params['out_b'])
    return jnp.transpose(out, (1, 0, 2))


# ----------------------------------------------------------------------------
if __name__ == "__main__":
    key = jax.random.PRNGKey(0)
    k_param, k_x, k_enc = jax.random.split(key, 3)

    params = init_params(k_param)
    packed = pack_params(params)

    x = jax.random.normal(k_x, (BATCH, SEQ, IN_DIM), dtype=jnp.float32)
    enc_out = jax.random.normal(k_enc, (BATCH, SEQ_ENC, D_MODEL), dtype=jnp.float32)

    # additive masks (0 = attend, NEG_INF = masked); causal self mask shared
    # across batch & heads, no cross-attention mask.
    causal = jnp.triu(jnp.ones((SEQ, SEQ), jnp.float32), k=1)
    bias_self = causal * NEG_INF                    # (S, S)
    bias_enc = jnp.zeros((SEQ, SEQ_ENC), jnp.float32)

    y = action_decoder_forward(packed, x, enc_out, bias_self, bias_enc)
    y = jax.block_until_ready(y)

    # boolean-style masks for the reference (True/1.0 == masked)
    mask_self = jnp.broadcast_to(causal, (BATCH, NUM_HEADS, SEQ, SEQ))
    mask_enc = jnp.zeros((BATCH, NUM_HEADS, SEQ, SEQ_ENC), jnp.float32)
    y_ref = ref_forward(params, x, enc_out, mask_self, mask_enc)

    assert y.shape == (SEQ, BATCH, OUT_DIM)
    # tolerance set by the EUP approximate reciprocal in the in-kernel softmax
    err = float(jnp.max(jnp.abs(y - y_ref)))
    assert err < 5e-3, f"mismatch vs JAX reference: {err}"

    print("KERNEL_OK")
</pallas_src>

<mosaic_0001>
module attributes {stable_mosaic.version = 11 : i64} {
  func.func @fused_decoder_kernel(%arg0: i32, %arg1: memref<16x8xf32, #tpu.memory_space<vmem>>, %arg2: memref<24x32xf32, #tpu.memory_space<vmem>>, %arg3: memref<16x16xf32, #tpu.memory_space<vmem>>, %arg4: memref<16x24xf32, #tpu.memory_space<vmem>>, %arg5: memref<16x32xf32, #tpu.memory_space<vmem>>, %arg6: memref<8x32xf32, #tpu.memory_space<vmem>>, %arg7: memref<4x32x96xf32, #tpu.memory_space<vmem>>, %arg8: memref<4x32x32xf32, #tpu.memory_space<vmem>>, %arg9: memref<2x32x64xf32, #tpu.memory_space<vmem>>, %arg10: memref<2x64x32xf32, #tpu.memory_space<vmem>>, %arg11: memref<32x8xf32, #tpu.memory_space<vmem>>, %arg12: memref<28x96xf32, #tpu.memory_space<vmem>>, %arg13: memref<16x8xf32, #tpu.memory_space<vmem>>) attributes {dimension_semantics = [#tpu.dimension_semantics<arbitrary>], iteration_bounds = array<i64: 1>, scalar_prefetch = 0 : i64, scratch_operands = 0 : i64, tpu.core_type = #tpu.core_type<tc>, window_params = [{pipeline_mode = #tpu.pipeline_mode<synchronous>, transform_indices = @transform_0, window_bounds = array<i64: 16, 8>}, {pipeline_mode = #tpu.pipeline_mode<synchronous>, transform_indices = @transform_1, window_bounds = array<i64: 24, 32>}, {pipeline_mode = #tpu.pipeline_mode<synchronous>, transform_indices = @transform_2, window_bounds = array<i64: 16, 16>}, {pipeline_mode = #tpu.pipeline_mode<synchronous>, transform_indices = @transform_3, window_bounds = array<i64: 16, 24>}, {pipeline_mode = #tpu.pipeline_mode<synchronous>, transform_indices = @transform_4, window_bounds = array<i64: 16, 32>}, {pipeline_mode = #tpu.pipeline_mode<synchronous>, transform_indices = @transform_5, window_bounds = array<i64: 8, 32>}, {pipeline_mode = #tpu.pipeline_mode<synchronous>, transform_indices = @transform_6, window_bounds = array<i64: 4, 32, 96>}, {pipeline_mode = #tpu.pipeline_mode<synchronous>, transform_indices = @transform_7, window_bounds = array<i64: 4, 32, 32>}, {pipeline_mode = #tpu.pipeline_mode<synchronous>, transform_indices = @transform_8, window_bounds = array<i64: 2, 32, 64>}, {pipeline_mode = #tpu.pipeline_mode<synchronous>, transform_indices = @transform_9, window_bounds = array<i64: 2, 64, 32>}, {pipeline_mode = #tpu.pipeline_mode<synchronous>, transform_indices = @transform_10, window_bounds = array<i64: 32, 8>}, {pipeline_mode = #tpu.pipeline_mode<synchronous>, transform_indices = @transform_11, window_bounds = array<i64: 28, 96>}, {pipeline_mode = #tpu.pipeline_mode<synchronous>, transform_indices = @transform_12, window_bounds = array<i64: 16, 8>}]} {
    %c0 = arith.constant 0 : index
    %c0_0 = arith.constant 0 : index
    %0 = vector.load %arg1[%c0, %c0_0] : memref<16x8xf32, #tpu.memory_space<vmem>>, vector<16x8xf32>
    %c0_1 = arith.constant 0 : index
    %c0_2 = arith.constant 0 : index
    %1 = vector.load %arg6[%c0_1, %c0_2] : memref<8x32xf32, #tpu.memory_space<vmem>>, vector<8x32xf32>
    %cst = arith.constant dense<0.000000e+00> : vector<16x32xf32>
    %2 = tpu.matmul %0, %1, %cst {dimension_numbers = #tpu.dot_dimension_numbers<[1], [0], [0], [1], [0, 0, 1, 1], [], []>} : vector<16x8xf32>, vector<8x32xf32>, vector<16x32xf32> -> vector<16x32xf32>
    %c0_3 = arith.constant 0 : index
    %c0_4 = arith.constant 0 : index
    %3 = vector.load %arg12[%c0_3, %c0_4] : memref<28x96xf32, #tpu.memory_space<vmem>>, vector<1x32xf32>
    %4 = vector.broadcast %3 : vector<1x32xf32> to vector<16x32xf32>
    %5 = arith.addf %2, %4 : vector<16x32xf32>
    %cst_5 = arith.constant 0.000000e+00 : f32
    %6 = vector.broadcast %cst_5 : f32 to vector<16x32xf32>
    %7 = arith.maximumf %5, %6 : vector<16x32xf32>
    %cst_6 = arith.constant dense<0.000000e+00> : vector<16xf32>
    %8 = vector.multi_reduction <add>, %7, %cst_6 [1] : vector<16x32xf32> to vector<16xf32>
    %9 = vector.shape_cast %8 : vector<16xf32> to vector<16x1xf32>
    %cst_7 = arith.constant 3.200000e+01 : f32
    %10 = vector.broadcast %cst_7 : f32 to vector<16x1xf32>
    %11 = arith.divf %9, %10 : vector<16x1xf32>
    %12 = vector.broadcast %11 : vector<16x1xf32> to vector<16x32xf32>
    %13 = arith.subf %7, %12 : vector<16x32xf32>
    %14 = arith.mulf %13, %13 : vector<16x32xf32>
    %cst_8 = arith.constant dense<0.000000e+00> : vector<16xf32>
    %15 = vector.multi_reduction <add>, %14, %cst_8 [1] : vector<16x32xf32> to vector<16xf32>
    %16 = vector.shape_cast %15 : vector<16xf32> to vector<16x1xf32>
    %cst_9 = arith.constant 3.200000e+01 : f32
    %17 = vector.broadcast %cst_9 : f32 to vector<16x1xf32>
    %18 = arith.divf %16, %17 : vector<16x1xf32>
    %19 = vector.broadcast %11 : vector<16x1xf32> to vector<16x32xf32>
    %20 = arith.subf %7, %19 : vector<16x32xf32>
    %cst_10 = arith.constant 9.99999974E-6 : f32
    %21 = vector.broadcast %cst_10 : f32 to vector<16x1xf32>
    %22 = arith.addf %18, %21 : vector<16x1xf32>
    %23 = math.rsqrt %22 : vector<16x1xf32>
    %24 = vector.broadcast %23 : vector<16x1xf32> to vector<16x32xf32>
    %25 = arith.mulf %20, %24 : vector<16x32xf32>
    %c1 = arith.constant 1 : index
    %c0_11 = arith.constant 0 : index
    %26 = vector.load %arg12[%c1, %c0_11] : memref<28x96xf32, #tpu.memory_space<vmem>>, vector<1x32xf32>
    %27 = vector.broadcast %26 : vector<1x32xf32> to vector<16x32xf32>
    %28 = arith.mulf %25, %27 : vector<16x32xf32>
    %c2 = arith.constant 2 : index
    %c0_12 = arith.constant 0 : index
    %29 = vector.load %arg12[%c2, %c0_12] : memref<28x96xf32, #tpu.memory_space<vmem>>, vector<1x32xf32>
    %30 = vector.broadcast %29 : vector<1x32xf32> to vector<16x32xf32>
    %31 = arith.addf %28, %30 : vector<16x32xf32>
    %c0_13 = arith.constant 0 : index
    %c0_14 = arith.constant 0 : index
    %32 = vector.load %arg5[%c0_13, %c0_14] : memref<16x32xf32, #tpu.memory_space<vmem>>, vector<16x32xf32>
    %33 = arith.addf %31, %32 : vector<16x32xf32>
    %c0_15 = arith.constant 0 : index
    %c0_16 = arith.constant 0 : index
    %34 = vector.load %arg2[%c0_15, %c0_16] : memref<24x32xf32, #tpu.memory_space<vmem>>, vector<24x32xf32>
    %c0_17 = arith.constant 0 : index
    %c0_18 = arith.constant 0 : index
    %35 = vector.load %arg3[%c0_17, %c0_18] : memref<16x16xf32, #tpu.memory_space<vmem>>, vector<16x16xf32>
    %c0_19 = arith.constant 0 : index
    %c0_20 = arith.constant 0 : index
    %36 = vector.load %arg4[%c0_19, %c0_20] : memref<16x24xf32, #tpu.memory_space<vmem>>, vector<16x24xf32>
    %c0_21 = arith.constant 0 : index
    %c0_22 = arith.constant 0 : index
    %c0_23 = arith.constant 0 : index
    %37 = vector.load %arg7[%c0_21, %c0_22, %c0_23] : memref<4x32x96xf32, #tpu.memory_space<vmem>>, vector<1x32x96xf32>
    %38 = vector.shape_cast %37 : vector<1x32x96xf32> to vector<32x96xf32>
    %cst_24 = arith.constant dense<0.000000e+00> : vector<16x96xf32>
    %39 = tpu.matmul %33, %38, %cst_24 {dimension_numbers = #tpu.dot_dimension_numbers<[1], [0], [0], [1], [0, 0, 1, 1], [], []>} : vector<16x32xf32>, vector<32x96xf32>, vector<16x96xf32> -> vector<16x96xf32>
    %c4 = arith.constant 4 : index
    %c0_25 = arith.constant 0 : index
    %40 = vector.load %arg12[%c4, %c0_25] : memref<28x96xf32, #tpu.memory_space<vmem>>, vector<1x96xf32>
    %41 = vector.broadcast %40 : vector<1x96xf32> to vector<16x96xf32>
    %42 = arith.addf %39, %41 : vector<16x96xf32>
    %43 = vector.extract_strided_slice %42 {offsets = [0, 0], sizes = [16, 32], strides = [1, 1]} : vector<16x96xf32> to vector<16x32xf32>
    %44 = vector.extract_strided_slice %42 {offsets = [0, 32], sizes = [16, 32], strides = [1, 1]} : vector<16x96xf32> to vector<16x32xf32>
    %45 = vector.extract_strided_slice %42 {offsets = [0, 64], sizes = [16, 32], strides = [1, 1]} : vector<16x96xf32> to vector<16x32xf32>
    %46 = vector.extract_strided_slice %43 {offsets = [0, 0], sizes = [16, 8], strides = [1, 1]} : vector<16x32xf32> to vector<16x8xf32>
    %47 = vector.extract_strided_slice %44 {offsets = [0, 0], sizes = [16, 8], strides = [1, 1]} : vector<16x32xf32> to vector<16x8xf32>
    %48 = vector.extract_strided_slice %45 {offsets = [0, 0], sizes = [16, 8], strides = [1, 1]} : vector<16x32xf32> to vector<16x8xf32>
    %cst_26 = arith.constant dense<0.000000e+00> : vector<16x16xf32>
    %49 = tpu.matmul %46, %47, %cst_26 {dimension_numbers = #tpu.dot_dimension_numbers<[1], [1], [0], [0], [0, 0, 1, 0], [], []>} : vector<16x8xf32>, vector<16x8xf32>, vector<16x16xf32> -> vector<16x16xf32>
    %cst_27 = arith.constant 0.353553385 : f32
    %50 = vector.broadcast %cst_27 : f32 to vector<16x16xf32>
    %51 = arith.mulf %49, %50 : vector<16x16xf32>
    %52 = arith.addf %51, %35 : vector<16x16xf32>
    %cst_28 = arith.constant dense<0xFF800000> : vector<16xf32>
    %53 = vector.multi_reduction <maximumf>, %52, %cst_28 [1] : vector<16x16xf32> to vector<16xf32>
    %54 = vector.shape_cast %53 : vector<16xf32> to vector<16x1xf32>
    %55 = vector.broadcast %54 : vector<16x1xf32> to vector<16x16xf32>
    %56 = arith.subf %52, %55 : vector<16x16xf32>
    %57 = math.exp %56 : vector<16x16xf32>
    %cst_29 = arith.constant dense<0.000000e+00> : vector<16xf32>
    %58 = vector.multi_reduction <add>, %57, %cst_29 [1] : vector<16x16xf32> to vector<16xf32>
    %59 = vector.shape_cast %58 : vector<16xf32> to vector<16x1xf32>
    %60 = tpu.reciprocal %59 {approx = true} : vector<16x1xf32> -> vector<16x1xf32>
    %61 = vector.broadcast %60 : vector<16x1xf32> to vector<16x16xf32>
    %62 = arith.mulf %57, %61 : vector<16x16xf32>
    %cst_30 = arith.constant dense<0.000000e+00> : vector<16x8xf32>
    %63 = tpu.matmul %62, %48, %cst_30 {dimension_numbers = #tpu.dot_dimension_numbers<[1], [0], [0], [1], [0, 0, 1, 1], [], []>} : vector<16x16xf32>, vector<16x8xf32>, vector<16x8xf32> -> vector<16x8xf32>
    %64 = vector.extract_strided_slice %43 {offsets = [0, 8], sizes = [16, 8], strides = [1, 1]} : vector<16x32xf32> to vector<16x8xf32>
    %65 = vector.extract_strided_slice %44 {offsets = [0, 8], sizes = [16, 8], strides = [1, 1]} : vector<16x32xf32> to vector<16x8xf32>
    %66 = vector.extract_strided_slice %45 {offsets = [0, 8], sizes = [16, 8], strides = [1, 1]} : vector<16x32xf32> to vector<16x8xf32>
    %cst_31 = arith.constant dense<0.000000e+00> : vector<16x16xf32>
    %67 = tpu.matmul %64, %65, %cst_31 {dimension_numbers = #tpu.dot_dimension_numbers<[1], [1], [0], [0], [0, 0, 1, 0], [], []>} : vector<16x8xf32>, vector<16x8xf32>, vector<16x16xf32> -> vector<16x16xf32>
    %cst_32 = arith.constant 0.353553385 : f32
    %68 = vector.broadcast %cst_32 : f32 to vector<16x16xf32>
    %69 = arith.mulf %67, %68 : vector<16x16xf32>
    %70 = arith.addf %69, %35 : vector<16x16xf32>
    %cst_33 = arith.constant dense<0xFF800000> : vector<16xf32>
    %71 = vector.multi_reduction <maximumf>, %70, %cst_33 [1] : vector<16x16xf32> to vector<16xf32>
    %72 = vector.shape_cast %71 : vector<16xf32> to vector<16x1xf32>
    %73 = vector.broadcast %72 : vector<16x1xf32> to vector<16x16xf32>
    %74 = arith.subf %70, %73 : vector<16x16xf32>
    %75 = math.exp %74 : vector<16x16xf32>
    %cst_34 = arith.constant dense<0.000000e+00> : vector<16xf32>
    %76 = vector.multi_reduction <add>, %75, %cst_34 [1] : vector<16x16xf32> to vector<16xf32>
    %77 = vector.shape_cast %76 : vector<16xf32> to vector<16x1xf32>
    %78 = tpu.reciprocal %77 {approx = true} : vector<16x1xf32> -> vector<16x1xf32>
    %79 = vector.broadcast %78 : vector<16x1xf32> to vector<16x16xf32>
    %80 = arith.mulf %75, %79 : vector<16x16xf32>
    %cst_35 = arith.constant dense<0.000000e+00> : vector<16x8xf32>
    %81 = tpu.matmul %80, %66, %cst_35 {dimension_numbers = #tpu.dot_dimension_numbers<[1], [0], [0], [1], [0, 0, 1, 1], [], []>} : vector<16x16xf32>, vector<16x8xf32>, vector<16x8xf32> -> vector<16x8xf32>
    %82 = vector.extract_strided_slice %43 {offsets = [0, 16], sizes = [16, 8], strides = [1, 1]} : vector<16x32xf32> to vector<16x8xf32>
    %83 = vector.extract_strided_slice %44 {offsets = [0, 16], sizes = [16, 8], strides = [1, 1]} : vector<16x32xf32> to vector<16x8xf32>
    %84 = vector.extract_strided_slice %45 {offsets = [0, 16], sizes = [16, 8], strides = [1, 1]} : vector<16x32xf32> to vector<16x8xf32>
    %cst_36 = arith.constant dense<0.000000e+00> : vector<16x16xf32>
    %85 = tpu.matmul %82, %83, %cst_36 {dimension_numbers = #tpu.dot_dimension_numbers<[1], [1], [0], [0], [0, 0, 1, 0], [], []>} : vector<16x8xf32>, vector<16x8xf32>, vector<16x16xf32> -> vector<16x16xf32>
    %cst_37 = arith.constant 0.353553385 : f32
    %86 = vector.broadcast %cst_37 : f32 to vector<16x16xf32>
    %87 = arith.mulf %85, %86 : vector<16x16xf32>
    %88 = arith.addf %87, %35 : vector<16x16xf32>
    %cst_38 = arith.constant dense<0xFF800000> : vector<16xf32>
    %89 = vector.multi_reduction <maximumf>, %88, %cst_38 [1] : vector<16x16xf32> to vector<16xf32>
    %90 = vector.shape_cast %89 : vector<16xf32> to vector<16x1xf32>
    %91 = vector.broadcast %90 : vector<16x1xf32> to vector<16x16xf32>
    %92 = arith.subf %88, %91 : vector<16x16xf32>
    %93 = math.exp %92 : vector<16x16xf32>
    %cst_39 = arith.constant dense<0.000000e+00> : vector<16xf32>
    %94 = vector.multi_reduction <add>, %93, %cst_39 [1] : vector<16x16xf32> to vector<16xf32>
    %95 = vector.shape_cast %94 : vector<16xf32> to vector<16x1xf32>
    %96 = tpu.reciprocal %95 {approx = true} : vector<16x1xf32> -> vector<16x1xf32>
    %97 = vector.broadcast %96 : vector<16x1xf32> to vector<16x16xf32>
    %98 = arith.mulf %93, %97 : vector<16x16xf32>
    %cst_40 = arith.constant dense<0.000000e+00> : vector<16x8xf32>
    %99 = tpu.matmul %98, %84, %cst_40 {dimension_numbers = #tpu.dot_dimension_numbers<[1], [0], [0], [1], [0, 0, 1, 1], [], []>} : vector<16x16xf32>, vector<16x8xf32>, vector<16x8xf32> -> vector<16x8xf32>
    %100 = vector.extract_strided_slice %43 {offsets = [0, 24], sizes = [16, 8], strides = [1, 1]} : vector<16x32xf32> to vector<16x8xf32>
    %101 = vector.extract_strided_slice %44 {offsets = [0, 24], sizes = [16, 8], strides = [1, 1]} : vector<16x32xf32> to vector<16x8xf32>
    %102 = vector.extract_strided_slice %45 {offsets = [0, 24], sizes = [16, 8], strides = [1, 1]} : vector<16x32xf32> to vector<16x8xf32>
    %cst_41 = arith.constant dense<0.000000e+00> : vector<16x16xf32>
    %103 = tpu.matmul %100, %101, %cst_41 {dimension_numbers = #tpu.dot_dimension_numbers<[1], [1], [0], [0], [0, 0, 1, 0], [], []>} : vector<16x8xf32>, vector<16x8xf32>, vector<16x16xf32> -> vector<16x16xf32>
    %cst_42 = arith.constant 0.353553385 : f32
    %104 = vector.broadcast %cst_42 : f32 to vector<16x16xf32>
    %105 = arith.mulf %103, %104 : vector<16x16xf32>
    %106 = arith.addf %105, %35 : vector<16x16xf32>
    %cst_43 = arith.constant dense<0xFF800000> : vector<16xf32>
    %107 = vector.multi_reduction <maximumf>, %106, %cst_43 [1] : vector<16x16xf32> to vector<16xf32>
    %108 = vector.shape_cast %107 : vector<16xf32> to vector<16x1xf32>
    %109 = vector.broadcast %108 : vector<16x1xf32> to vector<16x16xf32>
    %110 = arith.subf %106, %109 : vector<16x16xf32>
    %111 = math.exp %110 : vector<16x16xf32>
    %cst_44 = arith.constant dense<0.000000e+00> : vector<16xf32>
    %112 = vector.multi_reduction <add>, %111, %cst_44 [1] : vector<16x16xf32> to vector<16xf32>
    %113 = vector.shape_cast %112 : vector<16xf32> to vector<16x1xf32>
    %114 = tpu.reciprocal %113 {approx = true} : vector<16x1xf32> -> vector<16x1xf32>
    %115 = vector.broadcast %114 : vector<16x1xf32> to vector<16x16xf32>
    %116 = arith.mulf %111, %115 : vector<16x16xf32>
    %cst_45 = arith.constant dense<0.000000e+00> : vector<16x8xf32>
    %117 = tpu.matmul %116, %102, %cst_45 {dimension_numbers = #tpu.dot_dimension_numbers<[1], [0], [0], [1], [0, 0, 1, 1], [], []>} : vector<16x16xf32>, vector<16x8xf32>, vector<16x8xf32> -> vector<16x8xf32>
    %118 = tpu.concatenate %63, %81, %99, %117 in 1 : vector<16x8xf32>, vector<16x8xf32>, vector<16x8xf32>, vector<16x8xf32> -> vector<16x32xf32>
    %c0_46 = arith.constant 0 : index
    %c0_47 = arith.constant 0 : index
    %c0_48 = arith.constant 0 : index
    %119 = vector.load %arg8[%c0_46, %c0_47, %c0_48] : memref<4x32x32xf32, #tpu.memory_space<vmem>>, vector<1x32x32xf32>
    %120 = vector.shape_cast %119 : vector<1x32x32xf32> to vector<32x32xf32>
    %cst_49 = arith.constant dense<0.000000e+00> : vector<16x32xf32>
    %121 = tpu.matmul %118, %120, %cst_49 {dimension_numbers = #tpu.dot_dimension_numbers<[1], [0], [0], [1], [0, 0, 1, 1], [], []>} : vector<16x32xf32>, vector<32x32xf32>, vector<16x32xf32> -> vector<16x32xf32>
    %c5 = arith.constant 5 : index
    %c0_50 = arith.constant 0 : index
    %122 = vector.load %arg12[%c5, %c0_50] : memref<28x96xf32, #tpu.memory_space<vmem>>, vector<1x32xf32>
    %123 = vector.broadcast %122 : vector<1x32xf32> to vector<16x32xf32>
    %124 = arith.addf %121, %123 : vector<16x32xf32>
    %125 = arith.addf %33, %124 : vector<16x32xf32>
    %cst_51 = arith.constant dense<0.000000e+00> : vector<16xf32>
    %126 = vector.multi_reduction <add>, %125, %cst_51 [1] : vector<16x32xf32> to vector<16xf32>
    %127 = vector.shape_cast %126 : vector<16xf32> to vector<16x1xf32>
    %cst_52 = arith.constant 3.200000e+01 : f32
    %128 = vector.broadcast %cst_52 : f32 to vector<16x1xf32>
    %129 = arith.divf %127, %128 : vector<16x1xf32>
    %130 = vector.broadcast %129 : vector<16x1xf32> to vector<16x32xf32>
    %131 = arith.subf %125, %130 : vector<16x32xf32>
    %132 = arith.mulf %131, %131 : vector<16x32xf32>
    %cst_53 = arith.constant dense<0.000000e+00> : vector<16xf32>
    %133 = vector.multi_reduction <add>, %132, %cst_53 [1] : vector<16x32xf32> to vector<16xf32>
    %134 = vector.shape_cast %133 : vector<16xf32> to vector<16x1xf32>
    %cst_54 = arith.constant 3.200000e+01 : f32
    %135 = vector.broadcast %cst_54 : f32 to vector<16x1xf32>
    %136 = arith.divf %134, %135 : vector<16x1xf32>
    %137 = vector.broadcast %129 : vector<16x1xf32> to vector<16x32xf32>
    %138 = arith.subf %125, %137 : vector<16x32xf32>
    %cst_55 = arith.constant 9.99999974E-6 : f32
    %139 = vector.broadcast %cst_55 : f32 to vector<16x1xf32>
    %140 = arith.addf %136, %139 : vector<16x1xf32>
    %141 = math.rsqrt %140 : vector<16x1xf32>
    %142 = vector.broadcast %141 : vector<16x1xf32> to vector<16x32xf32>
    %143 = arith.mulf %138, %142 : vector<16x32xf32>
    %c6 = arith.constant 6 : index
    %c0_56 = arith.constant 0 : index
    %144 = vector.load %arg12[%c6, %c0_56] : memref<28x96xf32, #tpu.memory_space<vmem>>, vector<1x32xf32>
    %145 = vector.broadcast %144 : vector<1x32xf32> to vector<16x32xf32>
    %146 = arith.mulf %143, %145 : vector<16x32xf32>
    %c7 = arith.constant 7 : index
    %c0_57 = arith.constant 0 : index
    %147 = vector.load %arg12[%c7, %c0_57] : memref<28x96xf32, #tpu.memory_space<vmem>>, vector<1x32xf32>
    %148 = vector.broadcast %147 : vector<1x32xf32> to vector<16x32xf32>
    %149 = arith.addf %146, %148 : vector<16x32xf32>
    %c1_58 = arith.constant 1 : index
    %c0_59 = arith.constant 0 : index
    %c0_60 = arith.constant 0 : index
    %150 = vector.load %arg7[%c1_58, %c0_59, %c0_60] : memref<4x32x96xf32, #tpu.memory_space<vmem>>, vector<1x32x96xf32>
    %151 = vector.shape_cast %150 : vector<1x32x96xf32> to vector<32x96xf32>
    %c8 = arith.constant 8 : index
    %c0_61 = arith.constant 0 : index
    %152 = vector.load %arg12[%c8, %c0_61] : memref<28x96xf32, #tpu.memory_space<vmem>>, vector<1x96xf32>
    %153 = vector.extract_strided_slice %151 {offsets = [0, 0], sizes = [32, 32], strides = [1, 1]} : vector<32x96xf32> to vector<32x32xf32>
    %cst_62 = arith.constant dense<0.000000e+00> : vector<16x32xf32>
    %154 = tpu.matmul %149, %153, %cst_62 {dimension_numbers = #tpu.dot_dimension_numbers<[1], [0], [0], [1], [0, 0, 1, 1], [], []>} : vector<16x32xf32>, vector<32x32xf32>, vector<16x32xf32> -> vector<16x32xf32>
    %155 = vector.extract_strided_slice %152 {offsets = [0, 0], sizes = [1, 32], strides = [1, 1]} : vector<1x96xf32> to vector<1x32xf32>
    %156 = vector.broadcast %155 : vector<1x32xf32> to vector<16x32xf32>
    %157 = arith.addf %154, %156 : vector<16x32xf32>
    %158 = vector.extract_strided_slice %151 {offsets = [0, 32], sizes = [32, 64], strides = [1, 1]} : vector<32x96xf32> to vector<32x64xf32>
    %cst_63 = arith.constant dense<0.000000e+00> : vector<24x64xf32>
    %159 = tpu.matmul %34, %158, %cst_63 {dimension_numbers = #tpu.dot_dimension_numbers<[1], [0], [0], [1], [0, 0, 1, 1], [], []>} : vector<24x32xf32>, vector<32x64xf32>, vector<24x64xf32> -> vector<24x64xf32>
    %160 = vector.extract_strided_slice %152 {offsets = [0, 32], sizes = [1, 64], strides = [1, 1]} : vector<1x96xf32> to vector<1x64xf32>
    %161 = vector.broadcast %160 : vector<1x64xf32> to vector<24x64xf32>
    %162 = arith.addf %159, %161 : vector<24x64xf32>
    %163 = vector.extract_strided_slice %162 {offsets = [0, 0], sizes = [24, 32], strides = [1, 1]} : vector<24x64xf32> to vector<24x32xf32>
    %164 = vector.extract_strided_slice %162 {offsets = [0, 32], sizes = [24, 32], strides = [1, 1]} : vector<24x64xf32> to vector<24x32xf32>
    %165 = vector.extract_strided_slice %157 {offsets = [0, 0], sizes = [16, 8], strides = [1, 1]} : vector<16x32xf32> to vector<16x8xf32>
    %166 = vector.extract_strided_slice %163 {offsets = [0, 0], sizes = [24, 8], strides = [1, 1]} : vector<24x32xf32> to vector<24x8xf32>
    %167 = vector.extract_strided_slice %164 {offsets = [0, 0], sizes = [24, 8], strides = [1, 1]} : vector<24x32xf32> to vector<24x8xf32>
    %cst_64 = arith.constant dense<0.000000e+00> : vector<16x24xf32>
    %168 = tpu.matmul %165, %166, %cst_64 {dimension_numbers = #tpu.dot_dimension_numbers<[1], [1], [0], [0], [0, 0, 1, 0], [], []>} : vector<16x8xf32>, vector<24x8xf32>, vector<16x24xf32> -> vector<16x24xf32>
    %cst_65 = arith.constant 0.353553385 : f32
    %169 = vector.broadcast %cst_65 : f32 to vector<16x24xf32>
    %170 = arith.mulf %168, %169 : vector<16x24xf32>
    %171 = arith.addf %170, %36 : vector<16x24xf32>
    %cst_66 = arith.constant dense<0xFF800000> : vector<16xf32>
    %172 = vector.multi_reduction <maximumf>, %171, %cst_66 [1] : vector<16x24xf32> to vector<16xf32>
    %173 = vector.shape_cast %172 : vector<16xf32> to vector<16x1xf32>
    %174 = vector.broadcast %173 : vector<16x1xf32> to vector<16x24xf32>
    %175 = arith.subf %171, %174 : vector<16x24xf32>
    %176 = math.exp %175 : vector<16x24xf32>
    %cst_67 = arith.constant dense<0.000000e+00> : vector<16xf32>
    %177 = vector.multi_reduction <add>, %176, %cst_67 [1] : vector<16x24xf32> to vector<16xf32>
    %178 = vector.shape_cast %177 : vector<16xf32> to vector<16x1xf32>
    %179 = tpu.reciprocal %178 {approx = true} : vector<16x1xf32> -> vector<16x1xf32>
    %180 = vector.broadcast %179 : vector<16x1xf32> to vector<16x24xf32>
    %181 = arith.mulf %176, %180 : vector<16x24xf32>
    %cst_68 = arith.constant dense<0.000000e+00> : vector<16x8xf32>
    %182 = tpu.matmul %181, %167, %cst_68 {dimension_numbers = #tpu.dot_dimension_numbers<[1], [0], [0], [1], [0, 0, 1, 1], [], []>} : vector<16x24xf32>, vector<24x8xf32>, vector<16x8xf32> -> vector<16x8xf32>
    %183 = vector.extract_strided_slice %157 {offsets = [0, 8], sizes = [16, 8], strides = [1, 1]} : vector<16x32xf32> to vector<16x8xf32>
    %184 = vector.extract_strided_slice %163 {offsets = [0, 8], sizes = [24, 8], strides = [1, 1]} : vector<24x32xf32> to vector<24x8xf32>
    %185 = vector.extract_strided_slice %164 {offsets = [0, 8], sizes = [24, 8], strides = [1, 1]} : vector<24x32xf32> to vector<24x8xf32>
    %cst_69 = arith.constant dense<0.000000e+00> : vector<16x24xf32>
    %186 = tpu.matmul %183, %184, %cst_69 {dimension_numbers = #tpu.dot_dimension_numbers<[1], [1], [0], [0], [0, 0, 1, 0], [], []>} : vector<16x8xf32>, vector<24x8xf32>, vector<16x24xf32> -> vector<16x24xf32>
    %cst_70 = arith.constant 0.353553385 : f32
    %187 = vector.broadcast %cst_70 : f32 to vector<16x24xf32>
    %188 = arith.mulf %186, %187 : vector<16x24xf32>
    %189 = arith.addf %188, %36 : vector<16x24xf32>
    %cst_71 = arith.constant dense<0xFF800000> : vector<16xf32>
    %190 = vector.multi_reduction <maximumf>, %189, %cst_71 [1] : vector<16x24xf32> to vector<16xf32>
    %191 = vector.shape_cast %190 : vector<16xf32> to vector<16x1xf32>
    %192 = vector.broadcast %191 : vector<16x1xf32> to vector<16x24xf32>
    %193 = arith.subf %189, %192 : vector<16x24xf32>
    %194 = math.exp %193 : vector<16x24xf32>
    %cst_72 = arith.constant dense<0.000000e+00> : vector<16xf32>
    %195 = vector.multi_reduction <add>, %194, %cst_72 [1] : vector<16x24xf32> to vector<16xf32>
    %196 = vector.shape_cast %195 : vector<16xf32> to vector<16x1xf32>
    %197 = tpu.reciprocal %196 {approx = true} : vector<16x1xf32> -> vector<16x1xf32>
    %198 = vector.broadcast %197 : vector<16x1xf32> to vector<16x24xf32>
    %199 = arith.mulf %194, %198 : vector<16x24xf32>
    %cst_73 = arith.constant dense<0.000000e+00> : vector<16x8xf32>
    %200 = tpu.matmul %199, %185, %cst_73 {dimension_numbers = #tpu.dot_dimension_numbers<[1], [0], [0], [1], [0, 0, 1, 1], [], []>} : vector<16x24xf32>, vector<24x8xf32>, vector<16x8xf32> -> vector<16x8xf32>
    %201 = vector.extract_strided_slice %157 {offsets = [0, 16], sizes = [16, 8], strides = [1, 1]} : vector<16x32xf32> to vector<16x8xf32>
    %202 = vector.extract_strided_slice %163 {offsets = [0, 16], sizes = [24, 8], strides = [1, 1]} : vector<24x32xf32> to vector<24x8xf32>
    %203 = vector.extract_strided_slice %164 {offsets = [0, 16], sizes = [24, 8], strides = [1, 1]} : vector<24x32xf32> to vector<24x8xf32>
    %cst_74 = arith.constant dense<0.000000e+00> : vector<16x24xf32>
    %204 = tpu.matmul %201, %202, %cst_74 {dimension_numbers = #tpu.dot_dimension_numbers<[1], [1], [0], [0], [0, 0, 1, 0], [], []>} : vector<16x8xf32>, vector<24x8xf32>, vector<16x24xf32> -> vector<16x24xf32>
    %cst_75 = arith.constant 0.353553385 : f32
    %205 = vector.broadcast %cst_75 : f32 to vector<16x24xf32>
    %206 = arith.mulf %204, %205 : vector<16x24xf32>
    %207 = arith.addf %206, %36 : vector<16x24xf32>
    %cst_76 = arith.constant dense<0xFF800000> : vector<16xf32>
    %208 = vector.multi_reduction <maximumf>, %207, %cst_76 [1] : vector<16x24xf32> to vector<16xf32>
    %209 = vector.shape_cast %208 : vector<16xf32> to vector<16x1xf32>
    %210 = vector.broadcast %209 : vector<16x1xf32> to vector<16x24xf32>
    %211 = arith.subf %207, %210 : vector<16x24xf32>
    %212 = math.exp %211 : vector<16x24xf32>
    %cst_77 = arith.constant dense<0.000000e+00> : vector<16xf32>
    %213 = vector.multi_reduction <add>, %212, %cst_77 [1] : vector<16x24xf32> to vector<16xf32>
    %214 = vector.shape_cast %213 : vector<16xf32> to vector<16x1xf32>
    %215 = tpu.reciprocal %214 {approx = true} : vector<16x1xf32> -> vector<16x1xf32>
    %216 = vector.broadcast %215 : vector<16x1xf32> to vector<16x24xf32>
    %217 = arith.mulf %212, %216 : vector<16x24xf32>
    %cst_78 = arith.constant dense<0.000000e+00> : vector<16x8xf32>
    %218 = tpu.matmul %217, %203, %cst_78 {dimension_numbers = #tpu.dot_dimension_numbers<[1], [0], [0], [1], [0, 0, 1, 1], [], []>} : vector<16x24xf32>, vector<24x8xf32>, vector<16x8xf32> -> vector<16x8xf32>
    %219 = vector.extract_strided_slice %157 {offsets = [0, 24], sizes = [16, 8], strides = [1, 1]} : vector<16x32xf32> to vector<16x8xf32>
    %220 = vector.extract_strided_slice %163 {offsets = [0, 24], sizes = [24, 8], strides = [1, 1]} : vector<24x32xf32> to vector<24x8xf32>
    %221 = vector.extract_strided_slice %164 {offsets = [0, 24], sizes = [24, 8], strides = [1, 1]} : vector<24x32xf32> to vector<24x8xf32>
    %cst_79 = arith.constant dense<0.000000e+00> : vector<16x24xf32>
    %222 = tpu.matmul %219, %220, %cst_79 {dimension_numbers = #tpu.dot_dimension_numbers<[1], [1], [0], [0], [0, 0, 1, 0], [], []>} : vector<16x8xf32>, vector<24x8xf32>, vector<16x24xf32> -> vector<16x24xf32>
    %cst_80 = arith.constant 0.353553385 : f32
    %223 = vector.broadcast %cst_80 : f32 to vector<16x24xf32>
    %224 = arith.mulf %222, %223 : vector<16x24xf32>
    %225 = arith.addf %224, %36 : vector<16x24xf32>
    %cst_81 = arith.constant dense<0xFF800000> : vector<16xf32>
    %226 = vector.multi_reduction <maximumf>, %225, %cst_81 [1] : vector<16x24xf32> to vector<16xf32>
    %227 = vector.shape_cast %226 : vector<16xf32> to vector<16x1xf32>
    %228 = vector.broadcast %227 : vector<16x1xf32> to vector<16x24xf32>
    %229 = arith.subf %225, %228 : vector<16x24xf32>
    %230 = math.exp %229 : vector<16x24xf32>
    %cst_82 = arith.constant dense<0.000000e+00> : vector<16xf32>
    %231 = vector.multi_reduction <add>, %230, %cst_82 [1] : vector<16x24xf32> to vector<16xf32>
    %232 = vector.shape_cast %231 : vector<16xf32> to vector<16x1xf32>
    %233 = tpu.reciprocal %232 {approx = true} : vector<16x1xf32> -> vector<16x1xf32>
    %234 = vector.broadcast %233 : vector<16x1xf32> to vector<16x24xf32>
    %235 = arith.mulf %230, %234 : vector<16x24xf32>
    %cst_83 = arith.constant dense<0.000000e+00> : vector<16x8xf32>
    %236 = tpu.matmul %235, %221, %cst_83 {dimension_numbers = #tpu.dot_dimension_numbers<[1], [0], [0], [1], [0, 0, 1, 1], [], []>} : vector<16x24xf32>, vector<24x8xf32>, vector<16x8xf32> -> vector<16x8xf32>
    %237 = tpu.concatenate %182, %200, %218, %236 in 1 : vector<16x8xf32>, vector<16x8xf32>, vector<16x8xf32>, vector<16x8xf32> -> vector<16x32xf32>
    %c1_84 = arith.constant 1 : index
    %c0_85 = arith.constant 0 : index
    %c0_86 = arith.constant 0 : index
    %238 = vector.load %arg8[%c1_84, %c0_85, %c0_86] : memref<4x32x32xf32, #tpu.memory_space<vmem>>, vector<1x32x32xf32>
    %239 = vector.shape_cast %238 : vector<1x32x32xf32> to vector<32x32xf32>
    %cst_87 = arith.constant dense<0.000000e+00> : vector<16x32xf32>
    %240 = tpu.matmul %237, %239, %cst_87 {dimension_numbers = #tpu.dot_dimension_numbers<[1], [0], [0], [1], [0, 0, 1, 1], [], []>} : vector<16x32xf32>, vector<32x32xf32>, vector<16x32xf32> -> vector<16x32xf32>
    %c9 = arith.constant 9 : index
    %c0_88 = arith.constant 0 : index
    %241 = vector.load %arg12[%c9, %c0_88] : memref<28x96xf32, #tpu.memory_space<vmem>>, vector<1x32xf32>
    %242 = vector.broadcast %241 : vector<1x32xf32> to vector<16x32xf32>
    %243 = arith.addf %240, %242 : vector<16x32xf32>
    %244 = arith.addf %149, %243 : vector<16x32xf32>
    %cst_89 = arith.constant dense<0.000000e+00> : vector<16xf32>
    %245 = vector.multi_reduction <add>, %244, %cst_89 [1] : vector<16x32xf32> to vector<16xf32>
    %246 = vector.shape_cast %245 : vector<16xf32> to vector<16x1xf32>
    %cst_90 = arith.constant 3.200000e+01 : f32
    %247 = vector.broadcast %cst_90 : f32 to vector<16x1xf32>
    %248 = arith.divf %246, %247 : vector<16x1xf32>
    %249 = vector.broadcast %248 : vector<16x1xf32> to vector<16x32xf32>
    %250 = arith.subf %244, %249 : vector<16x32xf32>
    %251 = arith.mulf %250, %250 : vector<16x32xf32>
    %cst_91 = arith.constant dense<0.000000e+00> : vector<16xf32>
    %252 = vector.multi_reduction <add>, %251, %cst_91 [1] : vector<16x32xf32> to vector<16xf32>
    %253 = vector.shape_cast %252 : vector<16xf32> to vector<16x1xf32>
    %cst_92 = arith.constant 3.200000e+01 : f32
    %254 = vector.broadcast %cst_92 : f32 to vector<16x1xf32>
    %255 = arith.divf %253, %254 : vector<16x1xf32>
    %256 = vector.broadcast %248 : vector<16x1xf32> to vector<16x32xf32>
    %257 = arith.subf %244, %256 : vector<16x32xf32>
    %cst_93 = arith.constant 9.99999974E-6 : f32
    %258 = vector.broadcast %cst_93 : f32 to vector<16x1xf32>
    %259 = arith.addf %255, %258 : vector<16x1xf32>
    %260 = math.rsqrt %259 : vector<16x1xf32>
    %261 = vector.broadcast %260 : vector<16x1xf32> to vector<16x32xf32>
    %262 = arith.mulf %257, %261 : vector<16x32xf32>
    %c10 = arith.constant 10 : index
    %c0_94 = arith.constant 0 : index
    %263 = vector.load %arg12[%c10, %c0_94] : memref<28x96xf32, #tpu.memory_space<vmem>>, vector<1x32xf32>
    %264 = vector.broadcast %263 : vector<1x32xf32> to vector<16x32xf32>
    %265 = arith.mulf %262, %264 : vector<16x32xf32>
    %c11 = arith.constant 11 : index
    %c0_95 = arith.constant 0 : index
    %266 = vector.load %arg12[%c11, %c0_95] : memref<28x96xf32, #tpu.memory_space<vmem>>, vector<1x32xf32>
    %267 = vector.broadcast %266 : vector<1x32xf32> to vector<16x32xf32>
    %268 = arith.addf %265, %267 : vector<16x32xf32>
    %c0_96 = arith.constant 0 : index
    %c0_97 = arith.constant 0 : index
    %c0_98 = arith.constant 0 : index
    %269 = vector.load %arg9[%c0_96, %c0_97, %c0_98] : memref<2x32x64xf32, #tpu.memory_space<vmem>>, vector<1x32x64xf32>
    %270 = vector.shape_cast %269 : vector<1x32x64xf32> to vector<32x64xf32>
    %cst_99 = arith.constant dense<0.000000e+00> : vector<16x64xf32>
    %271 = tpu.matmul %268, %270, %cst_99 {dimension_numbers = #tpu.dot_dimension_numbers<[1], [0], [0], [1], [0, 0, 1, 1], [], []>} : vector<16x32xf32>, vector<32x64xf32>, vector<16x64xf32> -> vector<16x64xf32>
    %c12 = arith.constant 12 : index
    %c0_100 = arith.constant 0 : index
    %272 = vector.load %arg12[%c12, %c0_100] : memref<28x96xf32, #tpu.memory_space<vmem>>, vector<1x64xf32>
    %273 = vector.broadcast %272 : vector<1x64xf32> to vector<16x64xf32>
    %274 = arith.addf %271, %273 : vector<16x64xf32>
    %cst_101 = arith.constant 0.000000e+00 : f32
    %275 = vector.broadcast %cst_101 : f32 to vector<16x64xf32>
    %276 = arith.maximumf %274, %275 : vector<16x64xf32>
    %c0_102 = arith.constant 0 : index
    %c0_103 = arith.constant 0 : index
    %c0_104 = arith.constant 0 : index
    %277 = vector.load %arg10[%c0_102, %c0_103, %c0_104] : memref<2x64x32xf32, #tpu.memory_space<vmem>>, vector<1x64x32xf32>
    %278 = vector.shape_cast %277 : vector<1x64x32xf32> to vector<64x32xf32>
    %cst_105 = arith.constant dense<0.000000e+00> : vector<16x32xf32>
    %279 = tpu.matmul %276, %278, %cst_105 {dimension_numbers = #tpu.dot_dimension_numbers<[1], [0], [0], [1], [0, 0, 1, 1], [], []>} : vector<16x64xf32>, vector<64x32xf32>, vector<16x32xf32> -> vector<16x32xf32>
    %c13 = arith.constant 13 : index
    %c0_106 = arith.constant 0 : index
    %280 = vector.load %arg12[%c13, %c0_106] : memref<28x96xf32, #tpu.memory_space<vmem>>, vector<1x32xf32>
    %281 = vector.broadcast %280 : vector<1x32xf32> to vector<16x32xf32>
    %282 = arith.addf %279, %281 : vector<16x32xf32>
    %283 = arith.addf %268, %282 : vector<16x32xf32>
    %cst_107 = arith.constant dense<0.000000e+00> : vector<16xf32>
    %284 = vector.multi_reduction <add>, %283, %cst_107 [1] : vector<16x32xf32> to vector<16xf32>
    %285 = vector.shape_cast %284 : vector<16xf32> to vector<16x1xf32>
    %cst_108 = arith.constant 3.200000e+01 : f32
    %286 = vector.broadcast %cst_108 : f32 to vector<16x1xf32>
    %287 = arith.divf %285, %286 : vector<16x1xf32>
    %288 = vector.broadcast %287 : vector<16x1xf32> to vector<16x32xf32>
    %289 = arith.subf %283, %288 : vector<16x32xf32>
    %290 = arith.mulf %289, %289 : vector<16x32xf32>
    %cst_109 = arith.constant dense<0.000000e+00> : vector<16xf32>
    %291 = vector.multi_reduction <add>, %290, %cst_109 [1] : vector<16x32xf32> to vector<16xf32>
    %292 = vector.shape_cast %291 : vector<16xf32> to vector<16x1xf32>
    %cst_110 = arith.constant 3.200000e+01 : f32
    %293 = vector.broadcast %cst_110 : f32 to vector<16x1xf32>
    %294 = arith.divf %292, %293 : vector<16x1xf32>
    %295 = vector.broadcast %287 : vector<16x1xf32> to vector<16x32xf32>
    %296 = arith.subf %283, %295 : vector<16x32xf32>
    %cst_111 = arith.constant 9.99999974E-6 : f32
    %297 = vector.broadcast %cst_111 : f32 to vector<16x1xf32>
    %298 = arith.addf %294, %297 : vector<16x1xf32>
    %299 = math.rsqrt %298 : vector<16x1xf32>
    %300 = vector.broadcast %299 : vector<16x1xf32> to vector<16x32xf32>
    %301 = arith.mulf %296, %300 : vector<16x32xf32>
    %c14 = arith.constant 14 : index
    %c0_112 = arith.constant 0 : index
    %302 = vector.load %arg12[%c14, %c0_112] : memref<28x96xf32, #tpu.memory_space<vmem>>, vector<1x32xf32>
    %303 = vector.broadcast %302 : vector<1x32xf32> to vector<16x32xf32>
    %304 = arith.mulf %301, %303 : vector<16x32xf32>
    %c15 = arith.constant 15 : index
    %c0_113 = arith.constant 0 : index
    %305 = vector.load %arg12[%c15, %c0_113] : memref<28x96xf32, #tpu.memory_space<vmem>>, vector<1x32xf32>
    %306 = vector.broadcast %305 : vector<1x32xf32> to vector<16x32xf32>
    %307 = arith.addf %304, %306 : vector<16x32xf32>
    %c2_114 = arith.constant 2 : index
    %c0_115 = arith.constant 0 : index
    %c0_116 = arith.constant 0 : index
    %308 = vector.load %arg7[%c2_114, %c0_115, %c0_116] : memref<4x32x96xf32, #tpu.memory_space<vmem>>, vector<1x32x96xf32>
    %309 = vector.shape_cast %308 : vector<1x32x96xf32> to vector<32x96xf32>
    %cst_117 = arith.constant dense<0.000000e+00> : vector<16x96xf32>
    %310 = tpu.matmul %307, %309, %cst_117 {dimension_numbers = #tpu.dot_dimension_numbers<[1], [0], [0], [1], [0, 0, 1, 1], [], []>} : vector<16x32xf32>, vector<32x96xf32>, vector<16x96xf32> -> vector<16x96xf32>
    %c16 = arith.constant 16 : index
    %c0_118 = arith.constant 0 : index
    %311 = vector.load %arg12[%c16, %c0_118] : memref<28x96xf32, #tpu.memory_space<vmem>>, vector<1x96xf32>
    %312 = vector.broadcast %311 : vector<1x96xf32> to vector<16x96xf32>
    %313 = arith.addf %310, %312 : vector<16x96xf32>
    %314 = vector.extract_strided_slice %313 {offsets = [0, 0], sizes = [16, 32], strides = [1, 1]} : vector<16x96xf32> to vector<16x32xf32>
    %315 = vector.extract_strided_slice %313 {offsets = [0, 32], sizes = [16, 32], strides = [1, 1]} : vector<16x96xf32> to vector<16x32xf32>
    %316 = vector.extract_strided_slice %313 {offsets = [0, 64], sizes = [16, 32], strides = [1, 1]} : vector<16x96xf32> to vector<16x32xf32>
    %317 = vector.extract_strided_slice %314 {offsets = [0, 0], sizes = [16, 8], strides = [1, 1]} : vector<16x32xf32> to vector<16x8xf32>
    %318 = vector.extract_strided_slice %315 {offsets = [0, 0], sizes = [16, 8], strides = [1, 1]} : vector<16x32xf32> to vector<16x8xf32>
    %319 = vector.extract_strided_slice %316 {offsets = [0, 0], sizes = [16, 8], strides = [1, 1]} : vector<16x32xf32> to vector<16x8xf32>
    %cst_119 = arith.constant dense<0.000000e+00> : vector<16x16xf32>
    %320 = tpu.matmul %317, %318, %cst_119 {dimension_numbers = #tpu.dot_dimension_numbers<[1], [1], [0], [0], [0, 0, 1, 0], [], []>} : vector<16x8xf32>, vector<16x8xf32>, vector<16x16xf32> -> vector<16x16xf32>
    %cst_120 = arith.constant 0.353553385 : f32
    %321 = vector.broadcast %cst_120 : f32 to vector<16x16xf32>
    %322 = arith.mulf %320, %321 : vector<16x16xf32>
    %323 = arith.addf %322, %35 : vector<16x16xf32>
    %cst_121 = arith.constant dense<0xFF800000> : vector<16xf32>
    %324 = vector.multi_reduction <maximumf>, %323, %cst_121 [1] : vector<16x16xf32> to vector<16xf32>
    %325 = vector.shape_cast %324 : vector<16xf32> to vector<16x1xf32>
    %326 = vector.broadcast %325 : vector<16x1xf32> to vector<16x16xf32>
    %327 = arith.subf %323, %326 : vector<16x16xf32>
    %328 = math.exp %327 : vector<16x16xf32>
    %cst_122 = arith.constant dense<0.000000e+00> : vector<16xf32>
    %329 = vector.multi_reduction <add>, %328, %cst_122 [1] : vector<16x16xf32> to vector<16xf32>
    %330 = vector.shape_cast %329 : vector<16xf32> to vector<16x1xf32>
    %331 = tpu.reciprocal %330 {approx = true} : vector<16x1xf32> -> vector<16x1xf32>
    %332 = vector.broadcast %331 : vector<16x1xf32> to vector<16x16xf32>
    %333 = arith.mulf %328, %332 : vector<16x16xf32>
    %cst_123 = arith.constant dense<0.000000e+00> : vector<16x8xf32>
    %334 = tpu.matmul %333, %319, %cst_123 {dimension_numbers = #tpu.dot_dimension_numbers<[1], [0], [0], [1], [0, 0, 1, 1], [], []>} : vector<16x16xf32>, vector<16x8xf32>, vector<16x8xf32> -> vector<16x8xf32>
    %335 = vector.extract_strided_slice %314 {offsets = [0, 8], sizes = [16, 8], strides = [1, 1]} : vector<16x32xf32> to vector<16x8xf32>
    %336 = vector.extract_strided_slice %315 {offsets = [0, 8], sizes = [16, 8], strides = [1, 1]} : vector<16x32xf32> to vector<16x8xf32>
    %337 = vector.extract_strided_slice %316 {offsets = [0, 8], sizes = [16, 8], strides = [1, 1]} : vector<16x32xf32> to vector<16x8xf32>
    %cst_124 = arith.constant dense<0.000000e+00> : vector<16x16xf32>
    %338 = tpu.matmul %335, %336, %cst_124 {dimension_numbers = #tpu.dot_dimension_numbers<[1], [1], [0], [0], [0, 0, 1, 0], [], []>} : vector<16x8xf32>, vector<16x8xf32>, vector<16x16xf32> -> vector<16x16xf32>
    %cst_125 = arith.constant 0.353553385 : f32
    %339 = vector.broadcast %cst_125 : f32 to vector<16x16xf32>
    %340 = arith.mulf %338, %339 : vector<16x16xf32>
    %341 = arith.addf %340, %35 : vector<16x16xf32>
    %cst_126 = arith.constant dense<0xFF800000> : vector<16xf32>
    %342 = vector.multi_reduction <maximumf>, %341, %cst_126 [1] : vector<16x16xf32> to vector<16xf32>
    %343 = vector.shape_cast %342 : vector<16xf32> to vector<16x1xf32>
    %344 = vector.broadcast %343 : vector<16x1xf32> to vector<16x16xf32>
    %345 = arith.subf %341, %344 : vector<16x16xf32>
    %346 = math.exp %345 : vector<16x16xf32>
    %cst_127 = arith.constant dense<0.000000e+00> : vector<16xf32>
    %347 = vector.multi_reduction <add>, %346, %cst_127 [1] : vector<16x16xf32> to vector<16xf32>
    %348 = vector.shape_cast %347 : vector<16xf32> to vector<16x1xf32>
    %349 = tpu.reciprocal %348 {approx = true} : vector<16x1xf32> -> vector<16x1xf32>
    %350 = vector.broadcast %349 : vector<16x1xf32> to vector<16x16xf32>
    %351 = arith.mulf %346, %350 : vector<16x16xf32>
    %cst_128 = arith.constant dense<0.000000e+00> : vector<16x8xf32>
    %352 = tpu.matmul %351, %337, %cst_128 {dimension_numbers = #tpu.dot_dimension_numbers<[1], [0], [0], [1], [0, 0, 1, 1], [], []>} : vector<16x16xf32>, vector<16x8xf32>, vector<16x8xf32> -> vector<16x8xf32>
    %353 = vector.extract_strided_slice %314 {offsets = [0, 16], sizes = [16, 8], strides = [1, 1]} : vector<16x32xf32> to vector<16x8xf32>
    %354 = vector.extract_strided_slice %315 {offsets = [0, 16], sizes = [16, 8], strides = [1, 1]} : vector<16x32xf32> to vector<16x8xf32>
    %355 = vector.extract_strided_slice %316 {offsets = [0, 16], sizes = [16, 8], strides = [1, 1]} : vector<16x32xf32> to vector<16x8xf32>
    %cst_129 = arith.constant dense<0.000000e+00> : vector<16x16xf32>
    %356 = tpu.matmul %353, %354, %cst_129 {dimension_numbers = #tpu.dot_dimension_numbers<[1], [1], [0], [0], [0, 0, 1, 0], [], []>} : vector<16x8xf32>, vector<16x8xf32>, vector<16x16xf32> -> vector<16x16xf32>
    %cst_130 = arith.constant 0.353553385 : f32
    %357 = vector.broadcast %cst_130 : f32 to vector<16x16xf32>
    %358 = arith.mulf %356, %357 : vector<16x16xf32>
    %359 = arith.addf %358, %35 : vector<16x16xf32>
    %cst_131 = arith.constant dense<0xFF800000> : vector<16xf32>
    %360 = vector.multi_reduction <maximumf>, %359, %cst_131 [1] : vector<16x16xf32> to vector<16xf32>
    %361 = vector.shape_cast %360 : vector<16xf32> to vector<16x1xf32>
    %362 = vector.broadcast %361 : vector<16x1xf32> to vector<16x16xf32>
    %363 = arith.subf %359, %362 : vector<16x16xf32>
    %364 = math.exp %363 : vector<16x16xf32>
    %cst_132 = arith.constant dense<0.000000e+00> : vector<16xf32>
    %365 = vector.multi_reduction <add>, %364, %cst_132 [1] : vector<16x16xf32> to vector<16xf32>
    %366 = vector.shape_cast %365 : vector<16xf32> to vector<16x1xf32>
    %367 = tpu.reciprocal %366 {approx = true} : vector<16x1xf32> -> vector<16x1xf32>
    %368 = vector.broadcast %367 : vector<16x1xf32> to vector<16x16xf32>
    %369 = arith.mulf %364, %368 : vector<16x16xf32>
    %cst_133 = arith.constant dense<0.000000e+00> : vector<16x8xf32>
    %370 = tpu.matmul %369, %355, %cst_133 {dimension_numbers = #tpu.dot_dimension_numbers<[1], [0], [0], [1], [0, 0, 1, 1], [], []>} : vector<16x16xf32>, vector<16x8xf32>, vector<16x8xf32> -> vector<16x8xf32>
    %371 = vector.extract_strided_slice %314 {offsets = [0, 24], sizes = [16, 8], strides = [1, 1]} : vector<16x32xf32> to vector<16x8xf32>
    %372 = vector.extract_strided_slice %315 {offsets = [0, 24], sizes = [16, 8], strides = [1, 1]} : vector<16x32xf32> to vector<16x8xf32>
    %373 = vector.extract_strided_slice %316 {offsets = [0, 24], sizes = [16, 8], strides = [1, 1]} : vector<16x32xf32> to vector<16x8xf32>
    %cst_134 = arith.constant dense<0.000000e+00> : vector<16x16xf32>
    %374 = tpu.matmul %371, %372, %cst_134 {dimension_numbers = #tpu.dot_dimension_numbers<[1], [1], [0], [0], [0, 0, 1, 0], [], []>} : vector<16x8xf32>, vector<16x8xf32>, vector<16x16xf32> -> vector<16x16xf32>
    %cst_135 = arith.constant 0.353553385 : f32
    %375 = vector.broadcast %cst_135 : f32 to vector<16x16xf32>
    %376 = arith.mulf %374, %375 : vector<16x16xf32>
    %377 = arith.addf %376, %35 : vector<16x16xf32>
    %cst_136 = arith.constant dense<0xFF800000> : vector<16xf32>
    %378 = vector.multi_reduction <maximumf>, %377, %cst_136 [1] : vector<16x16xf32> to vector<16xf32>
    %379 = vector.shape_cast %378 : vector<16xf32> to vector<16x1xf32>
    %380 = vector.broadcast %379 : vector<16x1xf32> to vector<16x16xf32>
    %381 = arith.subf %377, %380 : vector<16x16xf32>
    %382 = math.exp %381 : vector<16x16xf32>
    %cst_137 = arith.constant dense<0.000000e+00> : vector<16xf32>
    %383 = vector.multi_reduction <add>, %382, %cst_137 [1] : vector<16x16xf32> to vector<16xf32>
    %384 = vector.shape_cast %383 : vector<16xf32> to vector<16x1xf32>
    %385 = tpu.reciprocal %384 {approx = true} : vector<16x1xf32> -> vector<16x1xf32>
    %386 = vector.broadcast %385 : vector<16x1xf32> to vector<16x16xf32>
    %387 = arith.mulf %382, %386 : vector<16x16xf32>
    %cst_138 = arith.constant dense<0.000000e+00> : vector<16x8xf32>
    %388 = tpu.matmul %387, %373, %cst_138 {dimension_numbers = #tpu.dot_dimension_numbers<[1], [0], [0], [1], [0, 0, 1, 1], [], []>} : vector<16x16xf32>, vector<16x8xf32>, vector<16x8xf32> -> vector<16x8xf32>
    %389 = tpu.concatenate %334, %352, %370, %388 in 1 : vector<16x8xf32>, vector<16x8xf32>, vector<16x8xf32>, vector<16x8xf32> -> vector<16x32xf32>
    %c2_139 = arith.constant 2 : index
    %c0_140 = arith.constant 0 : index
    %c0_141 = arith.constant 0 : index
    %390 = vector.load %arg8[%c2_139, %c0_140, %c0_141] : memref<4x32x32xf32, #tpu.memory_space<vmem>>, vector<1x32x32xf32>
    %391 = vector.shape_cast %390 : vector<1x32x32xf32> to vector<32x32xf32>
    %cst_142 = arith.constant dense<0.000000e+00> : vector<16x32xf32>
    %392 = tpu.matmul %389, %391, %cst_142 {dimension_numbers = #tpu.dot_dimension_numbers<[1], [0], [0], [1], [0, 0, 1, 1], [], []>} : vector<16x32xf32>, vector<32x32xf32>, vector<16x32xf32> -> vector<16x32xf32>
    %c17 = arith.constant 17 : index
    %c0_143 = arith.constant 0 : index
    %393 = vector.load %arg12[%c17, %c0_143] : memref<28x96xf32, #tpu.memory_space<vmem>>, vector<1x32xf32>
    %394 = vector.broadcast %393 : vector<1x32xf32> to vector<16x32xf32>
    %395 = arith.addf %392, %394 : vector<16x32xf32>
    %396 = arith.addf %307, %395 : vector<16x32xf32>
    %cst_144 = arith.constant dense<0.000000e+00> : vector<16xf32>
    %397 = vector.multi_reduction <add>, %396, %cst_144 [1] : vector<16x32xf32> to vector<16xf32>
    %398 = vector.shape_cast %397 : vector<16xf32> to vector<16x1xf32>
    %cst_145 = arith.constant 3.200000e+01 : f32
    %399 = vector.broadcast %cst_145 : f32 to vector<16x1xf32>
    %400 = arith.divf %398, %399 : vector<16x1xf32>
    %401 = vector.broadcast %400 : vector<16x1xf32> to vector<16x32xf32>
    %402 = arith.subf %396, %401 : vector<16x32xf32>
    %403 = arith.mulf %402, %402 : vector<16x32xf32>
    %cst_146 = arith.constant dense<0.000000e+00> : vector<16xf32>
    %404 = vector.multi_reduction <add>, %403, %cst_146 [1] : vector<16x32xf32> to vector<16xf32>
    %405 = vector.shape_cast %404 : vector<16xf32> to vector<16x1xf32>
    %cst_147 = arith.constant 3.200000e+01 : f32
    %406 = vector.broadcast %cst_147 : f32 to vector<16x1xf32>
    %407 = arith.divf %405, %406 : vector<16x1xf32>
    %408 = vector.broadcast %400 : vector<16x1xf32> to vector<16x32xf32>
    %409 = arith.subf %396, %408 : vector<16x32xf32>
    %cst_148 = arith.constant 9.99999974E-6 : f32
    %410 = vector.broadcast %cst_148 : f32 to vector<16x1xf32>
    %411 = arith.addf %407, %410 : vector<16x1xf32>
    %412 = math.rsqrt %411 : vector<16x1xf32>
    %413 = vector.broadcast %412 : vector<16x1xf32> to vector<16x32xf32>
    %414 = arith.mulf %409, %413 : vector<16x32xf32>
    %c18 = arith.constant 18 : index
    %c0_149 = arith.constant 0 : index
    %415 = vector.load %arg12[%c18, %c0_149] : memref<28x96xf32, #tpu.memory_space<vmem>>, vector<1x32xf32>
    %416 = vector.broadcast %415 : vector<1x32xf32> to vector<16x32xf32>
    %417 = arith.mulf %414, %416 : vector<16x32xf32>
    %c19 = arith.constant 19 : index
    %c0_150 = arith.constant 0 : index
    %418 = vector.load %arg12[%c19, %c0_150] : memref<28x96xf32, #tpu.memory_space<vmem>>, vector<1x32xf32>
    %419 = vector.broadcast %418 : vector<1x32xf32> to vector<16x32xf32>
    %420 = arith.addf %417, %419 : vector<16x32xf32>
    %c3 = arith.constant 3 : index
    %c0_151 = arith.constant 0 : index
    %c0_152 = arith.constant 0 : index
    %421 = vector.load %arg7[%c3, %c0_151, %c0_152] : memref<4x32x96xf32, #tpu.memory_space<vmem>>, vector<1x32x96xf32>
    %422 = vector.shape_cast %421 : vector<1x32x96xf32> to vector<32x96xf32>
    %c20 = arith.constant 20 : index
    %c0_153 = arith.constant 0 : index
    %423 = vector.load %arg12[%c20, %c0_153] : memref<28x96xf32, #tpu.memory_space<vmem>>, vector<1x96xf32>
    %424 = vector.extract_strided_slice %422 {offsets = [0, 0], sizes = [32, 32], strides = [1, 1]} : vector<32x96xf32> to vector<32x32xf32>
    %cst_154 = arith.constant dense<0.000000e+00> : vector<16x32xf32>
    %425 = tpu.matmul %420, %424, %cst_154 {dimension_numbers = #tpu.dot_dimension_numbers<[1], [0], [0], [1], [0, 0, 1, 1], [], []>} : vector<16x32xf32>, vector<32x32xf32>, vector<16x32xf32> -> vector<16x32xf32>
    %426 = vector.extract_strided_slice %423 {offsets = [0, 0], sizes = [1, 32], strides = [1, 1]} : vector<1x96xf32> to vector<1x32xf32>
    %427 = vector.broadcast %426 : vector<1x32xf32> to vector<16x32xf32>
    %428 = arith.addf %425, %427 : vector<16x32xf32>
    %429 = vector.extract_strided_slice %422 {offsets = [0, 32], sizes = [32, 64], strides = [1, 1]} : vector<32x96xf32> to vector<32x64xf32>
    %cst_155 = arith.constant dense<0.000000e+00> : vector<24x64xf32>
    %430 = tpu.matmul %34, %429, %cst_155 {dimension_numbers = #tpu.dot_dimension_numbers<[1], [0], [0], [1], [0, 0, 1, 1], [], []>} : vector<24x32xf32>, vector<32x64xf32>, vector<24x64xf32> -> vector<24x64xf32>
    %431 = vector.extract_strided_slice %423 {offsets = [0, 32], sizes = [1, 64], strides = [1, 1]} : vector<1x96xf32> to vector<1x64xf32>
    %432 = vector.broadcast %431 : vector<1x64xf32> to vector<24x64xf32>
    %433 = arith.addf %430, %432 : vector<24x64xf32>
    %434 = vector.extract_strided_slice %433 {offsets = [0, 0], sizes = [24, 32], strides = [1, 1]} : vector<24x64xf32> to vector<24x32xf32>
    %435 = vector.extract_strided_slice %433 {offsets = [0, 32], sizes = [24, 32], strides = [1, 1]} : vector<24x64xf32> to vector<24x32xf32>
    %436 = vector.extract_strided_slice %428 {offsets = [0, 0], sizes = [16, 8], strides = [1, 1]} : vector<16x32xf32> to vector<16x8xf32>
    %437 = vector.extract_strided_slice %434 {offsets = [0, 0], sizes = [24, 8], strides = [1, 1]} : vector<24x32xf32> to vector<24x8xf32>
    %438 = vector.extract_strided_slice %435 {offsets = [0, 0], sizes = [24, 8], strides = [1, 1]} : vector<24x32xf32> to vector<24x8xf32>
    %cst_156 = arith.constant dense<0.000000e+00> : vector<16x24xf32>
    %439 = tpu.matmul %436, %437, %cst_156 {dimension_numbers = #tpu.dot_dimension_numbers<[1], [1], [0], [0], [0, 0, 1, 0], [], []>} : vector<16x8xf32>, vector<24x8xf32>, vector<16x24xf32> -> vector<16x24xf32>
    %cst_157 = arith.constant 0.353553385 : f32
    %440 = vector.broadcast %cst_157 : f32 to vector<16x24xf32>
    %441 = arith.mulf %439, %440 : vector<16x24xf32>
    %442 = arith.addf %441, %36 : vector<16x24xf32>
    %cst_158 = arith.constant dense<0xFF800000> : vector<16xf32>
    %443 = vector.multi_reduction <maximumf>, %442, %cst_158 [1] : vector<16x24xf32> to vector<16xf32>
    %444 = vector.shape_cast %443 : vector<16xf32> to vector<16x1xf32>
    %445 = vector.broadcast %444 : vector<16x1xf32> to vector<16x24xf32>
    %446 = arith.subf %442, %445 : vector<16x24xf32>
    %447 = math.exp %446 : vector<16x24xf32>
    %cst_159 = arith.constant dense<0.000000e+00> : vector<16xf32>
    %448 = vector.multi_reduction <add>, %447, %cst_159 [1] : vector<16x24xf32> to vector<16xf32>
    %449 = vector.shape_cast %448 : vector<16xf32> to vector<16x1xf32>
    %450 = tpu.reciprocal %449 {approx = true} : vector<16x1xf32> -> vector<16x1xf32>
    %451 = vector.broadcast %450 : vector<16x1xf32> to vector<16x24xf32>
    %452 = arith.mulf %447, %451 : vector<16x24xf32>
    %cst_160 = arith.constant dense<0.000000e+00> : vector<16x8xf32>
    %453 = tpu.matmul %452, %438, %cst_160 {dimension_numbers = #tpu.dot_dimension_numbers<[1], [0], [0], [1], [0, 0, 1, 1], [], []>} : vector<16x24xf32>, vector<24x8xf32>, vector<16x8xf32> -> vector<16x8xf32>
    %454 = vector.extract_strided_slice %428 {offsets = [0, 8], sizes = [16, 8], strides = [1, 1]} : vector<16x32xf32> to vector<16x8xf32>
    %455 = vector.extract_strided_slice %434 {offsets = [0, 8], sizes = [24, 8], strides = [1, 1]} : vector<24x32xf32> to vector<24x8xf32>
    %456 = vector.extract_strided_slice %435 {offsets = [0, 8], sizes = [24, 8], strides = [1, 1]} : vector<24x32xf32> to vector<24x8xf32>
    %cst_161 = arith.constant dense<0.000000e+00> : vector<16x24xf32>
    %457 = tpu.matmul %454, %455, %cst_161 {dimension_numbers = #tpu.dot_dimension_numbers<[1], [1], [0], [0], [0, 0, 1, 0], [], []>} : vector<16x8xf32>, vector<24x8xf32>, vector<16x24xf32> -> vector<16x24xf32>
    %cst_162 = arith.constant 0.353553385 : f32
    %458 = vector.broadcast %cst_162 : f32 to vector<16x24xf32>
    %459 = arith.mulf %457, %458 : vector<16x24xf32>
    %460 = arith.addf %459, %36 : vector<16x24xf32>
    %cst_163 = arith.constant dense<0xFF800000> : vector<16xf32>
    %461 = vector.multi_reduction <maximumf>, %460, %cst_163 [1] : vector<16x24xf32> to vector<16xf32>
    %462 = vector.shape_cast %461 : vector<16xf32> to vector<16x1xf32>
    %463 = vector.broadcast %462 : vector<16x1xf32> to vector<16x24xf32>
    %464 = arith.subf %460, %463 : vector<16x24xf32>
    %465 = math.exp %464 : vector<16x24xf32>
    %cst_164 = arith.constant dense<0.000000e+00> : vector<16xf32>
    %466 = vector.multi_reduction <add>, %465, %cst_164 [1] : vector<16x24xf32> to vector<16xf32>
    %467 = vector.shape_cast %466 : vector<16xf32> to vector<16x1xf32>
    %468 = tpu.reciprocal %467 {approx = true} : vector<16x1xf32> -> vector<16x1xf32>
    %469 = vector.broadcast %468 : vector<16x1xf32> to vector<16x24xf32>
    %470 = arith.mulf %465, %469 : vector<16x24xf32>
    %cst_165 = arith.constant dense<0.000000e+00> : vector<16x8xf32>
    %471 = tpu.matmul %470, %456, %cst_165 {dimension_numbers = #tpu.dot_dimension_numbers<[1], [0], [0], [1], [0, 0, 1, 1], [], []>} : vector<16x24xf32>, vector<24x8xf32>, vector<16x8xf32> -> vector<16x8xf32>
    %472 = vector.extract_strided_slice %428 {offsets = [0, 16], sizes = [16, 8], strides = [1, 1]} : vector<16x32xf32> to vector<16x8xf32>
    %473 = vector.extract_strided_slice %434 {offsets = [0, 16], sizes = [24, 8], strides = [1, 1]} : vector<24x32xf32> to vector<24x8xf32>
    %474 = vector.extract_strided_slice %435 {offsets = [0, 16], sizes = [24, 8], strides = [1, 1]} : vector<24x32xf32> to vector<24x8xf32>
    %cst_166 = arith.constant dense<0.000000e+00> : vector<16x24xf32>
    %475 = tpu.matmul %472, %473, %cst_166 {dimension_numbers = #tpu.dot_dimension_numbers<[1], [1], [0], [0], [0, 0, 1, 0], [], []>} : vector<16x8xf32>, vector<24x8xf32>, vector<16x24xf32> -> vector<16x24xf32>
    %cst_167 = arith.constant 0.353553385 : f32
    %476 = vector.broadcast %cst_167 : f32 to vector<16x24xf32>
    %477 = arith.mulf %475, %476 : vector<16x24xf32>
    %478 = arith.addf %477, %36 : vector<16x24xf32>
    %cst_168 = arith.constant dense<0xFF800000> : vector<16xf32>
    %479 = vector.multi_reduction <maximumf>, %478, %cst_168 [1] : vector<16x24xf32> to vector<16xf32>
    %480 = vector.shape_cast %479 : vector<16xf32> to vector<16x1xf32>
    %481 = vector.broadcast %480 : vector<16x1xf32> to vector<16x24xf32>
    %482 = arith.subf %478, %481 : vector<16x24xf32>
    %483 = math.exp %482 : vector<16x24xf32>
    %cst_169 = arith.constant dense<0.000000e+00> : vector<16xf32>
    %484 = vector.multi_reduction <add>, %483, %cst_169 [1] : vector<16x24xf32> to vector<16xf32>
    %485 = vector.shape_cast %484 : vector<16xf32> to vector<16x1xf32>
    %486 = tpu.reciprocal %485 {approx = true} : vector<16x1xf32> -> vector<16x1xf32>
    %487 = vector.broadcast %486 : vector<16x1xf32> to vector<16x24xf32>
    %488 = arith.mulf %483, %487 : vector<16x24xf32>
    %cst_170 = arith.constant dense<0.000000e+00> : vector<16x8xf32>
    %489 = tpu.matmul %488, %474, %cst_170 {dimension_numbers = #tpu.dot_dimension_numbers<[1], [0], [0], [1], [0, 0, 1, 1], [], []>} : vector<16x24xf32>, vector<24x8xf32>, vector<16x8xf32> -> vector<16x8xf32>
    %490 = vector.extract_strided_slice %428 {offsets = [0, 24], sizes = [16, 8], strides = [1, 1]} : vector<16x32xf32> to vector<16x8xf32>
    %491 = vector.extract_strided_slice %434 {offsets = [0, 24], sizes = [24, 8], strides = [1, 1]} : vector<24x32xf32> to vector<24x8xf32>
    %492 = vector.extract_strided_slice %435 {offsets = [0, 24], sizes = [24, 8], strides = [1, 1]} : vector<24x32xf32> to vector<24x8xf32>
    %cst_171 = arith.constant dense<0.000000e+00> : vector<16x24xf32>
    %493 = tpu.matmul %490, %491, %cst_171 {dimension_numbers = #tpu.dot_dimension_numbers<[1], [1], [0], [0], [0, 0, 1, 0], [], []>} : vector<16x8xf32>, vector<24x8xf32>, vector<16x24xf32> -> vector<16x24xf32>
    %cst_172 = arith.constant 0.353553385 : f32
    %494 = vector.broadcast %cst_172 : f32 to vector<16x24xf32>
    %495 = arith.mulf %493, %494 : vector<16x24xf32>
    %496 = arith.addf %495, %36 : vector<16x24xf32>
    %cst_173 = arith.constant dense<0xFF800000> : vector<16xf32>
    %497 = vector.multi_reduction <maximumf>, %496, %cst_173 [1] : vector<16x24xf32> to vector<16xf32>
    %498 = vector.shape_cast %497 : vector<16xf32> to vector<16x1xf32>
    %499 = vector.broadcast %498 : vector<16x1xf32> to vector<16x24xf32>
    %500 = arith.subf %496, %499 : vector<16x24xf32>
    %501 = math.exp %500 : vector<16x24xf32>
    %cst_174 = arith.constant dense<0.000000e+00> : vector<16xf32>
    %502 = vector.multi_reduction <add>, %501, %cst_174 [1] : vector<16x24xf32> to vector<16xf32>
    %503 = vector.shape_cast %502 : vector<16xf32> to vector<16x1xf32>
    %504 = tpu.reciprocal %503 {approx = true} : vector<16x1xf32> -> vector<16x1xf32>
    %505 = vector.broadcast %504 : vector<16x1xf32> to vector<16x24xf32>
    %506 = arith.mulf %501, %505 : vector<16x24xf32>
    %cst_175 = arith.constant dense<0.000000e+00> : vector<16x8xf32>
    %507 = tpu.matmul %506, %492, %cst_175 {dimension_numbers = #tpu.dot_dimension_numbers<[1], [0], [0], [1], [0, 0, 1, 1], [], []>} : vector<16x24xf32>, vector<24x8xf32>, vector<16x8xf32> -> vector<16x8xf32>
    %508 = tpu.concatenate %453, %471, %489, %507 in 1 : vector<16x8xf32>, vector<16x8xf32>, vector<16x8xf32>, vector<16x8xf32> -> vector<16x32xf32>
    %c3_176 = arith.constant 3 : index
    %c0_177 = arith.constant 0 : index
    %c0_178 = arith.constant 0 : index
    %509 = vector.load %arg8[%c3_176, %c0_177, %c0_178] : memref<4x32x32xf32, #tpu.memory_space<vmem>>, vector<1x32x32xf32>
    %510 = vector.shape_cast %509 : vector<1x32x32xf32> to vector<32x32xf32>
    %cst_179 = arith.constant dense<0.000000e+00> : vector<16x32xf32>
    %511 = tpu.matmul %508, %510, %cst_179 {dimension_numbers = #tpu.dot_dimension_numbers<[1], [0], [0], [1], [0, 0, 1, 1], [], []>} : vector<16x32xf32>, vector<32x32xf32>, vector<16x32xf32> -> vector<16x32xf32>
    %c21 = arith.constant 21 : index
    %c0_180 = arith.constant 0 : index
    %512 = vector.load %arg12[%c21, %c0_180] : memref<28x96xf32, #tpu.memory_space<vmem>>, vector<1x32xf32>
    %513 = vector.broadcast %512 : vector<1x32xf32> to vector<16x32xf32>
    %514 = arith.addf %511, %513 : vector<16x32xf32>
    %515 = arith.addf %420, %514 : vector<16x32xf32>
    %cst_181 = arith.constant dense<0.000000e+00> : vector<16xf32>
    %516 = vector.multi_reduction <add>, %515, %cst_181 [1] : vector<16x32xf32> to vector<16xf32>
    %517 = vector.shape_cast %516 : vector<16xf32> to vector<16x1xf32>
    %cst_182 = arith.constant 3.200000e+01 : f32
    %518 = vector.broadcast %cst_182 : f32 to vector<16x1xf32>
    %519 = arith.divf %517, %518 : vector<16x1xf32>
    %520 = vector.broadcast %519 : vector<16x1xf32> to vector<16x32xf32>
    %521 = arith.subf %515, %520 : vector<16x32xf32>
    %522 = arith.mulf %521, %521 : vector<16x32xf32>
    %cst_183 = arith.constant dense<0.000000e+00> : vector<16xf32>
    %523 = vector.multi_reduction <add>, %522, %cst_183 [1] : vector<16x32xf32> to vector<16xf32>
    %524 = vector.shape_cast %523 : vector<16xf32> to vector<16x1xf32>
    %cst_184 = arith.constant 3.200000e+01 : f32
    %525 = vector.broadcast %cst_184 : f32 to vector<16x1xf32>
    %526 = arith.divf %524, %525 : vector<16x1xf32>
    %527 = vector.broadcast %519 : vector<16x1xf32> to vector<16x32xf32>
    %528 = arith.subf %515, %527 : vector<16x32xf32>
    %cst_185 = arith.constant 9.99999974E-6 : f32
    %529 = vector.broadcast %cst_185 : f32 to vector<16x1xf32>
    %530 = arith.addf %526, %529 : vector<16x1xf32>
    %531 = math.rsqrt %530 : vector<16x1xf32>
    %532 = vector.broadcast %531 : vector<16x1xf32> to vector<16x32xf32>
    %533 = arith.mulf %528, %532 : vector<16x32xf32>
    %c22 = arith.constant 22 : index
    %c0_186 = arith.constant 0 : index
    %534 = vector.load %arg12[%c22, %c0_186] : memref<28x96xf32, #tpu.memory_space<vmem>>, vector<1x32xf32>
    %535 = vector.broadcast %534 : vector<1x32xf32> to vector<16x32xf32>
    %536 = arith.mulf %533, %535 : vector<16x32xf32>
    %c23 = arith.constant 23 : index
    %c0_187 = arith.constant 0 : index
    %537 = vector.load %arg12[%c23, %c0_187] : memref<28x96xf32, #tpu.memory_space<vmem>>, vector<1x32xf32>
    %538 = vector.broadcast %537 : vector<1x32xf32> to vector<16x32xf32>
    %539 = arith.addf %536, %538 : vector<16x32xf32>
    %c1_188 = arith.constant 1 : index
    %c0_189 = arith.constant 0 : index
    %c0_190 = arith.constant 0 : index
    %540 = vector.load %arg9[%c1_188, %c0_189, %c0_190] : memref<2x32x64xf32, #tpu.memory_space<vmem>>, vector<1x32x64xf32>
    %541 = vector.shape_cast %540 : vector<1x32x64xf32> to vector<32x64xf32>
    %cst_191 = arith.constant dense<0.000000e+00> : vector<16x64xf32>
    %542 = tpu.matmul %539, %541, %cst_191 {dimension_numbers = #tpu.dot_dimension_numbers<[1], [0], [0], [1], [0, 0, 1, 1], [], []>} : vector<16x32xf32>, vector<32x64xf32>, vector<16x64xf32> -> vector<16x64xf32>
    %c24 = arith.constant 24 : index
    %c0_192 = arith.constant 0 : index
    %543 = vector.load %arg12[%c24, %c0_192] : memref<28x96xf32, #tpu.memory_space<vmem>>, vector<1x64xf32>
    %544 = vector.broadcast %543 : vector<1x64xf32> to vector<16x64xf32>
    %545 = arith.addf %542, %544 : vector<16x64xf32>
    %cst_193 = arith.constant 0.000000e+00 : f32
    %546 = vector.broadcast %cst_193 : f32 to vector<16x64xf32>
    %547 = arith.maximumf %545, %546 : vector<16x64xf32>
    %c1_194 = arith.constant 1 : index
    %c0_195 = arith.constant 0 : index
    %c0_196 = arith.constant 0 : index
    %548 = vector.load %arg10[%c1_194, %c0_195, %c0_196] : memref<2x64x32xf32, #tpu.memory_space<vmem>>, vector<1x64x32xf32>
    %549 = vector.shape_cast %548 : vector<1x64x32xf32> to vector<64x32xf32>
    %cst_197 = arith.constant dense<0.000000e+00> : vector<16x32xf32>
    %550 = tpu.matmul %547, %549, %cst_197 {dimension_numbers = #tpu.dot_dimension_numbers<[1], [0], [0], [1], [0, 0, 1, 1], [], []>} : vector<16x64xf32>, vector<64x32xf32>, vector<16x32xf32> -> vector<16x32xf32>
    %c25 = arith.constant 25 : index
    %c0_198 = arith.constant 0 : index
    %551 = vector.load %arg12[%c25, %c0_198] : memref<28x96xf32, #tpu.memory_space<vmem>>, vector<1x32xf32>
    %552 = vector.broadcast %551 : vector<1x32xf32> to vector<16x32xf32>
    %553 = arith.addf %550, %552 : vector<16x32xf32>
    %554 = arith.addf %539, %553 : vector<16x32xf32>
    %cst_199 = arith.constant dense<0.000000e+00> : vector<16xf32>
    %555 = vector.multi_reduction <add>, %554, %cst_199 [1] : vector<16x32xf32> to vector<16xf32>
    %556 = vector.shape_cast %555 : vector<16xf32> to vector<16x1xf32>
    %cst_200 = arith.constant 3.200000e+01 : f32
    %557 = vector.broadcast %cst_200 : f32 to vector<16x1xf32>
    %558 = arith.divf %556, %557 : vector<16x1xf32>
    %559 = vector.broadcast %558 : vector<16x1xf32> to vector<16x32xf32>
    %560 = arith.subf %554, %559 : vector<16x32xf32>
    %561 = arith.mulf %560, %560 : vector<16x32xf32>
    %cst_201 = arith.constant dense<0.000000e+00> : vector<16xf32>
    %562 = vector.multi_reduction <add>, %561, %cst_201 [1] : vector<16x32xf32> to vector<16xf32>
    %563 = vector.shape_cast %562 : vector<16xf32> to vector<16x1xf32>
    %cst_202 = arith.constant 3.200000e+01 : f32
    %564 = vector.broadcast %cst_202 : f32 to vector<16x1xf32>
    %565 = arith.divf %563, %564 : vector<16x1xf32>
    %566 = vector.broadcast %558 : vector<16x1xf32> to vector<16x32xf32>
    %567 = arith.subf %554, %566 : vector<16x32xf32>
    %cst_203 = arith.constant 9.99999974E-6 : f32
    %568 = vector.broadcast %cst_203 : f32 to vector<16x1xf32>
    %569 = arith.addf %565, %568 : vector<16x1xf32>
    %570 = math.rsqrt %569 : vector<16x1xf32>
    %571 = vector.broadcast %570 : vector<16x1xf32> to vector<16x32xf32>
    %572 = arith.mulf %567, %571 : vector<16x32xf32>
    %c26 = arith.constant 26 : index
    %c0_204 = arith.constant 0 : index
    %573 = vector.load %arg12[%c26, %c0_204] : memref<28x96xf32, #tpu.memory_space<vmem>>, vector<1x32xf32>
    %574 = vector.broadcast %573 : vector<1x32xf32> to vector<16x32xf32>
    %575 = arith.mulf %572, %574 : vector<16x32xf32>
    %c27 = arith.constant 27 : index
    %c0_205 = arith.constant 0 : index
    %576 = vector.load %arg12[%c27, %c0_205] : memref<28x96xf32, #tpu.memory_space<vmem>>, vector<1x32xf32>
    %577 = vector.broadcast %576 : vector<1x32xf32> to vector<16x32xf32>
    %578 = arith.addf %575, %577 : vector<16x32xf32>
    %c0_206 = arith.constant 0 : index
    %c0_207 = arith.constant 0 : index
    %579 = vector.load %arg11[%c0_206, %c0_207] : memref<32x8xf32, #tpu.memory_space<vmem>>, vector<32x8xf32>
    %cst_208 = arith.constant dense<0.000000e+00> : vector<16x8xf32>
    %580 = tpu.matmul %578, %579, %cst_208 {dimension_numbers = #tpu.dot_dimension_numbers<[1], [0], [0], [1], [0, 0, 1, 1], [], []>} : vector<16x32xf32>, vector<32x8xf32>, vector<16x8xf32> -> vector<16x8xf32>
    %c3_209 = arith.constant 3 : index
    %c0_210 = arith.constant 0 : index
    %581 = vector.load %arg12[%c3_209, %c0_210] : memref<28x96xf32, #tpu.memory_space<vmem>>, vector<1x8xf32>
    %582 = vector.broadcast %581 : vector<1x8xf32> to vector<16x8xf32>
    %583 = arith.addf %580, %582 : vector<16x8xf32>
    %584 = math.tanh %583 : vector<16x8xf32>
    %c0_211 = arith.constant 0 : index
    %c0_212 = arith.constant 0 : index
    %585 = vector.load %arg13[%c0_211, %c0_212] : memref<16x8xf32, #tpu.memory_space<vmem>>, vector<16x8xf32>
    tpu.vector_store %arg13[%c0_211, %c0_212], %584 {strides = array<i32>} : memref<16x8xf32, #tpu.memory_space<vmem>>, vector<16x8xf32>,
    return
  }
  func.func @transform_0(%arg0: i32) -> (i32, i32) {
    %c0_i32 = arith.constant 0 : i32
    %c0_i32_0 = arith.constant 0 : i32
    %c0_i32_1 = arith.constant 0 : i32
    return %c0_i32, %c0_i32_0 : i32, i32
  }
  func.func @transform_1(%arg0: i32) -> (i32, i32) {
    %c0_i32 = arith.constant 0 : i32
    %c0_i32_0 = arith.constant 0 : i32
    %c0_i32_1 = arith.constant 0 : i32
    return %c0_i32, %c0_i32_0 : i32, i32
  }
  func.func @transform_2(%arg0: i32) -> (i32, i32) {
    %c0_i32 = arith.constant 0 : i32
    %c0_i32_0 = arith.constant 0 : i32
    %c0_i32_1 = arith.constant 0 : i32
    return %c0_i32, %c0_i32_0 : i32, i32
  }
  func.func @transform_3(%arg0: i32) -> (i32, i32) {
    %c0_i32 = arith.constant 0 : i32
    %c0_i32_0 = arith.constant 0 : i32
    %c0_i32_1 = arith.constant 0 : i32
    return %c0_i32, %c0_i32_0 : i32, i32
  }
  func.func @transform_4(%arg0: i32) -> (i32, i32) {
    %c0_i32 = arith.constant 0 : i32
    %c0_i32_0 = arith.constant 0 : i32
    %c0_i32_1 = arith.constant 0 : i32
    return %c0_i32, %c0_i32_0 : i32, i32
  }
  func.func @transform_5(%arg0: i32) -> (i32, i32) {
    %c0_i32 = arith.constant 0 : i32
    %c0_i32_0 = arith.constant 0 : i32
    %c0_i32_1 = arith.constant 0 : i32
    return %c0_i32, %c0_i32_0 : i32, i32
  }
  func.func @transform_6(%arg0: i32) -> (i32, i32, i32) {
    %c0_i32 = arith.constant 0 : i32
    %c0_i32_0 = arith.constant 0 : i32
    %c0_i32_1 = arith.constant 0 : i32
    %c0_i32_2 = arith.constant 0 : i32
    return %c0_i32, %c0_i32_0, %c0_i32_1 : i32, i32, i32
  }
  func.func @transform_7(%arg0: i32) -> (i32, i32, i32) {
    %c0_i32 = arith.constant 0 : i32
    %c0_i32_0 = arith.constant 0 : i32
    %c0_i32_1 = arith.constant 0 : i32
    %c0_i32_2 = arith.constant 0 : i32
    return %c0_i32, %c0_i32_0, %c0_i32_1 : i32, i32, i32
  }
  func.func @transform_8(%arg0: i32) -> (i32, i32, i32) {
    %c0_i32 = arith.constant 0 : i32
    %c0_i32_0 = arith.constant 0 : i32
    %c0_i32_1 = arith.constant 0 : i32
    %c0_i32_2 = arith.constant 0 : i32
    return %c0_i32, %c0_i32_0, %c0_i32_1 : i32, i32, i32
  }
  func.func @transform_9(%arg0: i32) -> (i32, i32, i32) {
    %c0_i32 = arith.constant 0 : i32
    %c0_i32_0 = arith.constant 0 : i32
    %c0_i32_1 = arith.constant 0 : i32
    %c0_i32_2 = arith.constant 0 : i32
    return %c0_i32, %c0_i32_0, %c0_i32_1 : i32, i32, i32
  }
  func.func @transform_10(%arg0: i32) -> (i32, i32) {
    %c0_i32 = arith.constant 0 : i32
    %c0_i32_0 = arith.constant 0 : i32
    %c0_i32_1 = arith.constant 0 : i32
    return %c0_i32, %c0_i32_0 : i32, i32
  }
  func.func @transform_11(%arg0: i32) -> (i32, i32) {
    %c0_i32 = arith.constant 0 : i32
    %c0_i32_0 = arith.constant 0 : i32
    %c0_i32_1 = arith.constant 0 : i32
    return %c0_i32, %c0_i32_0 : i32, i32
  }
  func.func @transform_12(%arg0: i32) -> (i32, i32) {
    %c0_i32 = arith.constant 0 : i32
    %c0_i32_0 = arith.constant 0 : i32
    %c0_i32_1 = arith.constant 0 : i32
    return %c0_i32, %c0_i32_0 : i32, i32
  }
}

</mosaic_0001>

<bundles_post_ra>
// kernel: action_decoder_forward.1
= control target key start
LH: loop header
LB: loop body
LE: loop exit
PB: predicated region body
PF: predicated region fallthrough
CT: control target
= control target key end

     0   :  { %vm49_vm0 = vcmask 64512   ;;  %vm133_vm1 = vcmask 261120   ;;  %s6824_s27 = smov 96   ;;  %s6825_s28 = smov 120   ;;  %vm369_vm3 = vcmask 130048   ;;  %vm1119_vm4 = vcmask 195584   ;;  %s7885_s5 = inlined_call_operand.vmem [shape: f32[8,32], index: 5, kind: input, shape index: {}]   ;;  %s7886_s0 = inlined_call_operand.vmem [shape: f32[16,8], index: 0, kind: input, shape index: {}]   ;;  %s7887_s11 = inlined_call_operand.vmem [shape: f32[28,96], index: 11, kind: input, shape index: {}]   ;;  %s7888_s6 = inlined_call_operand.vmem [shape: f32[4,32,96], index: 6, kind: input, shape index: {}]   ;;  %s7889_s4 = inlined_call_operand.vmem [shape: f32[16,32], index: 4, kind: input, shape index: {}]   ;;  %s7890_s2 = inlined_call_operand.vmem [shape: f32[16,16], index: 2, kind: input, shape index: {}]   ;;  %s7891_s7 = inlined_call_operand.vmem [shape: f32[4,32,32], index: 7, kind: input, shape index: {}]   ;;  %s7892_s1 = inlined_call_operand.vmem [shape: f32[24,32], index: 1, kind: input, shape index: {}]   ;;  %s7893_s3 = inlined_call_operand.vmem [shape: f32[16,24], index: 3, kind: input, shape index: {}]   ;;  %s7894_s8 = inlined_call_operand.vmem [shape: f32[2,32,64], index: 8, kind: input, shape index: {}]   ;;  %s7895_s9 = inlined_call_operand.vmem [shape: f32[2,64,32], index: 9, kind: input, shape index: {}]   ;;  %s7896_s10 = inlined_call_operand.vmem [shape: f32[32,8], index: 10, kind: input, shape index: {}]   ;;  %s7897_s12 = inlined_call_operand.vmem [shape: f32[16,8], index: 12, kind: output, shape index: {}]  }
   0x1   :  { %v43_v0 = vld [vmem:[%s7885_s5] sm:$0xff]  ;;  %v42_v2 = vld [vmem:[%s7886_s0 + $0x8] sm:$0xff]  ;;  %v188_v24 = vld [vmem:[%s7888_s6 + $0x10] sm:$0xff]  ;;  %s6826_s13 = smov 56   ;;  %s6827_s14 = smov 64   ;;  %vm6838_vm5 = vmmov 0  }
   0x2   :  { %v41_v1 = vld [vmem:[%s7886_s0] sm:$0xff]  ;;  %5723 = vmatprep.subr.mxu0 %v43_v0  ;;  %v187_v23 = vld [vmem:[%s7888_s6 + $0x8] sm:$0xff]  ;;  %v189_v26 = vld [vmem:[%s7888_s6 + $0x18] sm:$0xff]  ;;  %s6828_s15 = smov 80   ;;  %s6829_s16 = smov 112   ;;  %vm2561_vm6 = vcmask 523264  }
   0x3   :  { %5725 = vmatprep.mubr.msk.f32.mxu0 %vm49_vm0, %v41_v1  ;;  %5724 = vmatpush3.msra.mxu0 %v43_v0  ;;  %v5274_v3 = vld [vmem:[%s7887_s11] ss:$0 sm:$0xff]  ;;  %v6181_v27 = vpack.c.bf16 %v189_v26, %v188_v24  ;;  %v5277_v35 = vld [vmem:[%s7887_s11 + $0x1] ss:$0 sm:$0xff]  ;;  %v5278_v37 = vld [vmem:[%s7887_s11 + $0x2] ss:$0 sm:$0xff] }
   0x4   :  { %5726 = vmatmul.mubr.msk.f32.vlgmr.msra.gmra.mrb[0].mxu0 %vm49_vm0, %v42_v2  ;;  %v186_v22 = vld [vmem:[%s7888_s6] sm:$0xff]  ;;  %v176_v45 = vld [vmem:[%s7889_s4 + $0x8] sm:$0xff]  ;;  %vm6978_vm2 = vmpackc.low %vm49_vm0, %vm49_vm0  ;;  %s6830_s17 = smov 72   ;;  %s6831_s18 = smov 104  }
   0x5   :  { %v6177_v25 = vpack.c.bf16 %v187_v23, %v186_v22  ;;  %v175_v40 = vld [vmem:[%s7889_s4] sm:$0xff]  ;;  %s6823_s4 = smov 88   ;;  %v6997_v2 = vld [vmem:[%s7890_s2 + $0x8] sm:$0xff]  ;;  %s7898_s19 = smov 40  }
   0x6   :  { %v5279_v48 = vld [vmem:[%s7887_s11 + $0x4] ss:$0 sm:$0xff]  ;;  %s6833_s20 = smov 48   ;;  %s6834_s21 = smov 8  }
   0x7   :  { %6178 = vmatprep.subr.bf16.mxu1 %v6177_v25  ;;  %s7901_s30 = smov 16   ;;  %s7899_s22 = smov 24  }
   0x8   :  { %6180 = vmatpush3.bf16.msra.mxu1 %v6177_v25 }
   0x9   :  { %6182 = vmatprep.subr.bf16.mxu1 %v6181_v27 }
   0xc   :  { %6184 = vmatpush3.bf16.msra.mxu1 %v6181_v27 }
  0xd7   :  { %v5727_v4 = vpop.f32.mrb[0].mxu0 }
  0xd8   :  { %v122_v5 = vpop.f32.mrb[1].mxu0  ;;  %v128_v6 = vadd.f32 %v5727_v4, %v5274_v3 }
  0xd9   :  { %v123_v7 = vadd.f32 %v5274_v3, %v122_v5  ;;  %v7002_v5 = vld [vmem:[%s7890_s2] sm:$0xff] }
  0xda   :  { %v132_v9 = vmax.f32 %v128_v6, 0.0 }
  0xdb   :  { %v131_v8 = vmax.f32 %v123_v7, 0.0 }
  0xdc   :  { %v137_v11 = vsel %vm133_vm1, %v132_v9, 0.0 }
  0xdd   :  { %v134_v10 = vsel %vm133_vm1, %v131_v8, 0.0 }
  0xde   :  { %135 = vadd.xlane.f32.xlu0 %v134_v10 }
  0xe2   :  { %138 = vadd.xlane.f32.xlu0 %v137_v11 }
 0x16b   :  { %v136_v12 = vpop.xlane.xlu0 %135 }
 0x16c   :  { %v141_v13 = vmul.f32 0.03125, %v136_v12 }
 0x16e   :  { %v143_v14 = vsub.f32 %v131_v8, %v141_v13 }
 0x16f   :  { %v139_v15 = vpop.xlane.xlu0 %138 }
 0x170   :  { %v142_v16 = vmul.f32 0.03125, %v139_v15  ;;  %v145_v17 = vmul.f32 %v143_v14, %v143_v14 }
 0x172   :  { %v144_v18 = vsub.f32 %v132_v9, %v142_v16  ;;  %v147_v19 = vsel %vm133_vm1, %v145_v17, 0.0 }
 0x173   :  { %148 = vadd.xlane.f32.xlu1 %v147_v19 }
 0x174   :  { %v146_v20 = vmul.f32 %v144_v18, %v144_v18 }
 0x176   :  { %v150_v21 = vsel %vm133_vm1, %v146_v20, 0.0 }
 0x177   :  { %151 = vadd.xlane.f32.xlu1 %v150_v21 }
 0x200   :  { %v149_v28 = vpop.xlane.xlu1 %148 }
 0x201   :  { %v153_v29 = vmul.f32 0.03125, %v149_v28 }
 0x203   :  { %v155_v30 = vadd.f32 1e-05, %v153_v29 }
 0x204   :  { %v152_v31 = vpop.xlane.xlu1 %151 }
 0x205   :  { %6656 = vrsqrt.f32 %v155_v30  ;;  %v154_v32 = vmul.f32 0.03125, %v152_v31 }
 0x207   :  { %v156_v33 = vadd.f32 1e-05, %v154_v32 }
 0x209   :  { %6658 = vrsqrt.f32 %v156_v33 }
 0x20f   :  { %v6657_v34 = vpop.eup %6656 }
 0x210   :  { %v159_v36 = vmul.f32 %v6657_v34, %v143_v14 }
 0x212   :  { %v166_v38 = vmul.f32 %v5277_v35, %v159_v36 }
 0x213   :  { %v6659_v39 = vpop.eup %6658 }
 0x214   :  { %v160_v41 = vmul.f32 %v6659_v39, %v144_v18  ;;  %v173_v42 = vadd.f32 %v5278_v37, %v166_v38 }
 0x216   :  { %v167_v43 = vmul.f32 %v5277_v35, %v160_v41  ;;  %v6944_v44 = vadd.f32 %v175_v40, %v173_v42 }
 0x218   :  { %v174_v46 = vadd.f32 %v5278_v37, %v167_v43  ;;  %5736 = vmatprep.mubr.msk.f32.mxu1 %vm133_vm1, %v6944_v44 }
 0x21a   :  { %v6951_v47 = vadd.f32 %v176_v45, %v174_v46 }
 0x21c   :  { %5737 = vmatmul.mubr.msk.f32.vlgmr.msra.gmra.mrb[0].mxu1 %vm133_vm1, %v6951_v47 }
 0x2ef   :  { %v5738_v49 = vpop.f32.mrb[0].mxu1 }
 0x2f0   :  { %v6958_v50 = vadd.f32 %v5738_v49, %v5279_v48  ;;  %v267_v51 = vpop.f32.mrb[1].mxu1 }
 0x2f1   :  { %v6960_v52 = vadd.f32 %v5279_v48, %v267_v51 }
 0x2f3   :  { %5743 = vmatprep.mubr.msk.f32.mxu0 %vm49_vm0, %v6960_v52  ;;  %v6966_v53 = vpack.i.bf16 %v6958_v50, %v6960_v52 }
 0x2f5   :  { %6492 = vrot.lane.b32.xlu1 %v6966_v53, %s6823_s4  ;;  %6487 = vrot.lane.b32.xlu0 %v6966_v53, %s6824_s27 }
 0x2f9   :  { %479 = vrot.lane.b32.xlu1 %v6960_v52, %s6825_s28 }
 0x2fd   :  { %481 = vrot.lane.b32.xlu1 %v6958_v50, %s6825_s28 }
 0x367   :  { %v6493_v54 = vpop.permute.xlu1 %6492  ;;  %v6488_v55 = vpop.permute.xlu0 %6487 }
 0x368   :  { %v6495_v56 = vunpack.i.h.bf16 %v6493_v54  ;;  %v6494_v57 = vunpack.i.l.bf16 %v6493_v54  ;;  %v6490_v58 = vunpack.i.h.bf16 %v6488_v55  ;;  %v6489_v59 = vunpack.i.l.bf16 %v6488_v55 }
 0x36a   :  { %v6185_v61 = vpack.c.bf16 %v6490_v58, %v6489_v59  ;;  %v6195_v62 = vpack.c.bf16 %v6495_v56, %v6494_v57 }
 0x36b   :  { %v480_v63 = vpop.permute.xlu1 %479 }
 0x36c   :  { %6187 = vmatprep.subr.msk.bf16.mxu0 %vm6978_vm2, %v6185_v61 }
 0x36d   :  { %6190 = vmatpush3.bf16.xpose.msk.msra.mxu0 %vm6978_vm2, %v6185_v61 }
 0x36e   :  { %6197 = vmatprep.subr.msk.bf16.mxu0 %vm6978_vm2, %v6195_v62 }
 0x36f   :  { %v482_v0 = vpop.permute.xlu1 %481 }
 0x374   :  { %5744 = vmatmul.mubr.msk.f32.vlgmr.msra.gmra.mrb[2].mxu0 %vm49_vm0, %v6958_v50 }
 0x375   :  { %6200 = vmatpush3.bf16.xpose.msk.msra.mxu0 %vm6978_vm2, %v6195_v62  ;;  %5757 = vmatprep.mubr.msk.f32.mxu0 %vm49_vm0, %v480_v63 }
 0x37c   :  { %5758 = vmatmul.mubr.msk.f32.vlgmr.msra.gmra.mrb[4].mxu0 %vm49_vm0, %v482_v0 }
 0x447   :  { %v5745_v1 = vpop.f32.mrb[2].mxu0 }
 0x448   :  { %v366_v3 = vmul.f32 0.35355338, %v5745_v1  ;;  %v356_v4 = vpop.f32.mrb[3].mxu0 }
 0x449   :  { %v365_v6 = vmul.f32 0.35355338, %v356_v4 }
 0x44a   :  { %v368_v7 = vadd.f32 %v366_v3, %v6997_v2 }
 0x44b   :  { %v367_v8 = vadd.f32 %v365_v6, %v7002_v5 }
 0x44c   :  { %v373_v9 = vsel %vm369_vm3, %v368_v7, -inf }
 0x44d   :  { %374 = vmax.xlane.f32.xlu1 %v373_v9  ;;  %v370_v10 = vsel %vm369_vm3, %v367_v8, -inf }
 0x44e   :  { %371 = vmax.xlane.f32.xlu0 %v370_v10 }
 0x44f   :  { %v5759_v11 = vpop.f32.mrb[4].mxu0 }
 0x450   :  { %v561_v12 = vpop.f32.mrb[5].mxu0  ;;  %v571_v13 = vmul.f32 0.35355338, %v5759_v11 }
 0x451   :  { %v570_v14 = vmul.f32 0.35355338, %v561_v12 }
 0x452   :  { %v573_v17 = vadd.f32 %v571_v13, %v6997_v2 }
 0x453   :  { %v572_v15 = vadd.f32 %v570_v14, %v7002_v5 }
 0x454   :  { %v577_v18 = vsel %vm369_vm3, %v573_v17, -inf }
 0x455   :  { %v574_v16 = vsel %vm369_vm3, %v572_v15, -inf }
 0x456   :  { %575 = vmax.xlane.f32.xlu0 %v574_v16 }
 0x45a   :  { %578 = vmax.xlane.f32.xlu0 %v577_v18 }
 0x4da   :  { %v375_v19 = vpop.xlane.xlu1 %374 }
 0x4db   :  { %v377_v20 = vsub.f32 %v368_v7, %v375_v19  ;;  %v372_v21 = vpop.xlane.xlu0 %371 }
 0x4dc   :  { %v376_v22 = vsub.f32 %v367_v8, %v372_v21 }
 0x4dd   :  { %v380_v23 = vmul.f32 1.442695, %v377_v20 }
 0x4de   :  { %v378_v24 = vmul.f32 1.442695, %v376_v22 }
 0x4df   :  { %6660 = vpow2.f32 %v380_v23 }
 0x4e0   :  { %6662 = vpow2.f32 %v378_v24 }
 0x4e3   :  { %v576_v25 = vpop.xlane.xlu0 %575 }
 0x4e4   :  { %v580_v26 = vsub.f32 %v572_v15, %v576_v25 }
 0x4e6   :  { %v582_v27 = vmul.f32 1.442695, %v580_v26 }
 0x4e7   :  { %v579_v28 = vpop.xlane.xlu0 %578 }
 0x4e8   :  { %6664 = vpow2.f32 %v582_v27  ;;  %v581_v29 = vsub.f32 %v573_v17, %v579_v28 }
 0x4e9   :  { %v6661_v30 = vpop.eup %6660 }
 0x4ea   :  { %v6663_v31 = vpop.eup %6662  ;;  %v584_v32 = vmul.f32 1.442695, %v581_v29  ;;  %v385_v33 = vsel %vm369_vm3, %v6661_v30, 0.0 }
 0x4eb   :  { %386 = vadd.xlane.f32.xlu1 %v385_v33  ;;  %v382_v34 = vsel %vm369_vm3, %v6663_v31, 0.0 }
 0x4ec   :  { %6666 = vpow2.f32 %v584_v32  ;;  %383 = vadd.xlane.f32.xlu0 %v382_v34 }
 0x4f2   :  { %v6665_v35 = vpop.eup %6664 }
 0x4f3   :  { %v586_v36 = vsel %vm369_vm3, %v6665_v35, 0.0 }
 0x4f4   :  { %587 = vadd.xlane.f32.xlu0 %v586_v36 }
 0x4f6   :  { %v6667_v37 = vpop.eup %6666 }
 0x4f7   :  { %v589_v38 = vsel %vm369_vm3, %v6667_v37, 0.0 }
 0x4f8   :  { %590 = vadd.xlane.f32.xlu1 %v589_v38 }
 0x509   :  { %6502 = vrot.lane.b32.xlu1 %v6966_v53, %s6826_s13 }
 0x50a   :  { %6497 = vrot.lane.b32.xlu0 %v6966_v53, %s6827_s14 }
 0x50d   :  { %6507 = vrot.lane.b32.xlu1 %v6966_v53, %s6828_s15 }
 0x50e   :  { %683 = vrot.lane.b32.xlu0 %v6960_v52, %s6829_s16 }
 0x511   :  { %6512 = vrot.lane.b32.xlu1 %v6966_v53, %s6830_s17 }
 0x512   :  { %887 = vrot.lane.b32.xlu0 %v6960_v52, %s6831_s18 }
 0x515   :  { %685 = vrot.lane.b32.xlu1 %v6958_v50, %s6829_s16 }
 0x519   :  { %889 = vrot.lane.b32.xlu1 %v6958_v50, %s6831_s18 }
 0x578   :  { %v387_v40 = vpop.xlane.xlu1 %386 }
 0x579   :  { %v384_v39 = vpop.xlane.xlu0 %383 }
 0x57a   :  { %6668 = vrcp.f32 %v384_v39 }
 0x57b   :  { %6670 = vrcp.f32 %v387_v40 }
 0x581   :  { %v588_v41 = vpop.xlane.xlu0 %587 }
 0x582   :  { %6672 = vrcp.f32 %v588_v41 }
 0x584   :  { %v6669_v42 = vpop.eup %6668 }
 0x585   :  { %v591_v43 = vpop.xlane.xlu1 %590  ;;  %v6498_v45 = vpop.permute.xlu0 %6497  ;;  %v390_v46 = vmul.f32 %v6669_v42, %v6663_v31 }
 0x586   :  { %6674 = vrcp.f32 %v591_v43  ;;  %v6500_v48 = vunpack.i.h.bf16 %v6498_v45  ;;  %v6499_v49 = vunpack.i.l.bf16 %v6498_v45  ;;  %v6671_v52 = vpop.eup %6670 }
 0x587   :  { %5750 = vmatprep.mubr.msk.f32.mxu1 %vm369_vm3, %v390_v46  ;;  %v391_v58 = vmul.f32 %v6671_v52, %v6661_v30 }
 0x588   :  { %v6191_v51 = vpack.c.bf16 %v6500_v48, %v6499_v49 }
 0x589   :  { %v6503_v54 = vpop.permute.xlu1 %6502  ;;  %v684_v55 = vpop.permute.xlu0 %683 }
 0x58a   :  { %v6505_v50 = vunpack.i.h.bf16 %v6503_v54  ;;  %v6504_v56 = vunpack.i.l.bf16 %v6503_v54  ;;  %6192 = vmatprep.subr.bf16.mxu1 %v6191_v51 }
 0x58b   :  { %6194 = vmatpush3.bf16.msra.mxu1 %v6191_v51 }
 0x58c   :  { %v6673_v57 = vpop.eup %6672  ;;  %v6201_v59 = vpack.c.bf16 %v6505_v50, %v6504_v56 }
 0x58d   :  { %v6508_v61 = vpop.permute.xlu1 %6507  ;;  %v888_v62 = vpop.permute.xlu0 %887  ;;  %v594_v63 = vmul.f32 %v6673_v57, %v6665_v35 }
 0x58e   :  { %v6510_v0 = vunpack.i.h.bf16 %v6508_v61  ;;  %v6509_v1 = vunpack.i.l.bf16 %v6508_v61  ;;  %5751 = vmatmul.mubr.msk.f32.vlgmr.msra.gmra.mrb[2].mxu1 %vm369_vm3, %v391_v58  ;;  %6202 = vmatprep.subr.bf16.mxu1 %v6201_v59 }
 0x58f   :  { %5785 = vmatprep.mubr.msk.f32.mxu0 %vm49_vm0, %v888_v62  ;;  %6204 = vmatpush3.bf16.msra.mxu1 %v6201_v59 }
 0x590   :  { %v6675_v3 = vpop.eup %6674  ;;  %v6205_v4 = vpack.c.bf16 %v6510_v0, %v6509_v1  ;;  %5764 = vmatprep.mubr.msk.f32.mxu1 %vm369_vm3, %v594_v63 }
 0x591   :  { %v6513_v6 = vpop.permute.xlu1 %6512  ;;  %v595_v7 = vmul.f32 %v6675_v3, %v6667_v37 }
 0x592   :  { %v6515_v8 = vunpack.i.h.bf16 %v6513_v6  ;;  %v6514_v9 = vunpack.i.l.bf16 %v6513_v6  ;;  %6207 = vmatprep.subr.msk.bf16.mxu1 %vm6978_vm2, %v6205_v4 }
 0x593   :  { %5765 = vmatmul.mubr.msk.f32.vlgmr.msra.gmra.mrb[4].mxu1 %vm369_vm3, %v595_v7 }
 0x594   :  { %v6215_v10 = vpack.c.bf16 %v6515_v8, %v6514_v9  ;;  %5771 = vmatprep.mubr.msk.f32.mxu1 %vm49_vm0, %v684_v55 }
 0x595   :  { %v686_v11 = vpop.permute.xlu1 %685 }
 0x596   :  { %6217 = vmatprep.subr.msk.bf16.mxu0 %vm6978_vm2, %v6215_v10 }
 0x597   :  { %6220 = vmatpush3.bf16.xpose.msk.msra.mxu0 %vm6978_vm2, %v6215_v10 }
 0x598   :  { %6210 = vmatpush3.bf16.xpose.msk.msra.mxu1 %vm6978_vm2, %v6205_v4 }
 0x599   :  { %v890_v12 = vpop.permute.xlu1 %889 }
 0x59e   :  { %5786 = vmatmul.mubr.msk.f32.vlgmr.msra.gmra.mrb[6].mxu0 %vm49_vm0, %v890_v12  ;;  %v1122_v12 = vld [vmem:[%s7891_s7] sm:$0xff] }
 0x59f   :  { %5772 = vmatmul.mubr.msk.f32.vlgmr.msra.gmra.mrb[6].mxu1 %vm49_vm0, %v686_v11 }
 0x661   :  { %v7048_v13 = vpop.f32.mrb[2].mxu1 }
 0x662   :  { %v7050_v14 = vpop.f32.mrb[3].mxu1 }
 0x666   :  { %v5766_v15 = vpop.f32.mrb[4].mxu1 }
 0x667   :  { %v674_v16 = vpop.f32.mrb[5].mxu1 }
 0x671   :  { %v5787_v17 = vpop.f32.mrb[6].mxu0 }
 0x672   :  { %v5773_v18 = vpop.f32.mrb[6].mxu1  ;;  %v969_v19 = vpop.f32.mrb[7].mxu0  ;;  %v979_v27 = vmul.f32 0.35355338, %v5787_v17  ;;  %v1124_v17 = vld [vmem:[%s7891_s7 + $0x10] sm:$0xff] }
 0x673   :  { %v775_v20 = vmul.f32 0.35355338, %v5773_v18  ;;  %v765_v21 = vpop.f32.mrb[7].mxu1  ;;  %v978_v22 = vmul.f32 0.35355338, %v969_v19  ;;  %v1125_v18 = vld [vmem:[%s7891_s7 + $0x18] sm:$0xff] }
 0x674   :  { %v774_v23 = vmul.f32 0.35355338, %v765_v21  ;;  %v981_v31 = vadd.f32 %v979_v27, %v6997_v2  ;;  %v6229_v19 = vpack.c.bf16 %v1125_v18, %v1124_v17  ;;  %v179_v18 = vld [vmem:[%s7892_s1] sm:$0xff] }
 0x675   :  { %v777_v24 = vadd.f32 %v775_v20, %v6997_v2  ;;  %v980_v29 = vadd.f32 %v978_v22, %v7002_v5 }
 0x676   :  { %v776_v25 = vadd.f32 %v774_v23, %v7002_v5  ;;  %v985_v32 = vsel %vm369_vm3, %v981_v31, -inf }
 0x677   :  { %v781_v26 = vsel %vm369_vm3, %v777_v24, -inf  ;;  %v982_v30 = vsel %vm369_vm3, %v980_v29, -inf }
 0x678   :  { %782 = vmax.xlane.f32.xlu1 %v781_v26  ;;  %v778_v28 = vsel %vm369_vm3, %v776_v25, -inf }
 0x679   :  { %779 = vmax.xlane.f32.xlu0 %v778_v28 }
 0x67d   :  { %983 = vmax.xlane.f32.xlu0 %v982_v30 }
 0x681   :  { %986 = vmax.xlane.f32.xlu0 %v985_v32 }
 0x705   :  { %v783_v35 = vpop.xlane.xlu1 %782 }
 0x706   :  { %v780_v33 = vpop.xlane.xlu0 %779  ;;  %v785_v38 = vsub.f32 %v777_v24, %v783_v35 }
 0x707   :  { %v784_v34 = vsub.f32 %v776_v25, %v780_v33 }
 0x708   :  { %v788_v42 = vmul.f32 1.442695, %v785_v38 }
 0x709   :  { %v786_v39 = vmul.f32 1.442695, %v784_v34 }
 0x70a   :  { %v984_v36 = vpop.xlane.xlu0 %983 }
 0x70b   :  { %v988_v37 = vsub.f32 %v980_v29, %v984_v36 }
 0x70d   :  { %v990_v40 = vmul.f32 1.442695, %v988_v37 }
 0x70e   :  { %v987_v41 = vpop.xlane.xlu0 %986 }
 0x70f   :  { %6676 = vpow2.f32 %v990_v40  ;;  %v989_v5 = vsub.f32 %v981_v31, %v987_v41 }
 0x710   :  { %6678 = vpow2.f32 %v786_v39 }
 0x711   :  { %v992_v43 = vmul.f32 1.442695, %v989_v5 }
 0x713   :  { %6680 = vpow2.f32 %v992_v43  ;;  %v5314_v43 = vld [vmem:[%s7888_s6 + $0x38] sm:$0xff] }
 0x714   :  { %6682 = vpow2.f32 %v788_v42  ;;  %v5313_v42 = vld [vmem:[%s7888_s6 + $0x30] sm:$0xff] }
 0x719   :  { %v6677_v2 = vpop.eup %6676 }
 0x71a   :  { %v994_v45 = vsel %vm369_vm3, %v6677_v2, 0.0  ;;  %v6679_v46 = vpop.eup %6678 }
 0x71b   :  { %995 = vadd.xlane.f32.xlu0 %v994_v45  ;;  %v790_v49 = vsel %vm369_vm3, %v6679_v46, 0.0 }
 0x71d   :  { %v6681_v48 = vpop.eup %6680 }
 0x71e   :  { %v997_v51 = vsel %vm369_vm3, %v6681_v48, 0.0  ;;  %v6683_v52 = vpop.eup %6682 }
 0x71f   :  { %791 = vadd.xlane.f32.xlu0 %v790_v49  ;;  %998 = vadd.xlane.f32.xlu1 %v997_v51  ;;  %v793_v54 = vsel %vm369_vm3, %v6683_v52, 0.0 }
 0x723   :  { %794 = vadd.xlane.f32.xlu1 %v793_v54 }
 0x734   :  { %6522 = vrot.lane.b32.xlu1 %v6966_v53, %s7898_s19 }
 0x735   :  { %6517 = vrot.lane.b32.xlu0 %v6966_v53, %s6833_s20 }
 0x738   :  { %1093 = vrot.lane.b32.xlu1 %v674_v16, %s6834_s21 }
 0x73c   :  { %1095 = vrot.lane.b32.xlu1 %v5766_v15, %s6834_s21  ;;  %v1123_v15 = vld [vmem:[%s7891_s7 + $0x8] sm:$0xff] }
 0x73d   :  { %v6225_v16 = vpack.c.bf16 %v1123_v15, %v1122_v12 }
 0x7a8   :  { %v996_v55 = vpop.xlane.xlu0 %995 }
 0x7ac   :  { %v999_v50 = vpop.xlane.xlu1 %998  ;;  %v792_v56 = vpop.xlane.xlu0 %791 }
 0x7ad   :  { %6684 = vrcp.f32 %v792_v56  ;;  %v5312_v56 = vld [vmem:[%s7888_s6 + $0x28] sm:$0xff] }
 0x7ae   :  { %6686 = vrcp.f32 %v996_v55 }
 0x7b0   :  { %v795_v57 = vpop.xlane.xlu1 %794  ;;  %v6518_v58 = vpop.permute.xlu0 %6517 }
 0x7b1   :  { %6688 = vrcp.f32 %v795_v57  ;;  %v6520_v59 = vunpack.i.h.bf16 %v6518_v58  ;;  %v6519_v61 = vunpack.i.l.bf16 %v6518_v58  ;;  %v6837_v58 = vmov 0.0|0.0  }
 0x7b2   :  { %6690 = vrcp.f32 %v999_v50  ;;  %v5311_v50 = vld [vmem:[%s7888_s6 + $0x20] sm:$0xff] }
 0x7b3   :  { %v6211_v62 = vpack.c.bf16 %v6520_v59, %v6519_v61  ;;  %v6526_v57 = vpack.i.bf16 %v5312_v56, %v5311_v50  ;;  %v6233_v59 = vpack.c.bf16 %v5312_v56, %v5311_v50  ;;  %v6839_v61 = vmov 0.0  }
 0x7b4   :  { %v6523_v63 = vpop.permute.xlu1 %6522 }
 0x7b5   :  { %v6525_v0 = vunpack.i.h.bf16 %v6523_v63  ;;  %v6524_v53 = vunpack.i.l.bf16 %v6523_v63  ;;  %6212 = vmatprep.subr.bf16.mxu1 %v6211_v62  ;;  %6234 = vmatprep.subr.bf16.mxu0 %v6233_v59  ;;  %v7129_v63 = vld [vmem:[%s7887_s11 + $0x8] ss:$0 sm:$0xff] }
 0x7b6   :  { %6214 = vmatpush3.bf16.msra.mxu1 %v6211_v62  ;;  %6236 = vmatpush3.bf16.msra.mxu0 %v6233_v59  ;;  %v6237_v62 = vpack.c.bf16 %v5314_v43, %v5313_v42  ;;  %v7221_v59 = vld [vmem:[%s7893_s3 + $0x8] sm:$0xff] }
 0x7b7   :  { %v6221_v1 = vpack.c.bf16 %v6525_v0, %v6524_v53  ;;  %v6685_v3 = vpop.eup %6684 }
 0x7b8   :  { %v798_v4 = vmul.f32 %v6685_v3, %v6679_v46  ;;  %v6687_v6 = vpop.eup %6686  ;;  %v1094_v24 = vpop.permute.xlu1 %1093  ;;  %6238 = vmatprep.subr.bf16.mxu0 %v6237_v62 }
 0x7b9   :  { %6222 = vmatprep.subr.bf16.mxu1 %v6221_v1  ;;  %v1002_v10 = vmul.f32 %v6687_v6, %v6677_v2  ;;  %v1115_v28 = vsel %vm49_vm0, %v7050_v14, %v1094_v24  ;;  %v5306_v14 = vld [vmem:[%s7887_s11 + $0x5] ss:$0 sm:$0xff]  ;;  %v6531_v2 = vpack.i.bf16 %v5314_v43, %v5313_v42 }
 0x7ba   :  { %5778 = vmatprep.mubr.msk.f32.mxu1 %vm369_vm3, %v798_v4  ;;  %6240 = vmatpush3.bf16.msra.mxu0 %v6237_v62 }
 0x7bb   :  { %v6689_v7 = vpop.eup %6688 }
 0x7bc   :  { %v799_v8 = vmul.f32 %v6689_v7, %v6683_v52  ;;  %v6691_v9 = vpop.eup %6690  ;;  %v1096_v25 = vpop.permute.xlu1 %1095 }
 0x7bd   :  { %v1003_v11 = vmul.f32 %v6691_v9, %v6681_v48  ;;  %v1116_v30 = vsel %vm49_vm0, %v7048_v13, %v1096_v25 }
 0x7be   :  { %5779 = vmatmul.mubr.msk.f32.vlgmr.msra.gmra.mrb[8].mxu1 %vm369_vm3, %v799_v8 }
 0x7bf   :  { %6224 = vmatpush3.bf16.msra.mxu1 %v6221_v1  ;;  %5792 = vmatprep.mubr.msk.f32.mxu1 %vm369_vm3, %v1002_v10 }
 0x7c0   :  { %6226 = vmatprep.subr.bf16.mxu1 %v6225_v16 }
 0x7c2   :  { %5793 = vmatmul.mubr.msk.f32.vlgmr.msra.gmra.mrb[10].mxu1 %vm369_vm3, %v1003_v11 }
 0x7c3   :  { %6228 = vmatpush3.bf16.msra.mxu1 %v6225_v16 }
 0x7c4   :  { %6230 = vmatprep.subr.bf16.mxu1 %v6229_v19 }
 0x7c7   :  { %6232 = vmatpush3.bf16.msra.mxu1 %v6229_v19 }
 0x7c8   :  { %6241 = vmatprep.subr.bf16.mxu1 %v6837_v58 }
 0x891   :  { %v5780_v20 = vpop.f32.mrb[8].mxu1 }
 0x892   :  { %1103 = vrot.lane.b32.xlu1 %v5780_v20, %s7901_s30  ;;  %v878_v21 = vpop.f32.mrb[9].mxu1  ;;  %v5309_v20 = vld [vmem:[%s7887_s11 + $0x6] ss:$0 sm:$0xff] }
 0x893   :  { %1101 = vrot.lane.b32.xlu0 %v878_v21, %s7901_s30 }
 0x895   :  { %v5794_v22 = vpop.f32.mrb[10].mxu1 }
 0x896   :  { %1111 = vrot.lane.b32.xlu1 %v5794_v22, %s7899_s22  ;;  %v1082_v23 = vpop.f32.mrb[11].mxu1 }
 0x897   :  { %1109 = vrot.lane.b32.xlu0 %v1082_v23, %s7899_s22  ;;  %v180_v23 = vld [vmem:[%s7892_s1 + $0x8] sm:$0xff] }
 0x904   :  { %v1104_v26 = vpop.permute.xlu1 %1103 }
 0x905   :  { %v1102_v27 = vpop.permute.xlu0 %1101  ;;  %v1118_v33 = vsel %vm369_vm3, %v1116_v30, %v1104_v26  ;;  %v5310_v26 = vld [vmem:[%s7887_s11 + $0x7] ss:$0 sm:$0xff] }
 0x906   :  { %v1117_v31 = vsel %vm369_vm3, %v1115_v28, %v1102_v27 }
 0x908   :  { %v1112_v29 = vpop.permute.xlu1 %1111 }
 0x909   :  { %v1110_v32 = vpop.permute.xlu0 %1109  ;;  %v1121_v35 = vsel %vm1119_vm4, %v1118_v33, %v1112_v29  ;;  %v181_v29 = vld [vmem:[%s7892_s1 + $0x10] sm:$0xff] }
 0x90a   :  { %v1120_v34 = vsel %vm1119_vm4, %v1117_v31, %v1110_v32 }
 0x90b   :  { %5803 = vmatprep.mubr.msk.f32.mxu1 %vm133_vm1, %v1120_v34 }
 0x90c   :  { %5804 = vmatmul.mubr.msk.f32.vlgmr.msra.gmra.mrb[12].mxu1 %vm133_vm1, %v1121_v35 }
 0x90d   :  { %5825 = vmatprep.mubr.msk.f32.mxu1 %vm6838_vm5, %v6839_v61 }
 0x9df   :  { %v5805_v36 = vpop.f32.mrb[12].mxu1 }
 0x9e0   :  { %v1209_v37 = vadd.f32 %v5805_v36, %v5306_v14  ;;  %v1203_v13 = vpop.f32.mrb[13].mxu1 }
 0x9e1   :  { %v1204_v38 = vadd.f32 %v5306_v14, %v1203_v13 }
 0x9e2   :  { %v1213_v39 = vadd.f32 %v1209_v37, %v6951_v47 }
 0x9e3   :  { %v1212_v40 = vadd.f32 %v1204_v38, %v6944_v44 }
 0x9e4   :  { %v1217_v41 = vsel %vm133_vm1, %v1213_v39, 0.0 }
 0x9e5   :  { %1218 = vadd.xlane.f32.xlu1 %v1217_v41  ;;  %v1214_v5 = vsel %vm133_vm1, %v1212_v40, 0.0 }
 0x9e6   :  { %1215 = vadd.xlane.f32.xlu0 %v1214_v5 }
 0x9f6   :  { %6532 = vrot.lane.b32.xlu1 %v6531_v2, %s6824_s27 }
 0x9fa   :  { %1362 = vrot.lane.b32.xlu1 %v7129_v63, %s6824_s27 }
 0xa72   :  { %v1219_v47 = vpop.xlane.xlu1 %1218 }
 0xa73   :  { %v1221_v45 = vmul.f32 0.03125, %v1219_v47  ;;  %v1216_v44 = vpop.xlane.xlu0 %1215 }
 0xa74   :  { %v1220_v46 = vmul.f32 0.03125, %v1216_v44 }
 0xa75   :  { %v1223_v48 = vsub.f32 %v1213_v39, %v1221_v45 }
 0xa76   :  { %v1222_v49 = vsub.f32 %v1212_v40, %v1220_v46  ;;  %v6533_v6 = vpop.permute.xlu1 %6532 }
 0xa77   :  { %v1225_v51 = vmul.f32 %v1223_v48, %v1223_v48  ;;  %v6535_v9 = vunpack.i.h.bf16 %v6533_v6  ;;  %v6534_v12 = vunpack.i.l.bf16 %v6533_v6 }
 0xa78   :  { %v1224_v54 = vmul.f32 %v1222_v49, %v1222_v49 }
 0xa79   :  { %v1229_v52 = vsel %vm133_vm1, %v1225_v51, 0.0  ;;  %v6245_v16 = vpack.c.bf16 %v6535_v9, %v6534_v12 }
 0xa7a   :  { %1230 = vadd.xlane.f32.xlu0 %v1229_v52  ;;  %v1226_v55 = vsel %vm133_vm1, %v1224_v54, 0.0  ;;  %v1363_v32 = vpop.permute.xlu1 %1362 }
 0xa7e   :  { %1227 = vadd.xlane.f32.xlu0 %v1226_v55 }
 0xa94   :  { %6527 = vrot.lane.b32.xlu0 %v6526_v57, %s6824_s27 }
 0xb07   :  { %v1231_v0 = vpop.xlane.xlu0 %1230 }
 0xb08   :  { %v1233_v53 = vmul.f32 0.03125, %v1231_v0  ;;  %v7226_v0 = vld [vmem:[%s7893_s3] sm:$0xff] }
 0xb0a   :  { %v1235_v1 = vadd.f32 1e-05, %v1233_v53 }
 0xb0b   :  { %v1228_v3 = vpop.xlane.xlu0 %1227 }
 0xb0c   :  { %6692 = vrsqrt.f32 %v1235_v1  ;;  %v1232_v4 = vmul.f32 0.03125, %v1228_v3 }
 0xb0e   :  { %v1234_v7 = vadd.f32 1e-05, %v1232_v4 }
 0xb0f   :  { %v6528_v8 = vpop.permute.xlu0 %6527 }
 0xb10   :  { %6694 = vrsqrt.f32 %v1234_v7  ;;  %v6530_v10 = vunpack.i.h.bf16 %v6528_v8  ;;  %v6529_v11 = vunpack.i.l.bf16 %v6528_v8 }
 0xb12   :  { %v6242_v15 = vpack.c.bf16 %v6530_v10, %v6529_v11 }
 0xb14   :  { %6243 = vmatpush3.bf16.msra.mxu1 %v6242_v15 }
 0xb15   :  { %6244 = vmatprep.subr.bf16.mxu1 %v6837_v58 }
 0xb16   :  { %v6693_v17 = vpop.eup %6692 }
 0xb17   :  { %v1239_v19 = vmul.f32 %v6693_v17, %v1223_v48 }
 0xb18   :  { %6246 = vmatpush3.bf16.msra.mxu1 %v6245_v16 }
 0xb19   :  { %v1246_v24 = vmul.f32 %v5309_v20, %v1239_v19 }
 0xb1a   :  { %v6695_v21 = vpop.eup %6694 }
 0xb1b   :  { %5826 = vmatmul.mubr.msk.f32.vlgmr.msra.gmra.mrb[14].mxu1 %vm133_vm1, %v179_v18  ;;  %v1238_v22 = vmul.f32 %v6695_v21, %v1222_v49  ;;  %v7152_v28 = vadd.f32 %v5310_v26, %v1246_v24 }
 0xb1c   :  { %5828 = vmatprep.mubr.msk.f32.mxu1 %vm6838_vm5, %v6839_v61 }
 0xb1d   :  { %v1245_v25 = vmul.f32 %v5309_v20, %v1238_v22 }
 0xb1f   :  { %5829 = vmatmul.mubr.msk.f32.gmra.mrb[16].mxu1 %vm133_vm1, %v180_v23  ;;  %v7150_v27 = vadd.f32 %v5310_v26, %v1245_v25 }
 0xb20   :  { %5831 = vmatprep.mubr.msk.f32.mxu1 %vm6838_vm5, %v6839_v61 }
 0xb21   :  { %5814 = vmatprep.mubr.msk.f32.mxu0 %vm133_vm1, %v7150_v27 }
 0xb22   :  { %5815 = vmatmul.mubr.msk.f32.vlgmr.msra.gmra.mrb[8].mxu0 %vm133_vm1, %v7152_v28 }
 0xb23   :  { %5832 = vmatmul.mubr.msk.f32.gmra.mrb[18].mxu1 %vm133_vm1, %v181_v29 }
 0xbee   :  { %v1440_v30 = vpop.f32.mrb[14].mxu1 }
 0xbef   :  { %v5827_v31 = vpop.f32.mrb[15].mxu1  ;;  %v1441_v34 = vadd.f32 %v1440_v30, %v1363_v32 }
 0xbf2   :  { %v1445_v33 = vpop.f32.mrb[16].mxu1 }
 0xbf3   :  { %v1446_v35 = vadd.f32 %v1445_v33, %v1363_v32  ;;  %v5830_v14 = vpop.f32.mrb[17].mxu1 }
 0xbf5   :  { %v5816_v36 = vpop.f32.mrb[8].mxu0  ;;  %v7164_v37 = vpack.i.bf16 %v1446_v35, %v1441_v34  ;;  %v6247_v13 = vpack.c.bf16 %v1446_v35, %v1441_v34 }
 0xbf6   :  { %v1336_v38 = vpop.f32.mrb[9].mxu0  ;;  %v1450_v39 = vpop.f32.mrb[18].mxu1  ;;  %v7186_v42 = vadd.f32 %v5816_v36, %v7129_v63 }
 0xbf7   :  { %v7167_v40 = vadd.f32 %v7129_v63, %v1336_v38  ;;  %v7169_v41 = vadd.f32 %v1450_v39, %v1363_v32  ;;  %6537 = vrot.lane.b32.xlu1 %v7164_v37, %s6825_s28  ;;  %6249 = vmatprep.subr.msk.bf16.mxu0 %vm6978_vm2, %v6247_v13  ;;  %v5833_v5 = vpop.f32.mrb[19].mxu1 }
 0xbf8   :  { %6252 = vmatpush3.bf16.xpose.msk.msra.mxu0 %vm6978_vm2, %v6247_v13 }
 0xbf9   :  { %5840 = vmatprep.mubr.msk.f32.mxu0 %vm49_vm0, %v7167_v40  ;;  %1668 = vrot.lane.b32.xlu0 %v7169_v41, %s6825_s28 }
 0xbfa   :  { %5838 = vmatprep.subr.msk.mxu0 %vm49_vm0, %v7169_v41 }
 0xbfb   :  { %6542 = vrot.lane.b32.xlu1 %v7164_v37, %s6829_s16 }
 0xbfd   :  { %1660 = vrot.lane.b32.xlu0 %v7167_v40, %s6825_s28 }
 0xbff   :  { %1662 = vrot.lane.b32.xlu1 %v7186_v42, %s6825_s28 }
 0xc00   :  { %5839 = vmatpush3.xpose.msk.msra.mxu0 %vm49_vm0, %v7169_v41 }
 0xc01   :  { %1879 = vrot.lane.b32.xlu0 %v7169_v41, %s6829_s16 }
 0xc03   :  { %1871 = vrot.lane.b32.xlu1 %v7167_v40, %s6829_s16  ;;  %5841 = vmatmul.mubr.msk.f32.vlgmr.msra.gmra.mrb[10].mxu0 %vm49_vm0, %v7186_v42 }
 0xc05   :  { %1873 = vrot.lane.b32.xlu0 %v7186_v42, %s6829_s16 }
 0xc69   :  { %v6538_v43 = vpop.permute.xlu1 %6537 }
 0xc6a   :  { %v6540_v2 = vunpack.i.h.bf16 %v6538_v43  ;;  %v6539_v47 = vunpack.i.l.bf16 %v6538_v43 }
 0xc6b   :  { %v1669_v45 = vpop.permute.xlu0 %1668 }
 0xc6c   :  { %v6257_v44 = vpack.c.bf16 %v6540_v2, %v6539_v47 }
 0xc6d   :  { %v6543_v46 = vpop.permute.xlu1 %6542 }
 0xc6e   :  { %6259 = vmatprep.subr.msk.bf16.mxu1 %vm6978_vm2, %v6257_v44  ;;  %v6545_v49 = vunpack.i.h.bf16 %v6543_v46  ;;  %v6544_v51 = vunpack.i.l.bf16 %v6543_v46 }
 0xc6f   :  { %6262 = vmatpush3.bf16.xpose.msk.msra.mxu1 %vm6978_vm2, %v6257_v44  ;;  %v1661_v48 = vpop.permute.xlu0 %1660 }
 0xc70   :  { %5856 = vmatprep.subr.msk.mxu1 %vm49_vm0, %v1669_v45  ;;  %5858 = vmatprep.mubr.msk.f32.mxu1 %vm49_vm0, %v1661_v48  ;;  %v6267_v54 = vpack.c.bf16 %v6545_v49, %v6544_v51 }
 0xc71   :  { %v1663_v52 = vpop.permute.xlu1 %1662 }
 0xc73   :  { %v1880_v50 = vpop.permute.xlu0 %1879 }
 0xc75   :  { %v1872_v55 = vpop.permute.xlu1 %1871 }
 0xc77   :  { %5857 = vmatpush3.xpose.msk.msra.mxu1 %vm49_vm0, %v1669_v45  ;;  %v1874_v56 = vpop.permute.xlu0 %1873 }
 0xc78   :  { %6269 = vmatprep.subr.msk.bf16.mxu1 %vm6978_vm2, %v6267_v54 }
 0xc7a   :  { %5859 = vmatmul.mubr.msk.f32.vlgmr.msra.gmra.mrb[20].mxu1 %vm49_vm0, %v1663_v52 }
 0xc7b   :  { %6272 = vmatpush3.bf16.xpose.msk.msra.mxu1 %vm6978_vm2, %v6267_v54  ;;  %5876 = vmatprep.mubr.msk.f32.mxu1 %vm49_vm0, %v1872_v55 }
 0xc7c   :  { %5874 = vmatprep.subr.msk.mxu1 %vm49_vm0, %v1880_v50 }
 0xc83   :  { %5875 = vmatpush3.xpose.msk.msra.mxu1 %vm49_vm0, %v1880_v50 }
 0xc86   :  { %5877 = vmatmul.mubr.msk.f32.vlgmr.msra.gmra.mrb[22].mxu1 %vm49_vm0, %v1874_v56 }
 0xcd6   :  { %v5842_v57 = vpop.f32.mrb[10].mxu0 }
 0xcd7   :  { %v1545_v62 = vmul.f32 0.35355338, %v5842_v57  ;;  %v1535_v63 = vpop.f32.mrb[11].mxu0 }
 0xcd8   :  { %v1544_v53 = vmul.f32 0.35355338, %v1535_v63 }
 0xcd9   :  { %v1547_v1 = vadd.f32 %v1545_v62, %v7221_v59 }
 0xcda   :  { %v1546_v3 = vadd.f32 %v1544_v53, %v7226_v0 }
 0xcdb   :  { %v1551_v4 = vsel %vm1119_vm4, %v1547_v1, -inf }
 0xcdc   :  { %1552 = vmax.xlane.f32.xlu0 %v1551_v4  ;;  %v1548_v6 = vsel %vm1119_vm4, %v1546_v3, -inf }
 0xcdd   :  { %1549 = vmax.xlane.f32.xlu1 %v1548_v6 }
 0xd4d   :  { %v5860_v7 = vpop.f32.mrb[20].mxu1 }
 0xd4e   :  { %v1746_v8 = vpop.f32.mrb[21].mxu1  ;;  %v1756_v9 = vmul.f32 0.35355338, %v5860_v7 }
 0xd4f   :  { %v1755_v10 = vmul.f32 0.35355338, %v1746_v8 }
 0xd50   :  { %v1758_v15 = vadd.f32 %v1756_v9, %v7221_v59 }
 0xd51   :  { %v1757_v11 = vadd.f32 %v1755_v10, %v7226_v0 }
 0xd52   :  { %v1762_v16 = vsel %vm1119_vm4, %v1758_v15, -inf }
 0xd53   :  { %v1759_v12 = vsel %vm1119_vm4, %v1757_v11, -inf }
 0xd54   :  { %1760 = vmax.xlane.f32.xlu0 %v1759_v12 }
 0xd58   :  { %1763 = vmax.xlane.f32.xlu0 %v1762_v16 }
 0xd59   :  { %v5878_v17 = vpop.f32.mrb[22].mxu1 }
 0xd5a   :  { %v1967_v18 = vmul.f32 0.35355338, %v5878_v17  ;;  %v1957_v19 = vpop.f32.mrb[23].mxu1 }
 0xd5b   :  { %v1966_v20 = vmul.f32 0.35355338, %v1957_v19 }
 0xd5c   :  { %v1969_v21 = vadd.f32 %v1967_v18, %v7221_v59 }
 0xd5d   :  { %v1968_v22 = vadd.f32 %v1966_v20, %v7226_v0 }
 0xd5e   :  { %v1973_v23 = vsel %vm1119_vm4, %v1969_v21, -inf }
 0xd5f   :  { %1974 = vmax.xlane.f32.xlu0 %v1973_v23  ;;  %v1970_v24 = vsel %vm1119_vm4, %v1968_v22, -inf }
 0xd60   :  { %1971 = vmax.xlane.f32.xlu1 %v1970_v24 }
 0xd69   :  { %v1553_v25 = vpop.xlane.xlu0 %1552 }
 0xd6a   :  { %v1555_v26 = vsub.f32 %v1547_v1, %v1553_v25  ;;  %v1550_v30 = vpop.xlane.xlu1 %1549 }
 0xd6b   :  { %v1554_v31 = vsub.f32 %v1546_v3, %v1550_v30 }
 0xd6c   :  { %v1558_v29 = vmul.f32 1.442695, %v1555_v26 }
 0xd6d   :  { %v1556_v32 = vmul.f32 1.442695, %v1554_v31 }
 0xd6e   :  { %6696 = vpow2.f32 %v1558_v29 }
 0xd6f   :  { %6698 = vpow2.f32 %v1556_v32 }
 0xd71   :  { %6547 = vrot.lane.b32.xlu1 %v7164_v37, %s6824_s27 }
 0xd75   :  { %6552 = vrot.lane.b32.xlu1 %v7164_v37, %s6823_s4  ;;  %1574 = vrot.lane.b32.xlu0 %v7169_v41, %s6824_s27 }
 0xd78   :  { %v7250_v33 = vpop.eup %6696 }
 0xd79   :  { %1785 = vrot.lane.b32.xlu1 %v7169_v41, %s6823_s4  ;;  %v1563_v34 = vsel %vm1119_vm4, %v7250_v33, 0.0  ;;  %v6699_v35 = vpop.eup %6698 }
 0xd7a   :  { %v1560_v14 = vsel %vm1119_vm4, %v6699_v35, 0.0 }
 0xd7d   :  { %6557 = vrot.lane.b32.xlu1 %v7164_v37, %s6828_s15 }
 0xd94   :  { %1564 = vadd.xlane.f32.xlu0 %v1563_v34 }
 0xda1   :  { %1561 = vadd.xlane.f32.xlu1 %v1560_v14 }
 0xde1   :  { %v1761_v36 = vpop.xlane.xlu0 %1760 }
 0xde2   :  { %v1765_v13 = vsub.f32 %v1757_v11, %v1761_v36 }
 0xde4   :  { %v1767_v38 = vmul.f32 1.442695, %v1765_v13 }
 0xde5   :  { %v1764_v39 = vpop.xlane.xlu0 %1763 }
 0xde6   :  { %6700 = vpow2.f32 %v1767_v38  ;;  %v1766_v5 = vsub.f32 %v1758_v15, %v1764_v39 }
 0xde8   :  { %v1769_v43 = vmul.f32 1.442695, %v1766_v5 }
 0xdea   :  { %6702 = vpow2.f32 %v1769_v43 }
 0xdec   :  { %v1975_v2 = vpop.xlane.xlu0 %1974 }
 0xded   :  { %v1977_v47 = vsub.f32 %v1969_v21, %v1975_v2  ;;  %v1972_v45 = vpop.xlane.xlu1 %1971 }
 0xdee   :  { %v1976_v44 = vsub.f32 %v1968_v22, %v1972_v45 }
 0xdef   :  { %v1980_v46 = vmul.f32 1.442695, %v1977_v47 }
 0xdf0   :  { %v6701_v48 = vpop.eup %6700  ;;  %v1978_v49 = vmul.f32 1.442695, %v1976_v44  ;;  %v1575_v1 = vpop.permute.xlu0 %1574 }
 0xdf1   :  { %6704 = vpow2.f32 %v1980_v46  ;;  %v6548_v51 = vpop.permute.xlu1 %6547  ;;  %v1771_v52 = vsel %vm1119_vm4, %v6701_v48, 0.0 }
 0xdf2   :  { %6706 = vpow2.f32 %v1978_v49  ;;  %v6550_v54 = vunpack.i.h.bf16 %v6548_v51  ;;  %v6549_v55 = vunpack.i.l.bf16 %v6548_v51  ;;  %1772 = vadd.xlane.f32.xlu1 %v1771_v52 }
 0xdf4   :  { %v6703_v50 = vpop.eup %6702  ;;  %v6253_v56 = vpack.c.bf16 %v6550_v54, %v6549_v55 }
 0xdf5   :  { %v6553_v57 = vpop.permute.xlu1 %6552  ;;  %v1774_v62 = vsel %vm1119_vm4, %v6703_v50, 0.0 }
 0xdf6   :  { %v6555_v63 = vunpack.i.h.bf16 %v6553_v57  ;;  %v6554_v53 = vunpack.i.l.bf16 %v6553_v57  ;;  %6254 = vmatprep.subr.bf16.mxu0 %v6253_v56  ;;  %1775 = vadd.xlane.f32.xlu0 %v1774_v62 }
 0xdf7   :  { %6256 = vmatpush3.bf16.msra.mxu0 %v6253_v56 }
 0xdf8   :  { %5847 = vmatprep.subr.mxu0 %v1575_v1  ;;  %v6263_v3 = vpack.c.bf16 %v6555_v63, %v6554_v53 }
 0xdf9   :  { %v1786_v9 = vpop.permute.xlu1 %1785 }
 0xdfb   :  { %v6705_v4 = vpop.eup %6704  ;;  %5848 = vmatpush3.msra.mxu0 %v1575_v1 }
 0xdfc   :  { %v6707_v6 = vpop.eup %6706  ;;  %6264 = vmatprep.subr.bf16.mxu0 %v6263_v3  ;;  %v1985_v7 = vsel %vm1119_vm4, %v6705_v4, 0.0 }
 0xdfd   :  { %1986 = vadd.xlane.f32.xlu0 %v1985_v7  ;;  %v1982_v8 = vsel %vm1119_vm4, %v6707_v6, 0.0  ;;  %v6558_v10 = vpop.permute.xlu1 %6557 }
 0xdfe   :  { %1983 = vadd.xlane.f32.xlu1 %v1982_v8  ;;  %v6560_v18 = vunpack.i.h.bf16 %v6558_v10  ;;  %v6559_v19 = vunpack.i.l.bf16 %v6558_v10 }
 0xe0f   :  { %6562 = vrot.lane.b32.xlu1 %v7164_v37, %s6831_s18 }
 0xe13   :  { %2082 = vrot.lane.b32.xlu1 %v7167_v40, %s6831_s18  ;;  %1996 = vrot.lane.b32.xlu0 %v7169_v41, %s6828_s15 }
 0xe17   :  { %2090 = vrot.lane.b32.xlu0 %v7169_v41, %s6831_s18 }
 0xe1b   :  { %2084 = vrot.lane.b32.xlu0 %v7186_v42, %s6831_s18  ;;  %v6273_v42 = vpack.c.bf16 %v6560_v18, %v6559_v19  ;;  %v5350_v18 = vld [vmem:[%s7891_s7 + $0x28] sm:$0xff]  ;;  %v5351_v19 = vld [vmem:[%s7891_s7 + $0x30] sm:$0xff] }
 0xe21   :  { %v1565_v11 = vpop.xlane.xlu0 %1564 }
 0xe22   :  { %6708 = vrcp.f32 %v1565_v11 }
 0xe2c   :  { %v6709_v15 = vpop.eup %6708 }
 0xe2d   :  { %v1569_v40 = vmul.f32 %v6709_v15, %v7250_v33 }
 0xe2e   :  { %v1562_v12 = vpop.xlane.xlu1 %1561 }
 0xe2f   :  { %6710 = vrcp.f32 %v1562_v12 }
 0xe39   :  { %v6711_v16 = vpop.eup %6710 }
 0xe3a   :  { %v1568_v17 = vmul.f32 %v6711_v16, %v6699_v35 }
 0xe3c   :  { %5849 = vmatprep.mubr.msk.f32.mxu0 %vm1119_vm4, %v1568_v17 }
 0xe3d   :  { %5850 = vmatmul.mubr.msk.f32.vlgmr.msra.gmra.mrb[12].mxu0 %vm1119_vm4, %v1569_v40 }
 0xe3e   :  { %6266 = vmatpush3.bf16.msra.mxu0 %v6263_v3 }
 0xe3f   :  { %5865 = vmatprep.subr.mxu0 %v1786_v9 }
 0xe42   :  { %5866 = vmatpush3.msra.mxu0 %v1786_v9 }
 0xe43   :  { %6274 = vmatprep.subr.bf16.mxu0 %v6273_v42 }
 0xe7f   :  { %v1773_v20 = vpop.xlane.xlu1 %1772 }
 0xe80   :  { %6712 = vrcp.f32 %v1773_v20  ;;  %v5352_v20 = vld [vmem:[%s7891_s7 + $0x38] sm:$0xff] }
 0xe83   :  { %v1776_v21 = vpop.xlane.xlu0 %1775 }
 0xe84   :  { %6714 = vrcp.f32 %v1776_v21  ;;  %v6291_v21 = vpack.c.bf16 %v5352_v20, %v5351_v19  ;;  %v5357_v19 = vld [vmem:[%s7887_s11 + $0xb] ss:$0 sm:$0xff] }
 0xe8a   :  { %v6713_v22 = vpop.eup %6712  ;;  %v1987_v23 = vpop.xlane.xlu0 %1986 }
 0xe8b   :  { %6716 = vrcp.f32 %v1987_v23  ;;  %v1984_v24 = vpop.xlane.xlu1 %1983  ;;  %v1779_v25 = vmul.f32 %v6713_v22, %v6701_v48 }
 0xe8c   :  { %6718 = vrcp.f32 %v1984_v24 }
 0xe8d   :  { %5867 = vmatprep.mubr.msk.f32.mxu0 %vm1119_vm4, %v1779_v25 }
 0xe8e   :  { %v6715_v26 = vpop.eup %6714  ;;  %v1997_v33 = vpop.permute.xlu0 %1996 }
 0xe8f   :  { %v6563_v29 = vpop.permute.xlu1 %6562  ;;  %v1780_v30 = vmul.f32 %v6715_v26, %v6703_v50 }
 0xe90   :  { %v6565_v31 = vunpack.i.h.bf16 %v6563_v29  ;;  %v6564_v32 = vunpack.i.l.bf16 %v6563_v29 }
 0xe91   :  { %5868 = vmatmul.mubr.msk.f32.vlgmr.msra.gmra.mrb[14].mxu0 %vm1119_vm4, %v1780_v30 }
 0xe92   :  { %6276 = vmatpush3.bf16.msra.mxu0 %v6273_v42  ;;  %v6277_v35 = vpack.c.bf16 %v6565_v31, %v6564_v32  ;;  %v2091_v39 = vpop.permute.xlu0 %2090 }
 0xe93   :  { %5883 = vmatprep.subr.mxu0 %v1997_v33  ;;  %v2083_v38 = vpop.permute.xlu1 %2082 }
 0xe95   :  { %v6717_v34 = vpop.eup %6716 }
 0xe96   :  { %v6719_v14 = vpop.eup %6718  ;;  %5884 = vmatpush3.msra.mxu0 %v1997_v33  ;;  %v1991_v13 = vmul.f32 %v6717_v34, %v6705_v4  ;;  %v2085_v5 = vpop.permute.xlu0 %2084 }
 0xe97   :  { %6279 = vmatprep.subr.msk.bf16.mxu0 %vm6978_vm2, %v6277_v35  ;;  %v1990_v36 = vmul.f32 %v6719_v14, %v6707_v6 }
 0xe99   :  { %5885 = vmatprep.mubr.msk.f32.mxu0 %vm1119_vm4, %v1990_v36 }
 0xe9a   :  { %5886 = vmatmul.mubr.msk.f32.vlgmr.msra.gmra.mrb[16].mxu0 %vm1119_vm4, %v1991_v13  ;;  %v5353_v13 = vld [vmem:[%s7887_s11 + $0x9] ss:$0 sm:$0xff] }
 0xe9b   :  { %5894 = vmatprep.mubr.msk.f32.mxu0 %vm49_vm0, %v2083_v38 }
 0xe9d   :  { %6282 = vmatpush3.bf16.xpose.msk.msra.mxu0 %vm6978_vm2, %v6277_v35 }
 0xe9e   :  { %5892 = vmatprep.subr.msk.mxu0 %vm49_vm0, %v2091_v39 }
 0xea5   :  { %5893 = vmatpush3.xpose.msk.msra.mxu0 %vm49_vm0, %v2091_v39 }
 0xea8   :  { %5895 = vmatmul.mubr.msk.f32.vlgmr.msra.gmra.mrb[18].mxu0 %vm49_vm0, %v2085_v5 }
 0xf10   :  { %v7284_v43 = vpop.f32.mrb[12].mxu0 }
 0xf11   :  { %v7286_v2 = vpop.f32.mrb[13].mxu0 }
 0xf64   :  { %v5869_v47 = vpop.f32.mrb[14].mxu0 }
 0xf65   :  { %v1862_v45 = vpop.f32.mrb[15].mxu0 }
 0xf6d   :  { %v5887_v44 = vpop.f32.mrb[16].mxu0 }
 0xf6e   :  { %v2073_v46 = vpop.f32.mrb[17].mxu0 }
 0xf7b   :  { %v5896_v48 = vpop.f32.mrb[18].mxu0 }
 0xf7c   :  { %v2178_v49 = vmul.f32 0.35355338, %v5896_v48  ;;  %v2168_v51 = vpop.f32.mrb[19].mxu0 }
 0xf7d   :  { %v2177_v52 = vmul.f32 0.35355338, %v2168_v51 }
 0xf7e   :  { %v2180_v54 = vadd.f32 %v2178_v49, %v7221_v59 }
 0xf7f   :  { %v2179_v55 = vadd.f32 %v2177_v52, %v7226_v0 }
 0xf80   :  { %v2184_v50 = vsel %vm1119_vm4, %v2180_v54, -inf }
 0xf81   :  { %2185 = vmax.xlane.f32.xlu0 %v2184_v50  ;;  %v2181_v56 = vsel %vm1119_vm4, %v2179_v55, -inf }
 0xf82   :  { %2182 = vmax.xlane.f32.xlu1 %v2181_v56 }
 0xf93   :  { %6567 = vrot.lane.b32.xlu1 %v7164_v37, %s6830_s17 }
 0xf97   :  { %2295 = vrot.lane.b32.xlu1 %v1862_v45, %s6834_s21 }
 0xf9b   :  { %2297 = vrot.lane.b32.xlu1 %v5869_v47, %s6834_s21 }
 0xf9f   :  { %2303 = vrot.lane.b32.xlu1 %v2073_v46, %s7901_s30 }
0x100e   :  { %v2186_v57 = vpop.xlane.xlu0 %2185 }
0x100f   :  { %v2188_v62 = vsub.f32 %v2180_v54, %v2186_v57  ;;  %v2183_v59 = vpop.xlane.xlu1 %2182  ;;  %v2457_v57 = vld [vmem:[%s7894_s8 + $0x8] sm:$0xff] }
0x1010   :  { %v2187_v63 = vsub.f32 %v2179_v55, %v2183_v59  ;;  %v2458_v59 = vld [vmem:[%s7894_s8 + $0x10] sm:$0xff] }
0x1011   :  { %v2191_v0 = vmul.f32 1.442695, %v2188_v62 }
0x1012   :  { %v2189_v53 = vmul.f32 1.442695, %v2187_v63  ;;  %v2459_v63 = vld [vmem:[%s7894_s8 + $0x18] sm:$0xff] }
0x1013   :  { %6720 = vpow2.f32 %v2191_v0  ;;  %v6568_v1 = vpop.permute.xlu1 %6567  ;;  %v6299_v0 = vpack.c.bf16 %v2459_v63, %v2458_v59  ;;  %v5369_v59 = vld [vmem:[%s7888_s6 + $0x58] sm:$0xff] }
0x1014   :  { %v6570_v3 = vunpack.i.h.bf16 %v6568_v1  ;;  %v6569_v4 = vunpack.i.l.bf16 %v6568_v1  ;;  %6722 = vpow2.f32 %v2189_v53  ;;  %v2548_v53 = vld [vmem:[%s7895_s9] sm:$0xff]  ;;  %v2549_v1 = vld [vmem:[%s7895_s9 + $0x8] sm:$0xff] }
0x1016   :  { %v6283_v6 = vpack.c.bf16 %v6570_v3, %v6569_v4  ;;  %v2550_v3 = vld [vmem:[%s7895_s9 + $0x10] sm:$0xff]  ;;  %v6303_v4 = vpack.c.bf16 %v2549_v1, %v2548_v53 }
0x1017   :  { %v2296_v24 = vpop.permute.xlu1 %2295 }
0x1018   :  { %6284 = vmatprep.subr.bf16.mxu1 %v6283_v6  ;;  %v2317_v30 = vsel %vm49_vm0, %v7286_v2, %v2296_v24 }
0x1019   :  { %6286 = vmatpush3.bf16.msra.mxu1 %v6283_v6  ;;  %v2551_v6 = vld [vmem:[%s7895_s9 + $0x18] sm:$0xff] }
0x101b   :  { %v2298_v25 = vpop.permute.xlu1 %2297 }
0x101c   :  { %v2318_v32 = vsel %vm49_vm0, %v7284_v43, %v2298_v25  ;;  %v2554_v25 = vld [vmem:[%s7895_s9 + $0x30] sm:$0xff] }
0x101d   :  { %v6721_v37 = vpop.eup %6720 }
0x101e   :  { %v2196_v7 = vsel %vm1119_vm4, %v6721_v37, 0.0  ;;  %v6723_v8 = vpop.eup %6722 }
0x101f   :  { %2197 = vadd.xlane.f32.xlu0 %v2196_v7  ;;  %v2193_v9 = vsel %vm1119_vm4, %v6723_v8, 0.0  ;;  %v2304_v29 = vpop.permute.xlu1 %2303  ;;  %v2552_v7 = vld [vmem:[%s7895_s9 + $0x20] sm:$0xff] }
0x1020   :  { %v2319_v33 = vsel %vm369_vm3, %v2317_v30, %v2304_v29  ;;  %v5358_v30 = vld [vmem:[%s7887_s11 + $0xc] ss:$0 sm:$0xff] }
0x1023   :  { %2194 = vadd.xlane.f32.xlu0 %v2193_v9 }
0x1039   :  { %2207 = vrot.lane.b32.xlu0 %v7169_v41, %s6830_s17  ;;  %v5349_v41 = vld [vmem:[%s7891_s7 + $0x20] sm:$0xff] }
0x103a   :  { %v6287_v42 = vpack.c.bf16 %v5350_v18, %v5349_v41  ;;  %v5356_v41 = vld [vmem:[%s7887_s11 + $0xa] ss:$0 sm:$0xff] }
0x103d   :  { %2305 = vrot.lane.b32.xlu0 %v5887_v44, %s7901_s30 }
0x10ac   :  { %v2198_v10 = vpop.xlane.xlu0 %2197 }
0x10ad   :  { %6724 = vrcp.f32 %v2198_v10 }
0x10b0   :  { %v2195_v11 = vpop.xlane.xlu0 %2194 }
0x10b1   :  { %6726 = vrcp.f32 %v2195_v11 }
0x10b4   :  { %v2208_v12 = vpop.permute.xlu0 %2207 }
0x10b5   :  { %5901 = vmatprep.subr.mxu1 %v2208_v12 }
0x10b6   :  { %5902 = vmatpush3.msra.mxu1 %v2208_v12 }
0x10b7   :  { %v6725_v15 = vpop.eup %6724  ;;  %6288 = vmatprep.subr.bf16.mxu1 %v6287_v42 }
0x10b8   :  { %v2202_v40 = vmul.f32 %v6725_v15, %v6721_v37  ;;  %v2306_v26 = vpop.permute.xlu0 %2305  ;;  %v6307_v37 = vpack.c.bf16 %v2551_v6, %v2550_v3 }
0x10b9   :  { %v2320_v35 = vsel %vm369_vm3, %v2318_v32, %v2306_v26  ;;  %v2555_v26 = vld [vmem:[%s7895_s9 + $0x38] sm:$0xff] }
0x10ba   :  { %v6315_v29 = vpack.c.bf16 %v2555_v26, %v2554_v25 }
0x10bb   :  { %v6727_v16 = vpop.eup %6726 }
0x10bc   :  { %v2201_v17 = vmul.f32 %v6727_v16, %v6723_v8  ;;  %v2553_v8 = vld [vmem:[%s7895_s9 + $0x28] sm:$0xff] }
0x10bd   :  { %v6311_v9 = vpack.c.bf16 %v2553_v8, %v2552_v7  ;;  %v5364_v7 = vld [vmem:[%s7887_s11 + $0xe] ss:$0 sm:$0xff] }
0x10be   :  { %5903 = vmatprep.mubr.msk.f32.mxu1 %vm1119_vm4, %v2201_v17 }
0x10bf   :  { %5904 = vmatmul.mubr.msk.f32.vlgmr.msra.gmra.mrb[24].mxu1 %vm1119_vm4, %v2202_v40 }
0x10c0   :  { %6290 = vmatpush3.bf16.msra.mxu1 %v6287_v42 }
0x10c1   :  { %6292 = vmatprep.subr.bf16.mxu1 %v6291_v21 }
0x10c4   :  { %6294 = vmatpush3.bf16.msra.mxu1 %v6291_v21 }
0x10c5   :  { %6304 = vmatprep.subr.bf16.mxu1 %v6303_v4 }
0x1192   :  { %v5905_v22 = vpop.f32.mrb[24].mxu1 }
0x1193   :  { %2313 = vrot.lane.b32.xlu0 %v5905_v22, %s7899_s22  ;;  %v2284_v23 = vpop.f32.mrb[25].mxu1 }
0x1194   :  { %2311 = vrot.lane.b32.xlu1 %v2284_v23, %s7899_s22 }
0x1205   :  { %v2314_v31 = vpop.permute.xlu0 %2313 }
0x1206   :  { %v2312_v34 = vpop.permute.xlu1 %2311  ;;  %v2322_v36 = vsel %vm1119_vm4, %v2320_v35, %v2314_v31 }
0x1207   :  { %v2321_v14 = vsel %vm1119_vm4, %v2319_v33, %v2312_v34 }
0x1208   :  { %5914 = vmatprep.mubr.msk.f32.mxu1 %vm133_vm1, %v2321_v14 }
0x1209   :  { %5915 = vmatmul.mubr.msk.f32.vlgmr.msra.gmra.mrb[26].mxu1 %vm133_vm1, %v2322_v36  ;;  %v5361_v36 = vld [vmem:[%s7887_s11 + $0xd] ss:$0 sm:$0xff] }
0x120a   :  { %6306 = vmatpush3.bf16.msra.mxu1 %v6303_v4 }
0x120b   :  { %6308 = vmatprep.subr.bf16.mxu1 %v6307_v37 }
0x120e   :  { %6310 = vmatpush3.bf16.msra.mxu1 %v6307_v37 }
0x120f   :  { %6312 = vmatprep.subr.bf16.mxu1 %v6311_v9 }
0x1212   :  { %6314 = vmatpush3.bf16.msra.mxu1 %v6311_v9 }
0x1213   :  { %6316 = vmatprep.subr.bf16.mxu1 %v6315_v29 }
0x1216   :  { %6318 = vmatpush3.bf16.msra.mxu1 %v6315_v29 }
0x12dc   :  { %v5916_v38 = vpop.f32.mrb[26].mxu1 }
0x12dd   :  { %v2411_v39 = vadd.f32 %v5916_v38, %v5353_v13  ;;  %v2405_v5 = vpop.f32.mrb[27].mxu1 }
0x12de   :  { %v2406_v43 = vadd.f32 %v5353_v13, %v2405_v5 }
0x12df   :  { %v2415_v2 = vadd.f32 %v2411_v39, %v7152_v28 }
0x12e0   :  { %v2414_v47 = vadd.f32 %v2406_v43, %v7150_v27  ;;  %v2456_v27 = vld [vmem:[%s7894_s8] sm:$0xff] }
0x12e1   :  { %v2419_v45 = vsel %vm133_vm1, %v2415_v2, 0.0  ;;  %v6295_v62 = vpack.c.bf16 %v2457_v57, %v2456_v27  ;;  %v5367_v27 = vld [vmem:[%s7888_s6 + $0x48] sm:$0xff] }
0x12e2   :  { %2420 = vadd.xlane.f32.xlu0 %v2419_v45  ;;  %v2416_v44 = vsel %vm133_vm1, %v2414_v47, 0.0 }
0x12e3   :  { %2417 = vadd.xlane.f32.xlu1 %v2416_v44  ;;  %6296 = vmatprep.subr.bf16.mxu0 %v6295_v62 }
0x12e4   :  { %6298 = vmatpush3.bf16.msra.mxu0 %v6295_v62  ;;  %v5368_v62 = vld [vmem:[%s7888_s6 + $0x50] sm:$0xff] }
0x12e5   :  { %6300 = vmatprep.subr.bf16.mxu0 %v6299_v0  ;;  %v6323_v63 = vpack.c.bf16 %v5369_v59, %v5368_v62 }
0x12e8   :  { %6302 = vmatpush3.bf16.msra.mxu0 %v6299_v0 }
0x136f   :  { %v2421_v46 = vpop.xlane.xlu0 %2420 }
0x1370   :  { %v2423_v48 = vmul.f32 0.03125, %v2421_v46  ;;  %v2418_v49 = vpop.xlane.xlu1 %2417 }
0x1371   :  { %v2422_v51 = vmul.f32 0.03125, %v2418_v49 }
0x1372   :  { %v2425_v52 = vsub.f32 %v2415_v2, %v2423_v48 }
0x1373   :  { %v2424_v54 = vsub.f32 %v2414_v47, %v2422_v51 }
0x1374   :  { %v2427_v56 = vmul.f32 %v2425_v52, %v2425_v52 }
0x1375   :  { %v2426_v55 = vmul.f32 %v2424_v54, %v2424_v54 }
0x1376   :  { %v2431_v28 = vsel %vm133_vm1, %v2427_v56, 0.0 }
0x1377   :  { %v2428_v50 = vsel %vm133_vm1, %v2426_v55, 0.0 }
0x1378   :  { %2429 = vadd.xlane.f32.xlu0 %v2428_v50 }
0x137c   :  { %2432 = vadd.xlane.f32.xlu0 %v2431_v28  ;;  %v5366_v28 = vld [vmem:[%s7888_s6 + $0x40] sm:$0xff] }
0x137d   :  { %v6319_v57 = vpack.c.bf16 %v5367_v27, %v5366_v28 }
0x137f   :  { %6320 = vmatprep.subr.bf16.mxu0 %v6319_v57 }
0x1405   :  { %v2430_v10 = vpop.xlane.xlu0 %2429 }
0x1406   :  { %v2434_v11 = vmul.f32 0.03125, %v2430_v10 }
0x1408   :  { %v2436_v12 = vadd.f32 1e-05, %v2434_v11 }
0x1409   :  { %v2433_v15 = vpop.xlane.xlu0 %2432 }
0x140a   :  { %6728 = vrsqrt.f32 %v2436_v12  ;;  %v2435_v16 = vmul.f32 0.03125, %v2433_v15  ;;  %v5365_v12 = vld [vmem:[%s7887_s11 + $0xf] ss:$0 sm:$0xff] }
0x140c   :  { %v2437_v17 = vadd.f32 1e-05, %v2435_v16 }
0x140e   :  { %6730 = vrsqrt.f32 %v2437_v17 }
0x1414   :  { %v6729_v40 = vpop.eup %6728 }
0x1415   :  { %v2440_v18 = vmul.f32 %v6729_v40, %v2424_v54  ;;  %v5370_v40 = vld [vmem:[%s7887_s11 + $0x10] ss:$0 sm:$0xff] }
0x1417   :  { %v2447_v42 = vmul.f32 %v5356_v41, %v2440_v18 }
0x1418   :  { %v6731_v20 = vpop.eup %6730 }
0x1419   :  { %v2441_v21 = vmul.f32 %v6731_v20, %v2425_v52  ;;  %v2454_v22 = vadd.f32 %v5357_v19, %v2447_v42 }
0x141b   :  { %v2448_v23 = vmul.f32 %v5356_v41, %v2441_v21  ;;  %5925 = vmatprep.mubr.msk.f32.mxu0 %vm133_vm1, %v2454_v22 }
0x141d   :  { %v2455_v24 = vadd.f32 %v5357_v19, %v2448_v23 }
0x141f   :  { %5926 = vmatmul.mubr.msk.f32.vlgmr.msra.gmra.mrb[20].mxu0 %vm133_vm1, %v2455_v24 }
0x1420   :  { %6322 = vmatpush3.bf16.msra.mxu0 %v6319_v57 }
0x1421   :  { %6324 = vmatprep.subr.bf16.mxu0 %v6323_v63 }
0x1424   :  { %6326 = vmatpush3.bf16.msra.mxu0 %v6323_v63 }
0x14f2   :  { %v5927_v31 = vpop.f32.mrb[20].mxu0 }
0x14f3   :  { %v2543_v32 = vadd.f32 %v5927_v31, %v5358_v30  ;;  %v2537_v33 = vpop.f32.mrb[21].mxu0 }
0x14f4   :  { %v2538_v34 = vadd.f32 %v5358_v30, %v2537_v33 }
0x14f5   :  { %v2547_v14 = vmax.f32 %v2543_v32, 0.0 }
0x14f6   :  { %v2546_v35 = vmax.f32 %v2538_v34, 0.0 }
0x14f8   :  { %5944 = vmatprep.mubr.msk.f32.mxu1 %vm2561_vm6, %v2546_v35  ;;  %v7449_v35 = vld [vmem:[%s7890_s2] sm:$0xff] }
0x14f9   :  { %5945 = vmatmul.mubr.msk.f32.vlgmr.msra.gmra.mrb[28].mxu1 %vm2561_vm6, %v2547_v14 }
0x15cc   :  { %v5946_v13 = vpop.f32.mrb[28].mxu1 }
0x15cd   :  { %v2640_v38 = vadd.f32 %v5946_v13, %v5361_v36  ;;  %v2634_v39 = vpop.f32.mrb[29].mxu1 }
0x15ce   :  { %v2635_v5 = vadd.f32 %v5361_v36, %v2634_v39  ;;  %v7455_v36 = vld [vmem:[%s7890_s2 + $0x8] sm:$0xff]  ;;  %s7905_s2 = smov 16  }
0x15cf   :  { %v2644_v43 = vadd.f32 %v2640_v38, %v2455_v24 }
0x15d0   :  { %v2643_v2 = vadd.f32 %v2635_v5, %v2454_v22 }
0x15d1   :  { %v2648_v47 = vsel %vm133_vm1, %v2644_v43, 0.0 }
0x15d2   :  { %2649 = vadd.xlane.f32.xlu0 %v2648_v47  ;;  %v2645_v45 = vsel %vm133_vm1, %v2643_v2, 0.0 }
0x15d3   :  { %2646 = vadd.xlane.f32.xlu1 %v2645_v45 }
0x165f   :  { %v2650_v44 = vpop.xlane.xlu0 %2649 }
0x1660   :  { %v2652_v46 = vmul.f32 0.03125, %v2650_v44  ;;  %v2647_v48 = vpop.xlane.xlu1 %2646 }
0x1661   :  { %v2651_v49 = vmul.f32 0.03125, %v2647_v48 }
0x1662   :  { %v2654_v51 = vsub.f32 %v2644_v43, %v2652_v46 }
0x1663   :  { %v2653_v52 = vsub.f32 %v2643_v2, %v2651_v49 }
0x1664   :  { %v2656_v54 = vmul.f32 %v2654_v51, %v2654_v51 }
0x1665   :  { %v2655_v55 = vmul.f32 %v2653_v52, %v2653_v52 }
0x1666   :  { %v2660_v50 = vsel %vm133_vm1, %v2656_v54, 0.0 }
0x1667   :  { %2661 = vadd.xlane.f32.xlu0 %v2660_v50  ;;  %v2657_v56 = vsel %vm133_vm1, %v2655_v55, 0.0 }
0x1668   :  { %2658 = vadd.xlane.f32.xlu1 %v2657_v56 }
0x16f4   :  { %v2662_v0 = vpop.xlane.xlu0 %2661 }
0x16f5   :  { %v2664_v53 = vmul.f32 0.03125, %v2662_v0  ;;  %v2659_v1 = vpop.xlane.xlu1 %2658 }
0x16f6   :  { %v2663_v3 = vmul.f32 0.03125, %v2659_v1 }
0x16f7   :  { %v2666_v4 = vadd.f32 1e-05, %v2664_v53 }
0x16f8   :  { %v2665_v6 = vadd.f32 1e-05, %v2663_v3 }
0x16f9   :  { %6732 = vrsqrt.f32 %v2666_v4 }
0x16fa   :  { %6734 = vrsqrt.f32 %v2665_v6 }
0x1703   :  { %v6733_v37 = vpop.eup %6732 }
0x1704   :  { %v6735_v8 = vpop.eup %6734  ;;  %v2670_v9 = vmul.f32 %v6733_v37, %v2654_v51 }
0x1705   :  { %v2669_v10 = vmul.f32 %v6735_v8, %v2653_v52 }
0x1706   :  { %v2677_v11 = vmul.f32 %v5364_v7, %v2670_v9 }
0x1707   :  { %v2676_v15 = vmul.f32 %v5364_v7, %v2669_v10 }
0x1708   :  { %v7413_v17 = vadd.f32 %v5365_v12, %v2677_v11 }
0x1709   :  { %v7411_v16 = vadd.f32 %v5365_v12, %v2676_v15 }
0x170b   :  { %5955 = vmatprep.mubr.msk.f32.mxu0 %vm133_vm1, %v7411_v16 }
0x170c   :  { %5956 = vmatmul.mubr.msk.f32.vlgmr.msra.gmra.mrb[22].mxu0 %vm133_vm1, %v7413_v17 }
0x17df   :  { %v5957_v41 = vpop.f32.mrb[22].mxu0 }
0x17e0   :  { %v7422_v18 = vadd.f32 %v5957_v41, %v5370_v40  ;;  %v2767_v19 = vpop.f32.mrb[23].mxu0 }
0x17e1   :  { %v7424_v42 = vadd.f32 %v5370_v40, %v2767_v19 }
0x17e3   :  { %5962 = vmatprep.mubr.msk.f32.mxu0 %vm49_vm0, %v7424_v42  ;;  %v7430_v20 = vpack.i.bf16 %v7422_v18, %v7424_v42 }
0x17e5   :  { %6572 = vrot.lane.b32.xlu1 %v7430_v20, %s6824_s27 }
0x17e9   :  { %6577 = vrot.lane.b32.xlu1 %v7430_v20, %s6827_s14  ;;  %s7907_s14 = smov 24  }
0x17ed   :  { %2978 = vrot.lane.b32.xlu1 %v7424_v42, %s6825_s28 }
0x17f1   :  { %2980 = vrot.lane.b32.xlu1 %v7422_v18, %s6825_s28 }
0x1857   :  { %v6573_v21 = vpop.permute.xlu1 %6572 }
0x1858   :  { %v6575_v22 = vunpack.i.h.bf16 %v6573_v21  ;;  %v6574_v23 = vunpack.i.l.bf16 %v6573_v21 }
0x185a   :  { %v6327_v24 = vpack.c.bf16 %v6575_v22, %v6574_v23 }
0x185b   :  { %v6578_v25 = vpop.permute.xlu1 %6577 }
0x185c   :  { %v6580_v26 = vunpack.i.h.bf16 %v6578_v25  ;;  %v6579_v29 = vunpack.i.l.bf16 %v6578_v25  ;;  %6329 = vmatprep.subr.msk.bf16.mxu0 %vm6978_vm2, %v6327_v24 }
0x185d   :  { %6332 = vmatpush3.bf16.xpose.msk.msra.mxu0 %vm6978_vm2, %v6327_v24 }
0x185e   :  { %v6333_v30 = vpack.c.bf16 %v6580_v26, %v6579_v29 }
0x185f   :  { %v2979_v63 = vpop.permute.xlu1 %2978 }
0x1860   :  { %6334 = vmatprep.subr.bf16.mxu1 %v6333_v30 }
0x1861   :  { %6336 = vmatpush3.bf16.msra.mxu1 %v6333_v30 }
0x1863   :  { %v2981_v0 = vpop.permute.xlu1 %2980 }
0x1864   :  { %5963 = vmatmul.mubr.msk.f32.vlgmr.msra.gmra.mrb[24].mxu0 %vm49_vm0, %v7422_v18 }
0x1937   :  { %v5964_v31 = vpop.f32.mrb[24].mxu0 }
0x1938   :  { %v2856_v32 = vpop.f32.mrb[25].mxu0  ;;  %v2866_v33 = vmul.f32 0.35355338, %v5964_v31 }
0x1939   :  { %v2865_v34 = vmul.f32 0.35355338, %v2856_v32 }
0x193a   :  { %v2868_v13 = vadd.f32 %v7455_v36, %v2866_v33 }
0x193b   :  { %v2867_v14 = vadd.f32 %v7449_v35, %v2865_v34 }
0x193c   :  { %v2872_v39 = vsel %vm369_vm3, %v2868_v13, -inf }
0x193d   :  { %v2869_v38 = vsel %vm369_vm3, %v2867_v14, -inf }
0x193e   :  { %2870 = vmax.xlane.f32.xlu0 %v2869_v38 }
0x1942   :  { %2873 = vmax.xlane.f32.xlu0 %v2872_v39 }
0x19cb   :  { %v2871_v5 = vpop.xlane.xlu0 %2870 }
0x19cc   :  { %v2875_v43 = vsub.f32 %v2867_v14, %v2871_v5 }
0x19ce   :  { %v2877_v45 = vmul.f32 1.442695, %v2875_v43 }
0x19cf   :  { %v2874_v2 = vpop.xlane.xlu0 %2873 }
0x19d0   :  { %v2876_v47 = vsub.f32 %v2868_v13, %v2874_v2 }
0x19d2   :  { %v2879_v44 = vmul.f32 1.442695, %v2876_v47 }
0x19d4   :  { %6736 = vpow2.f32 %v2879_v44 }
0x19d5   :  { %6738 = vpow2.f32 %v2877_v45 }
0x19de   :  { %v6737_v46 = vpop.eup %6736 }
0x19df   :  { %v2884_v48 = vsel %vm369_vm3, %v6737_v46, 0.0  ;;  %v6739_v49 = vpop.eup %6738 }
0x19e0   :  { %2885 = vadd.xlane.f32.xlu0 %v2884_v48  ;;  %v2881_v51 = vsel %vm369_vm3, %v6739_v49, 0.0 }
0x19e4   :  { %2882 = vadd.xlane.f32.xlu0 %v2881_v51 }
0x19fa   :  { %6582 = vrot.lane.b32.xlu0 %v7430_v20, %s6823_s4 }
0x1a6d   :  { %v2886_v52 = vpop.xlane.xlu0 %2885 }
0x1a6e   :  { %6740 = vrcp.f32 %v2886_v52 }
0x1a71   :  { %v2883_v54 = vpop.xlane.xlu0 %2882 }
0x1a72   :  { %6742 = vrcp.f32 %v2883_v54 }
0x1a75   :  { %v6583_v55 = vpop.permute.xlu0 %6582 }
0x1a76   :  { %v6585_v50 = vunpack.i.h.bf16 %v6583_v55  ;;  %v6584_v56 = vunpack.i.l.bf16 %v6583_v55 }
0x1a78   :  { %v6337_v28 = vpack.c.bf16 %v6585_v50, %v6584_v56  ;;  %v6741_v27 = vpop.eup %6740 }
0x1a79   :  { %v2890_v59 = vmul.f32 %v6741_v27, %v6737_v46 }
0x1a7a   :  { %6339 = vmatprep.subr.msk.bf16.mxu1 %vm6978_vm2, %v6337_v28 }
0x1a7c   :  { %v6743_v57 = vpop.eup %6742 }
0x1a7d   :  { %v2889_v62 = vmul.f32 %v6743_v57, %v6739_v49 }
0x1a7f   :  { %5969 = vmatprep.mubr.msk.f32.mxu1 %vm369_vm3, %v2889_v62 }
0x1a80   :  { %5970 = vmatmul.mubr.msk.f32.vlgmr.msra.gmra.mrb[30].mxu1 %vm369_vm3, %v2890_v59 }
0x1a81   :  { %6342 = vmatpush3.bf16.xpose.msk.msra.mxu1 %vm6978_vm2, %v6337_v28  ;;  %5976 = vmatprep.mubr.msk.f32.mxu1 %vm49_vm0, %v2979_v63 }
0x1a88   :  { %5977 = vmatmul.mubr.msk.f32.vlgmr.msra.gmra.mrb[32].mxu1 %vm49_vm0, %v2981_v0 }
0x1b53   :  { %v7472_v53 = vpop.f32.mrb[30].mxu1 }
0x1b54   :  { %v7474_v1 = vpop.f32.mrb[31].mxu1 }
0x1b5b   :  { %v5978_v3 = vpop.f32.mrb[32].mxu1 }
0x1b5c   :  { %v3070_v4 = vmul.f32 0.35355338, %v5978_v3  ;;  %v3060_v6 = vpop.f32.mrb[33].mxu1 }
0x1b5d   :  { %v3069_v37 = vmul.f32 0.35355338, %v3060_v6 }
0x1b5e   :  { %v3072_v7 = vadd.f32 %v7455_v36, %v3070_v4 }
0x1b5f   :  { %v3071_v8 = vadd.f32 %v7449_v35, %v3069_v37 }
0x1b60   :  { %v3076_v9 = vsel %vm369_vm3, %v3072_v7, -inf }
0x1b61   :  { %3077 = vmax.xlane.f32.xlu0 %v3076_v9  ;;  %v3073_v10 = vsel %vm369_vm3, %v3071_v8, -inf }
0x1b62   :  { %3074 = vmax.xlane.f32.xlu1 %v3073_v10 }
0x1b73   :  { %6592 = vrot.lane.b32.xlu1 %v7430_v20, %s6828_s15 }
0x1b77   :  { %6587 = vrot.lane.b32.xlu0 %v7430_v20, %s6826_s13  ;;  %3182 = vrot.lane.b32.xlu1 %v7424_v42, %s6829_s16  ;;  %s7906_s13 = smov 40  }
0x1bee   :  { %v3078_v11 = vpop.xlane.xlu0 %3077 }
0x1bef   :  { %v3080_v12 = vsub.f32 %v3072_v7, %v3078_v11  ;;  %v3075_v15 = vpop.xlane.xlu1 %3074 }
0x1bf0   :  { %v3079_v40 = vsub.f32 %v3071_v8, %v3075_v15 }
0x1bf1   :  { %v3083_v41 = vmul.f32 1.442695, %v3080_v12 }
0x1bf2   :  { %v3081_v19 = vmul.f32 1.442695, %v3079_v40  ;;  %v6588_v21 = vpop.permute.xlu0 %6587 }
0x1bf3   :  { %6744 = vpow2.f32 %v3083_v41  ;;  %v6590_v22 = vunpack.i.h.bf16 %v6588_v21  ;;  %v6589_v23 = vunpack.i.l.bf16 %v6588_v21  ;;  %v6593_v24 = vpop.permute.xlu1 %6592 }
0x1bf4   :  { %v6595_v25 = vunpack.i.h.bf16 %v6593_v24  ;;  %v6594_v26 = vunpack.i.l.bf16 %v6593_v24  ;;  %6746 = vpow2.f32 %v3081_v19 }
0x1bf5   :  { %v6343_v29 = vpack.c.bf16 %v6590_v22, %v6589_v23 }
0x1bf6   :  { %v6347_v30 = vpack.c.bf16 %v6595_v25, %v6594_v26 }
0x1bf7   :  { %6344 = vmatprep.subr.bf16.mxu0 %v6343_v29  ;;  %v3183_v14 = vpop.permute.xlu1 %3182 }
0x1bf8   :  { %6346 = vmatpush3.bf16.msra.mxu0 %v6343_v29 }
0x1bf9   :  { %6349 = vmatprep.subr.msk.bf16.mxu0 %vm6978_vm2, %v6347_v30 }
0x1bfd   :  { %v6745_v31 = vpop.eup %6744 }
0x1bfe   :  { %v3088_v32 = vsel %vm369_vm3, %v6745_v31, 0.0  ;;  %v6747_v33 = vpop.eup %6746 }
0x1bff   :  { %3089 = vadd.xlane.f32.xlu1 %v3088_v32  ;;  %v3085_v34 = vsel %vm369_vm3, %v6747_v33, 0.0 }
0x1c03   :  { %3086 = vadd.xlane.f32.xlu1 %v3085_v34 }
0x1c14   :  { %3184 = vrot.lane.b32.xlu1 %v7422_v18, %s6829_s16 }
0x1c8c   :  { %v3090_v13 = vpop.xlane.xlu1 %3089 }
0x1c8d   :  { %6748 = vrcp.f32 %v3090_v13 }
0x1c90   :  { %v3087_v38 = vpop.xlane.xlu1 %3086 }
0x1c91   :  { %6750 = vrcp.f32 %v3087_v38 }
0x1c94   :  { %v3185_v47 = vpop.permute.xlu1 %3184 }
0x1c97   :  { %v6749_v39 = vpop.eup %6748 }
0x1c98   :  { %v3094_v2 = vmul.f32 %v6749_v39, %v6745_v31 }
0x1c9b   :  { %v6751_v5 = vpop.eup %6750 }
0x1c9c   :  { %v3093_v43 = vmul.f32 %v6751_v5, %v6747_v33 }
0x1c9e   :  { %5983 = vmatprep.mubr.msk.f32.mxu0 %vm369_vm3, %v3093_v43 }
0x1c9f   :  { %5984 = vmatmul.mubr.msk.f32.vlgmr.msra.gmra.mrb[26].mxu0 %vm369_vm3, %v3094_v2 }
0x1ca0   :  { %6352 = vmatpush3.bf16.xpose.msk.msra.mxu0 %vm6978_vm2, %v6347_v30  ;;  %5990 = vmatprep.mubr.msk.f32.mxu0 %vm49_vm0, %v3183_v14 }
0x1ca7   :  { %5991 = vmatmul.mubr.msk.f32.vlgmr.msra.gmra.mrb[28].mxu0 %vm49_vm0, %v3185_v47 }
0x1d72   :  { %v7498_v45 = vpop.f32.mrb[26].mxu0 }
0x1d73   :  { %v7500_v44 = vpop.f32.mrb[27].mxu0 }
0x1d7a   :  { %v5992_v46 = vpop.f32.mrb[28].mxu0 }
0x1d7b   :  { %v3274_v48 = vmul.f32 0.35355338, %v5992_v46  ;;  %v3264_v49 = vpop.f32.mrb[29].mxu0 }
0x1d7c   :  { %v3273_v51 = vmul.f32 0.35355338, %v3264_v49 }
0x1d7d   :  { %v3276_v52 = vadd.f32 %v7455_v36, %v3274_v48 }
0x1d7e   :  { %v3275_v54 = vadd.f32 %v7449_v35, %v3273_v51 }
0x1d7f   :  { %v3280_v55 = vsel %vm369_vm3, %v3276_v52, -inf }
0x1d80   :  { %3281 = vmax.xlane.f32.xlu1 %v3280_v55  ;;  %v3277_v50 = vsel %vm369_vm3, %v3275_v54, -inf }
0x1d81   :  { %3278 = vmax.xlane.f32.xlu0 %v3277_v50 }
0x1d91   :  { %6602 = vrot.lane.b32.xlu1 %v7430_v20, %s6830_s17 }
0x1d95   :  { %3386 = vrot.lane.b32.xlu1 %v7424_v42, %s6831_s18 }
0x1d99   :  { %3388 = vrot.lane.b32.xlu1 %v7422_v18, %s6831_s18 }
0x1e0d   :  { %v3282_v56 = vpop.xlane.xlu1 %3281 }
0x1e0e   :  { %v3284_v28 = vsub.f32 %v3276_v52, %v3282_v56  ;;  %v3279_v27 = vpop.xlane.xlu0 %3278  ;;  %v5398_v56 = vld [vmem:[%s7891_s7 + $0x48] sm:$0xff] }
0x1e0f   :  { %v3283_v57 = vsub.f32 %v3275_v54, %v3279_v27 }
0x1e10   :  { %v3287_v62 = vmul.f32 1.442695, %v3284_v28  ;;  %v5399_v28 = vld [vmem:[%s7891_s7 + $0x50] sm:$0xff] }
0x1e11   :  { %v3285_v59 = vmul.f32 1.442695, %v3283_v57  ;;  %v6603_v6 = vpop.permute.xlu1 %6602  ;;  %v5400_v57 = vld [vmem:[%s7891_s7 + $0x58] sm:$0xff] }
0x1e12   :  { %6752 = vpow2.f32 %v3287_v62  ;;  %v6605_v7 = vunpack.i.h.bf16 %v6603_v6  ;;  %v6604_v8 = vunpack.i.l.bf16 %v6603_v6  ;;  %v6371_v62 = vpack.c.bf16 %v5400_v57, %v5399_v28 }
0x1e13   :  { %6754 = vpow2.f32 %v3285_v59 }
0x1e14   :  { %v6357_v12 = vpack.c.bf16 %v6605_v7, %v6604_v8 }
0x1e15   :  { %v3387_v21 = vpop.permute.xlu1 %3386 }
0x1e19   :  { %v3389_v22 = vpop.permute.xlu1 %3388 }
0x1e1c   :  { %v6753_v63 = vpop.eup %6752 }
0x1e1d   :  { %v3292_v0 = vsel %vm369_vm3, %v6753_v63, 0.0  ;;  %v6755_v3 = vpop.eup %6754 }
0x1e1e   :  { %3293 = vadd.xlane.f32.xlu0 %v3292_v0  ;;  %v3289_v4 = vsel %vm369_vm3, %v6755_v3, 0.0 }
0x1e22   :  { %3290 = vadd.xlane.f32.xlu0 %v3289_v4 }
0x1e38   :  { %6597 = vrot.lane.b32.xlu0 %v7430_v20, %s6833_s20 }
0x1eab   :  { %v3294_v18 = vpop.xlane.xlu0 %3293 }
0x1eac   :  { %6756 = vrcp.f32 %v3294_v18 }
0x1eaf   :  { %v3291_v42 = vpop.xlane.xlu0 %3290 }
0x1eb0   :  { %6758 = vrcp.f32 %v3291_v42 }
0x1eb3   :  { %v6598_v37 = vpop.permute.xlu0 %6597 }
0x1eb4   :  { %v6600_v9 = vunpack.i.h.bf16 %v6598_v37  ;;  %v6599_v10 = vunpack.i.l.bf16 %v6598_v37 }
0x1eb6   :  { %v6353_v11 = vpack.c.bf16 %v6600_v9, %v6599_v10  ;;  %v6757_v15 = vpop.eup %6756 }
0x1eb7   :  { %v3298_v19 = vmul.f32 %v6757_v15, %v6753_v63 }
0x1eb8   :  { %6354 = vmatprep.subr.bf16.mxu1 %v6353_v11 }
0x1eb9   :  { %6356 = vmatpush3.bf16.msra.mxu1 %v6353_v11 }
0x1eba   :  { %v6759_v40 = vpop.eup %6758  ;;  %6359 = vmatprep.subr.msk.bf16.mxu1 %vm6978_vm2, %v6357_v12 }
0x1ebb   :  { %v3297_v41 = vmul.f32 %v6759_v40, %v6755_v3 }
0x1ebd   :  { %5997 = vmatprep.mubr.msk.f32.mxu1 %vm369_vm3, %v3297_v41 }
0x1ebe   :  { %5998 = vmatmul.mubr.msk.f32.vlgmr.msra.gmra.mrb[34].mxu1 %vm369_vm3, %v3298_v19 }
0x1ebf   :  { %6004 = vmatprep.mubr.msk.f32.mxu1 %vm49_vm0, %v3387_v21 }
0x1ec2   :  { %6362 = vmatpush3.bf16.xpose.msk.msra.mxu1 %vm6978_vm2, %v6357_v12 }
0x1ec9   :  { %6005 = vmatmul.mubr.msk.f32.vlgmr.msra.gmra.mrb[36].mxu1 %vm49_vm0, %v3389_v22 }
0x1f91   :  { %v5999_v23 = vpop.f32.mrb[34].mxu1 }
0x1f92   :  { %v3377_v24 = vpop.f32.mrb[35].mxu1 }
0x1f9c   :  { %v6006_v25 = vpop.f32.mrb[36].mxu1 }
0x1f9d   :  { %v3478_v26 = vmul.f32 0.35355338, %v6006_v25  ;;  %v3468_v29 = vpop.f32.mrb[37].mxu1 }
0x1f9e   :  { %v3477_v30 = vmul.f32 0.35355338, %v3468_v29 }
0x1f9f   :  { %v3480_v31 = vadd.f32 %v7455_v36, %v3478_v26 }
0x1fa0   :  { %v3479_v32 = vadd.f32 %v7449_v35, %v3477_v30 }
0x1fa1   :  { %v3484_v33 = vsel %vm369_vm3, %v3480_v31, -inf }
0x1fa2   :  { %3485 = vmax.xlane.f32.xlu1 %v3484_v33  ;;  %v3481_v34 = vsel %vm369_vm3, %v3479_v32, -inf }
0x1fa3   :  { %3482 = vmax.xlane.f32.xlu0 %v3481_v34 }
0x1fb3   :  { %3592 = vrot.lane.b32.xlu1 %v7500_v44, %s6834_s21 }
0x1fb7   :  { %3594 = vrot.lane.b32.xlu1 %v7498_v45, %s6834_s21 }
0x1fbb   :  { %3600 = vrot.lane.b32.xlu1 %v3377_v24, %s7905_s2  ;;  %v5407_v24 = vld [vmem:[%s7888_s6 + $0x68] sm:$0xff] }
0x202f   :  { %v3486_v14 = vpop.xlane.xlu1 %3485 }
0x2030   :  { %v3488_v13 = vsub.f32 %v3480_v31, %v3486_v14  ;;  %v3483_v38 = vpop.xlane.xlu0 %3482 }
0x2031   :  { %v3487_v36 = vsub.f32 %v3479_v32, %v3483_v38 }
0x2032   :  { %v3491_v39 = vmul.f32 1.442695, %v3488_v13 }
0x2033   :  { %v3489_v35 = vmul.f32 1.442695, %v3487_v36  ;;  %v3593_v0 = vpop.permute.xlu1 %3592 }
0x2034   :  { %6760 = vpow2.f32 %v3491_v39  ;;  %v3614_v42 = vsel %vm49_vm0, %v7474_v1, %v3593_v0  ;;  %v5408_v39 = vld [vmem:[%s7888_s6 + $0x70] sm:$0xff] }
0x2035   :  { %6762 = vpow2.f32 %v3489_v35  ;;  %v5409_v35 = vld [vmem:[%s7888_s6 + $0x78] sm:$0xff] }
0x2037   :  { %v3595_v3 = vpop.permute.xlu1 %3594 }
0x2038   :  { %v3615_v37 = vsel %vm49_vm0, %v7472_v53, %v3595_v3  ;;  %v5401_v53 = vld [vmem:[%s7887_s11 + $0x11] ss:$0 sm:$0xff]  ;;  %v5405_v3 = vld [vmem:[%s7887_s11 + $0x13] ss:$0 sm:$0xff] }
0x203b   :  { %v3601_v18 = vpop.permute.xlu1 %3600 }
0x203c   :  { %v3616_v7 = vsel %vm369_vm3, %v3614_v42, %v3601_v18 }
0x203e   :  { %v6761_v5 = vpop.eup %6760 }
0x203f   :  { %v3496_v43 = vsel %vm369_vm3, %v6761_v5, 0.0  ;;  %v6763_v2 = vpop.eup %6762 }
0x2040   :  { %3497 = vadd.xlane.f32.xlu0 %v3496_v43  ;;  %v3493_v47 = vsel %vm369_vm3, %v6763_v2, 0.0  ;;  %v6616_v43 = vpack.i.bf16 %v5409_v35, %v5408_v39 }
0x2044   :  { %3494 = vadd.xlane.f32.xlu0 %v3493_v47  ;;  %v6379_v47 = vpack.c.bf16 %v5409_v35, %v5408_v39 }
0x205a   :  { %6607 = vrot.lane.b32.xlu0 %v7430_v20, %s7906_s13  ;;  %v5397_v20 = vld [vmem:[%s7891_s7 + $0x40] sm:$0xff] }
0x205b   :  { %v6367_v27 = vpack.c.bf16 %v5398_v56, %v5397_v20  ;;  %v6818_v56 = vld [vmem:[%s7892_s1] sm:$0xff] }
0x205e   :  { %3602 = vrot.lane.b32.xlu0 %v5999_v23, %s7905_s2  ;;  %v5406_v23 = vld [vmem:[%s7888_s6 + $0x60] sm:$0xff] }
0x205f   :  { %v6611_v25 = vpack.i.bf16 %v5407_v24, %v5406_v23 }
0x20cd   :  { %v3498_v45 = vpop.xlane.xlu0 %3497 }
0x20ce   :  { %6764 = vrcp.f32 %v3498_v45  ;;  %v5410_v45 = vld [vmem:[%s7887_s11 + $0x14] ss:$0 sm:$0xff] }
0x20d1   :  { %v3495_v44 = vpop.xlane.xlu0 %3494 }
0x20d2   :  { %6766 = vrcp.f32 %v3495_v44 }
0x20d5   :  { %v6608_v46 = vpop.permute.xlu0 %6607 }
0x20d6   :  { %v6610_v48 = vunpack.i.h.bf16 %v6608_v46  ;;  %v6609_v49 = vunpack.i.l.bf16 %v6608_v46 }
0x20d8   :  { %v6363_v51 = vpack.c.bf16 %v6610_v48, %v6609_v49  ;;  %v6765_v52 = vpop.eup %6764 }
0x20d9   :  { %v3502_v50 = vmul.f32 %v6765_v52, %v6761_v5  ;;  %v3603_v4 = vpop.permute.xlu0 %3602 }
0x20da   :  { %6364 = vmatprep.subr.bf16.mxu0 %v6363_v51  ;;  %v3617_v9 = vsel %vm369_vm3, %v3615_v37, %v3603_v4  ;;  %v6820_v4 = vld [vmem:[%s7892_s1 + $0x10] sm:$0xff] }
0x20db   :  { %6366 = vmatpush3.bf16.msra.mxu0 %v6363_v51 }
0x20dc   :  { %v6767_v54 = vpop.eup %6766  ;;  %6368 = vmatprep.subr.bf16.mxu0 %v6367_v27 }
0x20dd   :  { %v3501_v55 = vmul.f32 %v6767_v54, %v6763_v2  ;;  %v6375_v2 = vpack.c.bf16 %v5407_v24, %v5406_v23 }
0x20df   :  { %6011 = vmatprep.mubr.msk.f32.mxu0 %vm369_vm3, %v3501_v55  ;;  %6376 = vmatprep.subr.bf16.mxu1 %v6375_v2 }
0x20e0   :  { %6012 = vmatmul.mubr.msk.f32.vlgmr.msra.gmra.mrb[30].mxu0 %vm369_vm3, %v3502_v50  ;;  %6378 = vmatpush3.bf16.msra.mxu1 %v6375_v2 }
0x20e1   :  { %6370 = vmatpush3.bf16.msra.mxu0 %v6367_v27  ;;  %6380 = vmatprep.subr.bf16.mxu1 %v6379_v47  ;;  %v5404_v27 = vld [vmem:[%s7887_s11 + $0x12] ss:$0 sm:$0xff] }
0x20e2   :  { %6372 = vmatprep.subr.bf16.mxu0 %v6371_v62 }
0x20e4   :  { %6382 = vmatpush3.bf16.msra.mxu1 %v6379_v47 }
0x20e5   :  { %6374 = vmatpush3.bf16.msra.mxu0 %v6371_v62  ;;  %v6819_v62 = vld [vmem:[%s7892_s1 + $0x8] sm:$0xff] }
0x20e6   :  { %6383 = vmatprep.subr.bf16.mxu0 %v6837_v58 }
0x21b3   :  { %v6013_v59 = vpop.f32.mrb[30].mxu0 }
0x21b4   :  { %3610 = vrot.lane.b32.xlu0 %v6013_v59, %s7907_s14  ;;  %v3581_v63 = vpop.f32.mrb[31].mxu0 }
0x21b5   :  { %3608 = vrot.lane.b32.xlu1 %v3581_v63, %s7907_s14 }
0x2226   :  { %v3611_v6 = vpop.permute.xlu0 %3610 }
0x2227   :  { %v3609_v8 = vpop.permute.xlu1 %3608  ;;  %v3619_v11 = vsel %vm1119_vm4, %v3617_v9, %v3611_v6 }
0x2228   :  { %v3618_v10 = vsel %vm1119_vm4, %v3616_v7, %v3609_v8 }
0x2229   :  { %6022 = vmatprep.mubr.msk.f32.mxu0 %vm133_vm1, %v3618_v10 }
0x222a   :  { %6023 = vmatmul.mubr.msk.f32.vlgmr.msra.gmra.mrb[32].mxu0 %vm133_vm1, %v3619_v11 }
0x222b   :  { %6044 = vmatprep.mubr.msk.f32.mxu0 %vm6838_vm5, %v6839_v61 }
0x22fd   :  { %v6024_v1 = vpop.f32.mrb[32].mxu0 }
0x22fe   :  { %v3708_v12 = vadd.f32 %v6024_v1, %v5401_v53  ;;  %v3702_v15 = vpop.f32.mrb[33].mxu0 }
0x22ff   :  { %v3703_v40 = vadd.f32 %v5401_v53, %v3702_v15 }
0x2300   :  { %v3712_v41 = vadd.f32 %v3708_v12, %v7413_v17 }
0x2301   :  { %v3711_v19 = vadd.f32 %v3703_v40, %v7411_v16 }
0x2302   :  { %v3716_v21 = vsel %vm133_vm1, %v3712_v41, 0.0 }
0x2303   :  { %3717 = vadd.xlane.f32.xlu0 %v3716_v21  ;;  %v3713_v22 = vsel %vm133_vm1, %v3711_v19, 0.0 }
0x2304   :  { %3714 = vadd.xlane.f32.xlu1 %v3713_v22 }
0x2315   :  { %6612 = vrot.lane.b32.xlu1 %v6611_v25, %s6824_s27 }
0x2319   :  { %3861 = vrot.lane.b32.xlu1 %v5410_v45, %s6824_s27 }
0x2390   :  { %v3718_v17 = vpop.xlane.xlu0 %3717 }
0x2391   :  { %v3720_v26 = vmul.f32 0.03125, %v3718_v17  ;;  %v3715_v16 = vpop.xlane.xlu1 %3714 }
0x2392   :  { %v3719_v29 = vmul.f32 0.03125, %v3715_v16 }
0x2393   :  { %v3722_v30 = vsub.f32 %v3712_v41, %v3720_v26 }
0x2394   :  { %v3721_v31 = vsub.f32 %v3711_v19, %v3719_v29 }
0x2395   :  { %v3724_v32 = vmul.f32 %v3722_v30, %v3722_v30  ;;  %v6613_v13 = vpop.permute.xlu1 %6612 }
0x2396   :  { %v3723_v34 = vmul.f32 %v3721_v31, %v3721_v31  ;;  %v6615_v38 = vunpack.i.h.bf16 %v6613_v13  ;;  %v6614_v36 = vunpack.i.l.bf16 %v6613_v13 }
0x2397   :  { %v3728_v33 = vsel %vm133_vm1, %v3724_v32, 0.0 }
0x2398   :  { %3729 = vadd.xlane.f32.xlu0 %v3728_v33  ;;  %v3725_v14 = vsel %vm133_vm1, %v3723_v34, 0.0  ;;  %v6384_v5 = vpack.c.bf16 %v6615_v38, %v6614_v36  ;;  %v7664_v33 = vld [vmem:[%s7893_s3 + $0x8] sm:$0xff] }
0x2399   :  { %v3862_v37 = vpop.permute.xlu1 %3861 }
0x239a   :  { %6385 = vmatpush3.bf16.msra.mxu0 %v6384_v5 }
0x239b   :  { %6386 = vmatprep.subr.bf16.mxu0 %v6837_v58 }
0x239c   :  { %3726 = vadd.xlane.f32.xlu0 %v3725_v14  ;;  %v7670_v14 = vld [vmem:[%s7893_s3] sm:$0xff] }
0x23b2   :  { %6617 = vrot.lane.b32.xlu0 %v6616_v43, %s6824_s27 }
0x2425   :  { %v3730_v44 = vpop.xlane.xlu0 %3729 }
0x2426   :  { %v3732_v46 = vmul.f32 0.03125, %v3730_v44 }
0x2428   :  { %v3734_v48 = vadd.f32 1e-05, %v3732_v46 }
0x2429   :  { %v3727_v49 = vpop.xlane.xlu0 %3726 }
0x242a   :  { %6768 = vrsqrt.f32 %v3734_v48  ;;  %v3731_v58 = vmul.f32 0.03125, %v3727_v49 }
0x242c   :  { %v3733_v51 = vadd.f32 1e-05, %v3731_v58 }
0x242d   :  { %v6618_v52 = vpop.permute.xlu0 %6617 }
0x242e   :  { %6770 = vrsqrt.f32 %v3733_v51  ;;  %v6620_v54 = vunpack.i.h.bf16 %v6618_v52  ;;  %v6619_v55 = vunpack.i.l.bf16 %v6618_v52 }
0x2430   :  { %v6387_v50 = vpack.c.bf16 %v6620_v54, %v6619_v55 }
0x2432   :  { %6388 = vmatpush3.bf16.msra.mxu0 %v6387_v50 }
0x2434   :  { %v6769_v20 = vpop.eup %6768 }
0x2435   :  { %6045 = vmatmul.mubr.msk.f32.vlgmr.msra.gmra.mrb[34].mxu0 %vm133_vm1, %v6818_v56  ;;  %v3738_v28 = vmul.f32 %v6769_v20, %v3722_v30 }
0x2436   :  { %6047 = vmatprep.mubr.msk.f32.mxu0 %vm6838_vm5, %v6839_v61 }
0x2437   :  { %v3745_v63 = vmul.f32 %v5404_v27, %v3738_v28 }
0x2438   :  { %v6771_v57 = vpop.eup %6770 }
0x2439   :  { %6048 = vmatmul.mubr.msk.f32.gmra.mrb[36].mxu0 %vm133_vm1, %v6819_v62  ;;  %v3737_v59 = vmul.f32 %v6771_v57, %v3721_v31  ;;  %v7619_v42 = vadd.f32 %v5405_v3, %v3745_v63 }
0x243a   :  { %6050 = vmatprep.mubr.msk.f32.mxu0 %vm6838_vm5, %v6839_v61 }
0x243b   :  { %v3744_v0 = vmul.f32 %v5404_v27, %v3737_v59 }
0x243d   :  { %6051 = vmatmul.mubr.msk.f32.gmra.mrb[38].mxu0 %vm133_vm1, %v6820_v4  ;;  %v7617_v18 = vadd.f32 %v5405_v3, %v3744_v0 }
0x243f   :  { %6033 = vmatprep.mubr.msk.f32.mxu1 %vm133_vm1, %v7617_v18 }
0x2440   :  { %6034 = vmatmul.mubr.msk.f32.vlgmr.msra.gmra.mrb[38].mxu1 %vm133_vm1, %v7619_v42 }
0x2508   :  { %v3930_v61 = vpop.f32.mrb[34].mxu0 }
0x2509   :  { %v6046_v6 = vpop.f32.mrb[35].mxu0  ;;  %v3931_v8 = vadd.f32 %v3930_v61, %v3862_v37 }
0x250c   :  { %v3935_v7 = vpop.f32.mrb[36].mxu0 }
0x250d   :  { %v3936_v9 = vadd.f32 %v3935_v7, %v3862_v37  ;;  %v6049_v10 = vpop.f32.mrb[37].mxu0 }
0x250f   :  { %v7625_v11 = vpack.i.bf16 %v3936_v9, %v3931_v8  ;;  %v6389_v53 = vpack.c.bf16 %v3936_v9, %v3931_v8 }
0x2510   :  { %v3940_v1 = vpop.f32.mrb[38].mxu0 }
0x2511   :  { %v7627_v12 = vadd.f32 %v3940_v1, %v3862_v37  ;;  %6622 = vrot.lane.b32.xlu1 %v7625_v11, %s6825_s28  ;;  %6391 = vmatprep.subr.msk.bf16.mxu1 %vm6978_vm2, %v6389_v53  ;;  %v6052_v15 = vpop.f32.mrb[39].mxu0 }
0x2512   :  { %6394 = vmatpush3.bf16.xpose.msk.msra.mxu1 %vm6978_vm2, %v6389_v53 }
0x2513   :  { %v6035_v40 = vpop.f32.mrb[38].mxu1  ;;  %6057 = vmatprep.subr.msk.mxu1 %vm49_vm0, %v7627_v12 }
0x2514   :  { %v3835_v41 = vpop.f32.mrb[39].mxu1  ;;  %v7641_v21 = vadd.f32 %v6035_v40, %v5410_v45 }
0x2515   :  { %v7637_v19 = vadd.f32 %v5410_v45, %v3835_v41  ;;  %4158 = vrot.lane.b32.xlu1 %v7627_v12, %s6825_s28 }
0x2517   :  { %4150 = vrot.lane.b32.xlu0 %v7637_v19, %s6825_s28  ;;  %6059 = vmatprep.mubr.msk.f32.mxu1 %vm49_vm0, %v7637_v19 }
0x2519   :  { %4152 = vrot.lane.b32.xlu1 %v7641_v21, %s6825_s28 }
0x251a   :  { %6058 = vmatpush3.xpose.msk.msra.mxu1 %vm49_vm0, %v7627_v12 }
0x251d   :  { %6060 = vmatmul.mubr.msk.f32.vlgmr.msra.gmra.mrb[40].mxu1 %vm49_vm0, %v7641_v21 }
0x2583   :  { %v6623_v22 = vpop.permute.xlu1 %6622 }
0x2584   :  { %v6625_v23 = vunpack.i.h.bf16 %v6623_v22  ;;  %v6624_v24 = vunpack.i.l.bf16 %v6623_v22 }
0x2586   :  { %v6399_v25 = vpack.c.bf16 %v6625_v23, %v6624_v24 }
0x2587   :  { %v4159_v17 = vpop.permute.xlu1 %4158 }
0x2588   :  { %6401 = vmatprep.subr.msk.bf16.mxu1 %vm6978_vm2, %v6399_v25 }
0x2589   :  { %v4151_v26 = vpop.permute.xlu0 %4150  ;;  %6404 = vmatpush3.bf16.xpose.msk.msra.mxu1 %vm6978_vm2, %v6399_v25 }
0x258a   :  { %6075 = vmatprep.subr.msk.mxu1 %vm49_vm0, %v4159_v17  ;;  %6077 = vmatprep.mubr.msk.f32.mxu1 %vm49_vm0, %v4151_v26 }
0x258b   :  { %v4153_v16 = vpop.permute.xlu1 %4152 }
0x2591   :  { %6076 = vmatpush3.xpose.msk.msra.mxu1 %vm49_vm0, %v4159_v17 }
0x2594   :  { %6078 = vmatmul.mubr.msk.f32.vlgmr.msra.gmra.mrb[42].mxu1 %vm49_vm0, %v4153_v16 }
0x25f0   :  { %v6061_v29 = vpop.f32.mrb[40].mxu1 }
0x25f1   :  { %v4035_v30 = vmul.f32 0.35355338, %v6061_v29  ;;  %v4025_v31 = vpop.f32.mrb[41].mxu1 }
0x25f2   :  { %v4034_v32 = vmul.f32 0.35355338, %v4025_v31 }
0x25f3   :  { %v4037_v34 = vadd.f32 %v7664_v33, %v4035_v30 }
0x25f4   :  { %v4036_v13 = vadd.f32 %v7670_v14, %v4034_v32 }
0x25f5   :  { %v4041_v38 = vsel %vm1119_vm4, %v4037_v34, -inf }
0x25f6   :  { %4042 = vmax.xlane.f32.xlu1 %v4041_v38  ;;  %v4038_v36 = vsel %vm1119_vm4, %v4036_v13, -inf }
0x25f7   :  { %4039 = vmax.xlane.f32.xlu0 %v4038_v36 }
0x2667   :  { %v6079_v39 = vpop.f32.mrb[42].mxu1 }
0x2668   :  { %v4236_v35 = vpop.f32.mrb[43].mxu1  ;;  %v4246_v5 = vmul.f32 0.35355338, %v6079_v39 }
0x2669   :  { %v4245_v43 = vmul.f32 0.35355338, %v4236_v35 }
0x266a   :  { %v4248_v47 = vadd.f32 %v7664_v33, %v4246_v5 }
0x266b   :  { %v4247_v2 = vadd.f32 %v7670_v14, %v4245_v43 }
0x266c   :  { %v4252_v44 = vsel %vm1119_vm4, %v4248_v47, -inf }
0x266d   :  { %v4249_v45 = vsel %vm1119_vm4, %v4247_v2, -inf }
0x266e   :  { %4250 = vmax.xlane.f32.xlu0 %v4249_v45 }
0x2672   :  { %4253 = vmax.xlane.f32.xlu0 %v4252_v44 }
0x2683   :  { %v4043_v46 = vpop.xlane.xlu1 %4042 }
0x2684   :  { %v4045_v48 = vsub.f32 %v4037_v34, %v4043_v46  ;;  %v4040_v49 = vpop.xlane.xlu0 %4039 }
0x2685   :  { %v4044_v58 = vsub.f32 %v4036_v13, %v4040_v49 }
0x2686   :  { %v4048_v51 = vmul.f32 1.442695, %v4045_v48 }
0x2687   :  { %v4046_v52 = vmul.f32 1.442695, %v4044_v58 }
0x2688   :  { %6772 = vpow2.f32 %v4048_v51 }
0x2689   :  { %6774 = vpow2.f32 %v4046_v52 }
0x2692   :  { %v6773_v54 = vpop.eup %6772 }
0x2693   :  { %v6775_v55 = vpop.eup %6774  ;;  %v4053_v50 = vsel %vm1119_vm4, %v6773_v54, 0.0 }
0x2694   :  { %4054 = vadd.xlane.f32.xlu1 %v4053_v50  ;;  %v4050_v20 = vsel %vm1119_vm4, %v6775_v55, 0.0 }
0x2695   :  { %4051 = vadd.xlane.f32.xlu0 %v4050_v20 }
0x26a5   :  { %4064 = vrot.lane.b32.xlu1 %v7627_v12, %s6824_s27 }
0x26a9   :  { %6632 = vrot.lane.b32.xlu1 %v7625_v11, %s6823_s4 }
0x26ab   :  { %6627 = vrot.lane.b32.xlu0 %v7625_v11, %s6824_s27 }
0x26ad   :  { %4275 = vrot.lane.b32.xlu1 %v7627_v12, %s6823_s4 }
0x26fb   :  { %v4251_v56 = vpop.xlane.xlu0 %4250 }
0x26fc   :  { %v4255_v28 = vsub.f32 %v4247_v2, %v4251_v56 }
0x26fe   :  { %v4257_v27 = vmul.f32 1.442695, %v4255_v28 }
0x26ff   :  { %v4254_v57 = vpop.xlane.xlu0 %4253 }
0x2700   :  { %6776 = vpow2.f32 %v4257_v27  ;;  %v4256_v62 = vsub.f32 %v4248_v47, %v4254_v57 }
0x2702   :  { %v4259_v59 = vmul.f32 1.442695, %v4256_v62 }
0x2704   :  { %6778 = vpow2.f32 %v4259_v59 }
0x270a   :  { %v6777_v63 = vpop.eup %6776 }
0x270b   :  { %v4261_v0 = vsel %vm1119_vm4, %v6777_v63, 0.0 }
0x270c   :  { %4262 = vadd.xlane.f32.xlu0 %v4261_v0 }
0x270e   :  { %v6779_v3 = vpop.eup %6778 }
0x270f   :  { %v4264_v4 = vsel %vm1119_vm4, %v6779_v3, 0.0 }
0x2710   :  { %4265 = vadd.xlane.f32.xlu1 %v4264_v4 }
0x2721   :  { %v4055_v61 = vpop.xlane.xlu1 %4054  ;;  %4369 = vrot.lane.b32.xlu1 %v7627_v12, %s6829_s16 }
0x2722   :  { %6780 = vrcp.f32 %v4055_v61  ;;  %6637 = vrot.lane.b32.xlu0 %v7625_v11, %s6829_s16  ;;  %v4052_v6 = vpop.xlane.xlu0 %4051 }
0x2723   :  { %6782 = vrcp.f32 %v4052_v6 }
0x2725   :  { %v4065_v37 = vpop.permute.xlu1 %4064  ;;  %4363 = vrot.lane.b32.xlu1 %v7641_v21, %s6829_s16 }
0x2726   :  { %4361 = vrot.lane.b32.xlu0 %v7637_v19, %s6829_s16  ;;  %v6628_v7 = vpop.permute.xlu0 %6627 }
0x2727   :  { %v6630_v8 = vunpack.i.h.bf16 %v6628_v7  ;;  %v6629_v9 = vunpack.i.l.bf16 %v6628_v7 }
0x2729   :  { %v6395_v10 = vpack.c.bf16 %v6630_v8, %v6629_v9  ;;  %v6633_v53 = vpop.permute.xlu1 %6632 }
0x272a   :  { %v6635_v1 = vunpack.i.h.bf16 %v6633_v53  ;;  %v6634_v15 = vunpack.i.l.bf16 %v6633_v53 }
0x272b   :  { %6396 = vmatprep.subr.bf16.mxu0 %v6395_v10 }
0x272c   :  { %v6781_v40 = vpop.eup %6780  ;;  %6398 = vmatpush3.bf16.msra.mxu0 %v6395_v10  ;;  %v6405_v24 = vpack.c.bf16 %v6635_v1, %v6634_v15 }
0x272d   :  { %v6783_v41 = vpop.eup %6782  ;;  %6066 = vmatprep.subr.mxu0 %v4065_v37  ;;  %v4059_v23 = vmul.f32 %v6781_v40, %v6773_v54  ;;  %v4276_v25 = vpop.permute.xlu1 %4275 }
0x272e   :  { %v4058_v22 = vmul.f32 %v6783_v41, %v6775_v55 }
0x2730   :  { %6067 = vmatpush3.msra.mxu0 %v4065_v37  ;;  %6068 = vmatprep.mubr.msk.f32.mxu0 %vm1119_vm4, %v4058_v22 }
0x2731   :  { %6069 = vmatmul.mubr.msk.f32.vlgmr.msra.gmra.mrb[40].mxu0 %vm1119_vm4, %v4059_v23  ;;  %6406 = vmatprep.subr.bf16.mxu0 %v6405_v24 }
0x2732   :  { %6408 = vmatpush3.bf16.msra.mxu0 %v6405_v24 }
0x2733   :  { %6084 = vmatprep.subr.mxu0 %v4276_v25 }
0x2736   :  { %6085 = vmatpush3.msra.mxu0 %v4276_v25 }
0x2799   :  { %v4263_v17 = vpop.xlane.xlu0 %4262 }
0x279a   :  { %6784 = vrcp.f32 %v4263_v17 }
0x279d   :  { %v4266_v26 = vpop.xlane.xlu1 %4265  ;;  %v6638_v16 = vpop.permute.xlu0 %6637 }
0x279e   :  { %6786 = vrcp.f32 %v4266_v26  ;;  %v6640_v29 = vunpack.i.h.bf16 %v6638_v16  ;;  %v6639_v30 = vunpack.i.l.bf16 %v6638_v16 }
0x27a0   :  { %v6409_v31 = vpack.c.bf16 %v6640_v29, %v6639_v30 }
0x27a1   :  { %v4362_v36 = vpop.permute.xlu0 %4361  ;;  %v4370_v39 = vpop.permute.xlu1 %4369 }
0x27a2   :  { %6411 = vmatprep.subr.msk.bf16.mxu0 %vm6978_vm2, %v6409_v31 }
0x27a4   :  { %v6785_v32 = vpop.eup %6784 }
0x27a5   :  { %v4269_v34 = vmul.f32 %v6785_v32, %v6777_v63  ;;  %v4364_v35 = vpop.permute.xlu1 %4363 }
0x27a7   :  { %6086 = vmatprep.mubr.msk.f32.mxu0 %vm1119_vm4, %v4269_v34 }
0x27a8   :  { %v6787_v13 = vpop.eup %6786 }
0x27a9   :  { %v4270_v38 = vmul.f32 %v6787_v13, %v6779_v3 }
0x27ab   :  { %6087 = vmatmul.mubr.msk.f32.vlgmr.msra.gmra.mrb[42].mxu0 %vm1119_vm4, %v4270_v38 }
0x27ac   :  { %6414 = vmatpush3.bf16.xpose.msk.msra.mxu0 %vm6978_vm2, %v6409_v31  ;;  %6095 = vmatprep.mubr.msk.f32.mxu0 %vm49_vm0, %v4362_v36 }
0x27ad   :  { %6093 = vmatprep.subr.msk.mxu0 %vm49_vm0, %v4370_v39 }
0x27b4   :  { %6094 = vmatpush3.xpose.msk.msra.mxu0 %vm49_vm0, %v4370_v39 }
0x27b7   :  { %6096 = vmatmul.mubr.msk.f32.vlgmr.msra.gmra.mrb[44].mxu0 %vm49_vm0, %v4364_v35 }
0x2804   :  { %v7711_v5 = vpop.f32.mrb[40].mxu0 }
0x2805   :  { %v7713_v43 = vpop.f32.mrb[41].mxu0 }
0x287e   :  { %v7715_v2 = vpop.f32.mrb[42].mxu0 }
0x287f   :  { %v7717_v47 = vpop.f32.mrb[43].mxu0 }
0x288a   :  { %v6097_v45 = vpop.f32.mrb[44].mxu0 }
0x288b   :  { %v4457_v44 = vmul.f32 0.35355338, %v6097_v45  ;;  %v4447_v46 = vpop.f32.mrb[45].mxu0 }
0x288c   :  { %v4456_v48 = vmul.f32 0.35355338, %v4447_v46 }
0x288d   :  { %v4459_v49 = vadd.f32 %v7664_v33, %v4457_v44 }
0x288e   :  { %v4458_v58 = vadd.f32 %v7670_v14, %v4456_v48 }
0x288f   :  { %v4463_v51 = vsel %vm1119_vm4, %v4459_v49, -inf }
0x2890   :  { %4464 = vmax.xlane.f32.xlu1 %v4463_v51  ;;  %v4460_v52 = vsel %vm1119_vm4, %v4458_v58, -inf }
0x2891   :  { %4461 = vmax.xlane.f32.xlu0 %v4460_v52 }
0x28a1   :  { %4486 = vrot.lane.b32.xlu1 %v7627_v12, %s6828_s15 }
0x28a5   :  { %6647 = vrot.lane.b32.xlu1 %v7625_v11, %s6831_s18 }
0x28a9   :  { %4580 = vrot.lane.b32.xlu1 %v7627_v12, %s6831_s18 }
0x28ad   :  { %4574 = vrot.lane.b32.xlu1 %v7641_v21, %s6831_s18 }
0x291d   :  { %v4465_v54 = vpop.xlane.xlu1 %4464 }
0x291e   :  { %v4467_v55 = vsub.f32 %v4459_v49, %v4465_v54  ;;  %v4462_v50 = vpop.xlane.xlu0 %4461  ;;  %v5445_v54 = vld [vmem:[%s7891_s7 + $0x68] sm:$0xff] }
0x291f   :  { %v4466_v20 = vsub.f32 %v4458_v58, %v4462_v50 }
0x2920   :  { %v4470_v56 = vmul.f32 1.442695, %v4467_v55  ;;  %v5446_v55 = vld [vmem:[%s7891_s7 + $0x70] sm:$0xff] }
0x2921   :  { %v4468_v28 = vmul.f32 1.442695, %v4466_v20  ;;  %v4487_v63 = vpop.permute.xlu1 %4486  ;;  %v5447_v20 = vld [vmem:[%s7891_s7 + $0x78] sm:$0xff] }
0x2922   :  { %6788 = vpow2.f32 %v4470_v56  ;;  %v6433_v56 = vpack.c.bf16 %v5447_v20, %v5446_v55 }
0x2923   :  { %6790 = vpow2.f32 %v4468_v28 }
0x2925   :  { %v6648_v6 = vpop.permute.xlu1 %6647 }
0x2926   :  { %v6650_v7 = vunpack.i.h.bf16 %v6648_v6  ;;  %v6649_v8 = vunpack.i.l.bf16 %v6648_v6 }
0x2928   :  { %v6419_v1 = vpack.c.bf16 %v6650_v7, %v6649_v8 }
0x2929   :  { %v4581_v40 = vpop.permute.xlu1 %4580 }
0x292c   :  { %v6789_v27 = vpop.eup %6788 }
0x292d   :  { %v4475_v57 = vsel %vm1119_vm4, %v6789_v27, 0.0  ;;  %v6791_v62 = vpop.eup %6790  ;;  %v4575_v41 = vpop.permute.xlu1 %4574 }
0x292e   :  { %4476 = vadd.xlane.f32.xlu0 %v4475_v57  ;;  %v4472_v59 = vsel %vm1119_vm4, %v6791_v62, 0.0 }
0x2932   :  { %4473 = vadd.xlane.f32.xlu0 %v4472_v59 }
0x2948   :  { %6642 = vrot.lane.b32.xlu0 %v7625_v11, %s6828_s15 }
0x294c   :  { %4572 = vrot.lane.b32.xlu0 %v7637_v19, %s6831_s18 }
0x29bb   :  { %v4477_v21 = vpop.xlane.xlu0 %4476 }
0x29bc   :  { %6792 = vrcp.f32 %v4477_v21 }
0x29bf   :  { %v4474_v0 = vpop.xlane.xlu0 %4473 }
0x29c0   :  { %6794 = vrcp.f32 %v4474_v0 }
0x29c3   :  { %v6643_v3 = vpop.permute.xlu0 %6642 }
0x29c4   :  { %v6645_v4 = vunpack.i.h.bf16 %v6643_v3  ;;  %v6644_v61 = vunpack.i.l.bf16 %v6643_v3 }
0x29c6   :  { %v6415_v37 = vpack.c.bf16 %v6645_v4, %v6644_v61  ;;  %v6793_v9 = vpop.eup %6792 }
0x29c7   :  { %v4481_v19 = vmul.f32 %v6793_v9, %v6789_v27  ;;  %v4573_v15 = vpop.permute.xlu0 %4572 }
0x29c8   :  { %6416 = vmatprep.subr.bf16.mxu1 %v6415_v37 }
0x29c9   :  { %6418 = vmatpush3.bf16.msra.mxu1 %v6415_v37 }
0x29ca   :  { %v6795_v10 = vpop.eup %6794  ;;  %6102 = vmatprep.subr.mxu1 %v4487_v63 }
0x29cb   :  { %v4480_v53 = vmul.f32 %v6795_v10, %v6791_v62 }
0x29cd   :  { %6103 = vmatpush3.msra.mxu1 %v4487_v63  ;;  %6104 = vmatprep.mubr.msk.f32.mxu1 %vm1119_vm4, %v4480_v53 }
0x29ce   :  { %6105 = vmatmul.mubr.msk.f32.vlgmr.msra.gmra.mrb[44].mxu1 %vm1119_vm4, %v4481_v19  ;;  %6421 = vmatprep.subr.msk.bf16.mxu1 %vm6978_vm2, %v6419_v1 }
0x29cf   :  { %6113 = vmatprep.mubr.msk.f32.mxu1 %vm49_vm0, %v4573_v15 }
0x29d4   :  { %6424 = vmatpush3.bf16.xpose.msk.msra.mxu1 %vm6978_vm2, %v6419_v1 }
0x29d5   :  { %6111 = vmatprep.subr.msk.mxu1 %vm49_vm0, %v4581_v40 }
0x29dc   :  { %6112 = vmatpush3.xpose.msk.msra.mxu1 %vm49_vm0, %v4581_v40 }
0x29df   :  { %6114 = vmatmul.mubr.msk.f32.vlgmr.msra.gmra.mrb[46].mxu1 %vm49_vm0, %v4575_v41 }
0x2aa1   :  { %v6106_v22 = vpop.f32.mrb[44].mxu1 }
0x2aa2   :  { %v4563_v23 = vpop.f32.mrb[45].mxu1 }
0x2ab2   :  { %v6115_v24 = vpop.f32.mrb[46].mxu1 }
0x2ab3   :  { %v4668_v25 = vmul.f32 0.35355338, %v6115_v24  ;;  %v4658_v17 = vpop.f32.mrb[47].mxu1 }
0x2ab4   :  { %v4667_v26 = vmul.f32 0.35355338, %v4658_v17 }
0x2ab5   :  { %v4670_v16 = vadd.f32 %v7664_v33, %v4668_v25 }
0x2ab6   :  { %v4669_v29 = vadd.f32 %v7670_v14, %v4667_v26 }
0x2ab7   :  { %v4674_v60 = vsel %vm1119_vm4, %v4670_v16, -inf }
0x2ab8   :  { %4675 = vmax.xlane.f32.xlu1 %v4674_v60  ;;  %v4671_v30 = vsel %vm1119_vm4, %v4669_v29, -inf }
0x2ab9   :  { %4672 = vmax.xlane.f32.xlu0 %v4671_v30  ;;  %v5455_v30 = vld [vmem:[%s7894_s8 + $0x30] sm:$0xff] }
0x2ac9   :  { %4697 = vrot.lane.b32.xlu1 %v7627_v12, %s6830_s17 }
0x2acd   :  { %4785 = vrot.lane.b32.xlu1 %v7717_v47, %s6834_s21 }
0x2ad1   :  { %4787 = vrot.lane.b32.xlu1 %v7715_v2, %s6834_s21 }
0x2ad5   :  { %4795 = vrot.lane.b32.xlu1 %v6106_v22, %s7905_s2 }
0x2b45   :  { %v4676_v33 = vpop.xlane.xlu1 %4675 }
0x2b46   :  { %v4678_v31 = vsub.f32 %v4670_v16, %v4676_v33  ;;  %v4673_v14 = vpop.xlane.xlu0 %4672  ;;  %v5456_v33 = vld [vmem:[%s7894_s8 + $0x38] sm:$0xff] }
0x2b47   :  { %v4677_v32 = vsub.f32 %v4669_v29, %v4673_v14  ;;  %v5454_v29 = vld [vmem:[%s7894_s8 + $0x28] sm:$0xff]  ;;  %v5460_v14 = vld [vmem:[%s7895_s9 + $0x40] sm:$0xff] }
0x2b48   :  { %v4681_v34 = vmul.f32 1.442695, %v4678_v31  ;;  %v6441_v31 = vpack.c.bf16 %v5456_v33, %v5455_v30 }
0x2b49   :  { %v4679_v13 = vmul.f32 1.442695, %v4677_v32  ;;  %v4698_v49 = vpop.permute.xlu1 %4697  ;;  %v5461_v32 = vld [vmem:[%s7895_s9 + $0x48] sm:$0xff] }
0x2b4a   :  { %6796 = vpow2.f32 %v4681_v34  ;;  %v5462_v34 = vld [vmem:[%s7895_s9 + $0x50] sm:$0xff] }
0x2b4b   :  { %6798 = vpow2.f32 %v4679_v13  ;;  %v6445_v13 = vpack.c.bf16 %v5461_v32, %v5460_v14 }
0x2b4d   :  { %v4786_v57 = vpop.permute.xlu1 %4785 }
0x2b4e   :  { %v4807_v63 = vsel %vm49_vm0, %v7713_v43, %v4786_v57  ;;  %v5448_v43 = vld [vmem:[%s7887_s11 + $0x15] ss:$0 sm:$0xff] }
0x2b51   :  { %v4788_v62 = vpop.permute.xlu1 %4787 }
0x2b52   :  { %v4808_v3 = vsel %vm49_vm0, %v7711_v5, %v4788_v62  ;;  %v5457_v62 = vld [vmem:[%s7887_s11 + $0x18] ss:$0 sm:$0xff] }
0x2b54   :  { %v6797_v38 = vpop.eup %6796 }
0x2b55   :  { %v4686_v36 = vsel %vm1119_vm4, %v6797_v38, 0.0  ;;  %v6799_v12 = vpop.eup %6798  ;;  %v4796_v59 = vpop.permute.xlu1 %4795 }
0x2b56   :  { %4687 = vadd.xlane.f32.xlu0 %v4686_v36  ;;  %v4683_v39 = vsel %vm1119_vm4, %v6799_v12, 0.0  ;;  %v4810_v6 = vsel %vm369_vm3, %v4808_v3, %v4796_v59 }
0x2b5a   :  { %4684 = vadd.xlane.f32.xlu0 %v4683_v39  ;;  %v5465_v39 = vld [vmem:[%s7895_s9 + $0x68] sm:$0xff] }
0x2b70   :  { %6652 = vrot.lane.b32.xlu0 %v7625_v11, %s6830_s17  ;;  %v5444_v11 = vld [vmem:[%s7891_s7 + $0x60] sm:$0xff] }
0x2b71   :  { %v6429_v50 = vpack.c.bf16 %v5445_v54, %v5444_v11 }
0x2b74   :  { %4793 = vrot.lane.b32.xlu0 %v4563_v23, %s7905_s2 }
0x2be3   :  { %v4688_v35 = vpop.xlane.xlu0 %4687 }
0x2be4   :  { %6800 = vrcp.f32 %v4688_v35 }
0x2be7   :  { %v4685_v2 = vpop.xlane.xlu0 %4684 }
0x2be8   :  { %6802 = vrcp.f32 %v4685_v2 }
0x2beb   :  { %v6653_v47 = vpop.permute.xlu0 %6652 }
0x2bec   :  { %v6655_v45 = vunpack.i.h.bf16 %v6653_v47  ;;  %v6654_v44 = vunpack.i.l.bf16 %v6653_v47 }
0x2bee   :  { %v6425_v46 = vpack.c.bf16 %v6655_v45, %v6654_v44  ;;  %v6801_v48 = vpop.eup %6800 }
0x2bef   :  { %v4692_v52 = vmul.f32 %v6801_v48, %v6797_v38  ;;  %v4794_v21 = vpop.permute.xlu0 %4793  ;;  %v5463_v38 = vld [vmem:[%s7895_s9 + $0x58] sm:$0xff] }
0x2bf0   :  { %6426 = vmatprep.subr.bf16.mxu0 %v6425_v46  ;;  %v4809_v4 = vsel %vm369_vm3, %v4807_v63, %v4794_v21  ;;  %v6449_v36 = vpack.c.bf16 %v5463_v38, %v5462_v34 }
0x2bf1   :  { %6428 = vmatpush3.bf16.msra.mxu0 %v6425_v46 }
0x2bf2   :  { %v6803_v58 = vpop.eup %6802  ;;  %6120 = vmatprep.subr.mxu0 %v4698_v49 }
0x2bf3   :  { %v4691_v51 = vmul.f32 %v6803_v58, %v6799_v12  ;;  %v5464_v12 = vld [vmem:[%s7895_s9 + $0x60] sm:$0xff]  ;;  %v5451_v58 = vld [vmem:[%s7887_s11 + $0x16] ss:$0 sm:$0xff] }
0x2bf4   :  { %v6453_v35 = vpack.c.bf16 %v5465_v39, %v5464_v12 }
0x2bf5   :  { %6121 = vmatpush3.msra.mxu0 %v4698_v49  ;;  %6122 = vmatprep.mubr.msk.f32.mxu0 %vm1119_vm4, %v4691_v51 }
0x2bf6   :  { %6123 = vmatmul.mubr.msk.f32.vlgmr.msra.gmra.mrb[46].mxu0 %vm1119_vm4, %v4692_v52  ;;  %6430 = vmatprep.subr.bf16.mxu0 %v6429_v50  ;;  %v5452_v52 = vld [vmem:[%s7887_s11 + $0x17] ss:$0 sm:$0xff] }
0x2bf7   :  { %6432 = vmatpush3.bf16.msra.mxu0 %v6429_v50 }
0x2bf8   :  { %6434 = vmatprep.subr.bf16.mxu0 %v6433_v56 }
0x2bfb   :  { %6436 = vmatpush3.bf16.msra.mxu0 %v6433_v56 }
0x2bfc   :  { %6446 = vmatprep.subr.bf16.mxu0 %v6445_v13 }
0x2cc9   :  { %v6124_v28 = vpop.f32.mrb[46].mxu0 }
0x2cca   :  { %4803 = vrot.lane.b32.xlu1 %v6124_v28, %s7907_s14  ;;  %v4774_v27 = vpop.f32.mrb[47].mxu0  ;;  %v5466_v28 = vld [vmem:[%s7895_s9 + $0x70] sm:$0xff] }
0x2ccb   :  { %4801 = vrot.lane.b32.xlu0 %v4774_v27, %s7907_s14  ;;  %v5467_v27 = vld [vmem:[%s7895_s9 + $0x78] sm:$0xff] }
0x2ccc   :  { %v6457_v57 = vpack.c.bf16 %v5467_v27, %v5466_v28 }
0x2d3c   :  { %v4804_v0 = vpop.permute.xlu1 %4803 }
0x2d3d   :  { %v4802_v61 = vpop.permute.xlu0 %4801  ;;  %v4812_v7 = vsel %vm1119_vm4, %v4810_v6, %v4804_v0 }
0x2d3e   :  { %v4811_v37 = vsel %vm1119_vm4, %v4809_v4, %v4802_v61  ;;  %v5468_v61 = vld [vmem:[%s7887_s11 + $0x19] ss:$0 sm:$0xff] }
0x2d3f   :  { %6133 = vmatprep.mubr.msk.f32.mxu0 %vm133_vm1, %v4811_v37 }
0x2d40   :  { %6134 = vmatmul.mubr.msk.f32.vlgmr.msra.gmra.mrb[48].mxu0 %vm133_vm1, %v4812_v7 }
0x2d41   :  { %6448 = vmatpush3.bf16.msra.mxu0 %v6445_v13  ;;  %v5471_v13 = vld [vmem:[%s7887_s11 + $0x1a] ss:$0 sm:$0xff] }
0x2d42   :  { %6450 = vmatprep.subr.bf16.mxu0 %v6449_v36 }
0x2d45   :  { %6452 = vmatpush3.bf16.msra.mxu0 %v6449_v36 }
0x2d46   :  { %6454 = vmatprep.subr.bf16.mxu0 %v6453_v35 }
0x2d49   :  { %6456 = vmatpush3.bf16.msra.mxu0 %v6453_v35  ;;  %v5472_v35 = vld [vmem:[%s7887_s11 + $0x1b] ss:$0 sm:$0xff] }
0x2d4a   :  { %6458 = vmatprep.subr.bf16.mxu0 %v6457_v57 }
0x2d4d   :  { %6460 = vmatpush3.bf16.msra.mxu0 %v6457_v57 }
0x2e13   :  { %v6135_v8 = vpop.f32.mrb[48].mxu0 }
0x2e14   :  { %v4901_v9 = vadd.f32 %v6135_v8, %v5448_v43  ;;  %v4895_v5 = vpop.f32.mrb[49].mxu0 }
0x2e15   :  { %v4896_v10 = vadd.f32 %v5448_v43, %v4895_v5 }
0x2e16   :  { %v4905_v53 = vadd.f32 %v4901_v9, %v7619_v42 }
0x2e17   :  { %v4904_v1 = vadd.f32 %v4896_v10, %v7617_v18  ;;  %v5453_v18 = vld [vmem:[%s7894_s8 + $0x20] sm:$0xff] }
0x2e18   :  { %v4909_v19 = vsel %vm133_vm1, %v4905_v53, 0.0  ;;  %v6437_v60 = vpack.c.bf16 %v5454_v29, %v5453_v18  ;;  %v5179_v18 = vld [vmem:[%s7896_s10 + $0x18] sm:$0xff] }
0x2e19   :  { %4910 = vadd.xlane.f32.xlu1 %v4909_v19  ;;  %v4906_v15 = vsel %vm133_vm1, %v4904_v1, 0.0 }
0x2e1a   :  { %4907 = vadd.xlane.f32.xlu0 %v4906_v15  ;;  %6438 = vmatprep.subr.bf16.mxu1 %v6437_v60 }
0x2e1b   :  { %6440 = vmatpush3.bf16.msra.mxu1 %v6437_v60 }
0x2e1c   :  { %6442 = vmatprep.subr.bf16.mxu1 %v6441_v31 }
0x2e1f   :  { %6444 = vmatpush3.bf16.msra.mxu1 %v6441_v31 }
0x2ea6   :  { %v4911_v40 = vpop.xlane.xlu1 %4910 }
0x2ea7   :  { %v4913_v41 = vmul.f32 0.03125, %v4911_v40  ;;  %v4908_v22 = vpop.xlane.xlu0 %4907 }
0x2ea8   :  { %v4912_v23 = vmul.f32 0.03125, %v4908_v22 }
0x2ea9   :  { %v4915_v24 = vsub.f32 %v4905_v53, %v4913_v41 }
0x2eaa   :  { %v4914_v25 = vsub.f32 %v4904_v1, %v4912_v23 }
0x2eab   :  { %v4917_v16 = vmul.f32 %v4915_v24, %v4915_v24 }
0x2eac   :  { %v4916_v17 = vmul.f32 %v4914_v25, %v4914_v25 }
0x2ead   :  { %v4921_v42 = vsel %vm133_vm1, %v4917_v16, 0.0 }
0x2eae   :  { %v4918_v26 = vsel %vm133_vm1, %v4916_v17, 0.0  ;;  %v5176_v17 = vld [vmem:[%s7896_s10] sm:$0xff] }
0x2eaf   :  { %4919 = vadd.xlane.f32.xlu0 %v4918_v26  ;;  %v5177_v26 = vld [vmem:[%s7896_s10 + $0x8] sm:$0xff] }
0x2eb0   :  { %v6461_v16 = vpack.c.bf16 %v5177_v26, %v5176_v17 }
0x2eb2   :  { %6462 = vmatprep.subr.bf16.mxu1 %v6461_v16 }
0x2eb3   :  { %4922 = vadd.xlane.f32.xlu0 %v4921_v42  ;;  %v5178_v42 = vld [vmem:[%s7896_s10 + $0x10] sm:$0xff] }
0x2eb4   :  { %v6465_v29 = vpack.c.bf16 %v5179_v18, %v5178_v42 }
0x2f3c   :  { %v4920_v2 = vpop.xlane.xlu0 %4919 }
0x2f3d   :  { %v4924_v47 = vmul.f32 0.03125, %v4920_v2 }
0x2f3f   :  { %v4926_v45 = vadd.f32 1e-05, %v4924_v47 }
0x2f40   :  { %v4923_v44 = vpop.xlane.xlu0 %4922 }
0x2f41   :  { %6804 = vrsqrt.f32 %v4926_v45  ;;  %v4925_v46 = vmul.f32 0.03125, %v4923_v44  ;;  %v5473_v44 = vld [vmem:[%s7887_s11 + $0x3] ss:$0 sm:$0xff] }
0x2f43   :  { %v4927_v48 = vadd.f32 1e-05, %v4925_v46 }
0x2f45   :  { %6806 = vrsqrt.f32 %v4927_v48 }
0x2f4b   :  { %v6805_v49 = vpop.eup %6804 }
0x2f4c   :  { %v4930_v51 = vmul.f32 %v6805_v49, %v4914_v25 }
0x2f4e   :  { %v4937_v11 = vmul.f32 %v5451_v58, %v4930_v51 }
0x2f4f   :  { %v6807_v54 = vpop.eup %6806 }
0x2f50   :  { %v4931_v55 = vmul.f32 %v6807_v54, %v4915_v24  ;;  %v4944_v50 = vadd.f32 %v5452_v52, %v4937_v11 }
0x2f52   :  { %v4938_v20 = vmul.f32 %v5451_v58, %v4931_v55  ;;  %6144 = vmatprep.mubr.msk.f32.mxu1 %vm133_vm1, %v4944_v50 }
0x2f54   :  { %v4945_v56 = vadd.f32 %v5452_v52, %v4938_v20 }
0x2f56   :  { %6145 = vmatmul.mubr.msk.f32.vlgmr.msra.gmra.mrb[48].mxu1 %vm133_vm1, %v4945_v56 }
0x2f57   :  { %6464 = vmatpush3.bf16.msra.mxu1 %v6461_v16 }
0x2f58   :  { %6466 = vmatprep.subr.bf16.mxu1 %v6465_v29 }
0x2f5b   :  { %6468 = vmatpush3.bf16.msra.mxu1 %v6465_v29 }
0x3029   :  { %v6146_v59 = vpop.f32.mrb[48].mxu1 }
0x302a   :  { %v5034_v21 = vadd.f32 %v6146_v59, %v5457_v62  ;;  %v5028_v63 = vpop.f32.mrb[49].mxu1 }
0x302b   :  { %v5029_v0 = vadd.f32 %v5457_v62, %v5028_v63 }
0x302c   :  { %v5038_v4 = vmax.f32 %v5034_v21, 0.0 }
0x302d   :  { %v5037_v3 = vmax.f32 %v5029_v0, 0.0 }
0x302f   :  { %6163 = vmatprep.mubr.msk.f32.mxu0 %vm2561_vm6, %v5037_v3 }
0x3030   :  { %6164 = vmatmul.mubr.msk.f32.vlgmr.msra.gmra.mrb[50].mxu0 %vm2561_vm6, %v5038_v4 }
0x3103   :  { %v6165_v6 = vpop.f32.mrb[50].mxu0 }
0x3104   :  { %v5131_v37 = vadd.f32 %v6165_v6, %v5468_v61  ;;  %v5125_v7 = vpop.f32.mrb[51].mxu0 }
0x3105   :  { %v5126_v43 = vadd.f32 %v5468_v61, %v5125_v7 }
0x3106   :  { %v5135_v8 = vadd.f32 %v5131_v37, %v4945_v56 }
0x3107   :  { %v5134_v9 = vadd.f32 %v5126_v43, %v4944_v50 }
0x3108   :  { %v5139_v5 = vsel %vm133_vm1, %v5135_v8, 0.0 }
0x3109   :  { %5140 = vadd.xlane.f32.xlu1 %v5139_v5  ;;  %v5136_v10 = vsel %vm133_vm1, %v5134_v9, 0.0 }
0x310a   :  { %5137 = vadd.xlane.f32.xlu0 %v5136_v10 }
0x3196   :  { %v5141_v53 = vpop.xlane.xlu1 %5140 }
0x3197   :  { %v5143_v1 = vmul.f32 0.03125, %v5141_v53  ;;  %v5138_v19 = vpop.xlane.xlu0 %5137 }
0x3198   :  { %v5142_v15 = vmul.f32 0.03125, %v5138_v19 }
0x3199   :  { %v5145_v40 = vsub.f32 %v5135_v8, %v5143_v1 }
0x319a   :  { %v5144_v41 = vsub.f32 %v5134_v9, %v5142_v15 }
0x319b   :  { %v5147_v22 = vmul.f32 %v5145_v40, %v5145_v40 }
0x319c   :  { %v5146_v23 = vmul.f32 %v5144_v41, %v5144_v41 }
0x319d   :  { %v5151_v24 = vsel %vm133_vm1, %v5147_v22, 0.0 }
0x319e   :  { %5152 = vadd.xlane.f32.xlu1 %v5151_v24  ;;  %v5148_v25 = vsel %vm133_vm1, %v5146_v23, 0.0 }
0x319f   :  { %5149 = vadd.xlane.f32.xlu0 %v5148_v25 }
0x322b   :  { %v5153_v60 = vpop.xlane.xlu1 %5152 }
0x322c   :  { %v5155_v30 = vmul.f32 0.03125, %v5153_v60  ;;  %v5150_v33 = vpop.xlane.xlu0 %5149 }
0x322d   :  { %v5154_v31 = vmul.f32 0.03125, %v5150_v33 }
0x322e   :  { %v5157_v14 = vadd.f32 1e-05, %v5155_v30 }
0x322f   :  { %v5156_v32 = vadd.f32 1e-05, %v5154_v31 }
0x3230   :  { %6808 = vrsqrt.f32 %v5157_v14 }
0x3231   :  { %6810 = vrsqrt.f32 %v5156_v32 }
0x323a   :  { %v6809_v34 = vpop.eup %6808 }
0x323b   :  { %v6811_v38 = vpop.eup %6810  ;;  %v5161_v36 = vmul.f32 %v6809_v34, %v5145_v40 }
0x323c   :  { %v5160_v12 = vmul.f32 %v6811_v38, %v5144_v41 }
0x323d   :  { %v5168_v39 = vmul.f32 %v5471_v13, %v5161_v36 }
0x323e   :  { %v5167_v2 = vmul.f32 %v5471_v13, %v5160_v12 }
0x323f   :  { %v5175_v45 = vadd.f32 %v5472_v35, %v5168_v39 }
0x3240   :  { %v5174_v47 = vadd.f32 %v5472_v35, %v5167_v2 }
0x3242   :  { %6174 = vmatprep.mubr.msk.f32.mxu1 %vm133_vm1, %v5174_v47 }
0x3243   :  { %6175 = vmatmul.mubr.msk.f32.vlgmr.msra.gmra.mrb[50].mxu1 %vm133_vm1, %v5175_v45 }
0x3316   :  { %v6176_v46 = vpop.f32.mrb[50].mxu1 }
0x3317   :  { %v5263_v48 = vadd.f32 %v6176_v46, %v5473_v44  ;;  %v5257_v49 = vpop.f32.mrb[51].mxu1 }
0x3318   :  { %v5258_v58 = vadd.f32 %v5473_v44, %v5257_v49 }
0x3319   :  { %6812 = vtanh.f32 %v5263_v48 }
0x331a   :  { %6814 = vtanh.f32 %v5258_v58 }
0x3323   :  { %v6813_v51 = vpop.eup %6812 }
0x3324   :  { %v6815_v52 = vpop.eup %6814  ;;  %5269 = vst.msk [vmem:[%s7897_s12 + $0x8] sm:$0xff] %vm49_vm0, %v6813_v51 }
0x3325   :  { %5268 = vst.msk [vmem:[%s7897_s12] sm:$0xff] %vm49_vm0, %v6815_v52 }

</bundles_post_ra>
